<compile_context>
chip_gen: v7x
topology: tpu7x:2x2x1
jax: 0.10.0
libtpu: 0.0.40
codegen_flags: <defaults>
</compile_context>

<pallas_src>
import math
import jax
import jax.numpy as jnp
from jax.experimental import pallas as pl
from jax.experimental.pallas import tpu as pltpu

# ----------------------- small synthetic configuration -----------------------
HEIGHT = 16           # GraphBase(height=...)
WIDTH = 16            # GraphBase(width=...)
B = 2                 # batch of feature maps
CIN = 128             # in_channels (default 1024, shrunk)
CCONV = 256           # conv output channels (hard-coded 256 in the module)
POOLED = 2            # ops.roi_align(..., 2)
PP = POOLED * POOLED
CNN_EMB = 128         # cnn_emb_feat (default 512, shrunk)
BOX_EMB = 64          # box_emb_feat (default 256, shrunk)
GCN_OUT = 128         # gcn_out_feat (default 512, shrunk)
BOXES_PER_IMG = 8
N_BOXES = B * BOXES_PER_IMG
HW = HEIGHT * WIDTH


# ------------------ single fused Pallas kernel (grid over images) -------------
def _graph_base_kernel(xc_ref, w9_ref, bconv_ref, wi_ref, wc_ref, bemb_ref,
                       boxpre_ref, wf2_ref, dec_ref, fus_ref):
    # xc_ref:    (HW, 9*CIN)        bf16 im2col rows of this image
    # w9_ref:    (9*CIN, CCONV)     bf16 conv weight (rows ordered kh,kw,cin)
    # bconv_ref: (1, CCONV)         f32 conv bias
    # wi_ref:    (PP*R, HW)         bf16 bilinear interp weights, rows (s, r)
    # wc_ref:    (PP, CCONV, CNN_EMB) bf16 cnn_emb weight chunked by pooled bin
    # bemb_ref:  (1, CNN_EMB)       f32
    # boxpre_ref:(R, GCN_OUT)       f32 precomputed  relu(box@Wb+bb) @ Wf_box + bf
    # wf2_ref:   (CNN_EMB, GCN_OUT) bf16 cnn half of fusion_linear weight
    # dec_ref:   (CCONV, HW)        f32 cnn_decode_feat of this image (NCHW layout)
    # fus_ref:   (R, GCN_OUT)       f32 fusion_feat rows of this image

    # conv3x3 + bias + ReLU as one im2col matmul
    feat = jnp.dot(xc_ref[...], w9_ref[...], preferred_element_type=jnp.float32)
    feat = jnp.maximum(feat + bconv_ref[...], 0.0)                  # (HW, CCONV)

    # decode output directly in (C, H*W) layout: in-kernel XLU transpose is free
    # filler here and removes the wrapper's NHWC->NCHW transpose entirely.
    dec_ref[...] = feat.T

    feat_bf = feat.astype(jnp.bfloat16)

    # roi_align as one interpolation-matrix matmul (rows = (pooled bin s, box r))
    roi = jnp.dot(wi_ref[...], feat_bf,
                  preferred_element_type=jnp.float32)               # (PP*R, CCONV)
    roi3 = roi.reshape(PP, BOXES_PER_IMG, CCONV).astype(jnp.bfloat16)

    # cnn_emb Linear as a single batched contraction over pooled bins
    # (matches torch roi.view(N, C*2*2) C-major flattening via wc permutation)
    emb = jnp.einsum('src,sce->sre', roi3, wc_ref[...],
                     preferred_element_type=jnp.float32).sum(axis=0)  # (R, CNN_EMB)
    h_cnn = jnp.maximum(emb + bemb_ref[...], 0.0).astype(jnp.bfloat16)

    # fusion_linear(concat([h_box, h_cnn])) == (h_box@Wf1 + bf) + h_cnn@Wf2
    fus_ref[...] = boxpre_ref[...] + jnp.dot(
        h_cnn, wf2_ref[...], preferred_element_type=jnp.float32)


def graph_base_fused(x_cols, w9, conv_b, interp, wc, cnn_b, box_pre, wf2, n_imgs):
    PPR = PP * BOXES_PER_IMG
    # TODO(synk): at production sizes (CIN=1024, larger H/W) add a K grid axis
    # ("arbitrary") with an f32 accumulator scratch for the conv matmul and set
    # vmem_limit_bytes explicitly (v5e: 16 MiB scoped, v7x: 64 MiB physical);
    # also consider a finer parallel axis so both v7x TensorCores stay busy
    # when B is small/odd.  At these toy sizes all blocks fit comfortably.
    return pl.pallas_call(
        _graph_base_kernel,
        out_shape=(
            jax.ShapeDtypeStruct((n_imgs * CCONV, HW), jnp.float32),
            jax.ShapeDtypeStruct((n_imgs * BOXES_PER_IMG, GCN_OUT), jnp.float32),
        ),
        grid=(n_imgs,),
        in_specs=[
            pl.BlockSpec((HW, 9 * CIN), lambda i: (i, 0)),            # im2col rows
            pl.BlockSpec((9 * CIN, CCONV), lambda i: (0, 0)),         # conv weight
            pl.BlockSpec((1, CCONV), lambda i: (0, 0)),               # conv bias
            pl.BlockSpec((PPR, HW), lambda i: (i, 0)),                # interp weights
            pl.BlockSpec((PP, CCONV, CNN_EMB), lambda i: (0, 0, 0)),  # cnn_emb weight
            pl.BlockSpec((1, CNN_EMB), lambda i: (0, 0)),             # cnn_emb bias
            pl.BlockSpec((BOXES_PER_IMG, GCN_OUT), lambda i: (i, 0)), # box branch
            pl.BlockSpec((CNN_EMB, GCN_OUT), lambda i: (0, 0)),       # fusion Wf2
        ],
        out_specs=(
            pl.BlockSpec((CCONV, HW), lambda i: (i, 0)),
            pl.BlockSpec((BOXES_PER_IMG, GCN_OUT), lambda i: (i, 0)),
        ),
        compiler_params=pltpu.CompilerParams(
            dimension_semantics=("parallel",)),    # images are independent
    )(x_cols, w9, conv_b, interp, wc, cnn_b, box_pre, wf2)


# --------- roi_align as bilinear-interpolation weights (torchvision sem.) -----
# Gather-free: weights are built with arange/compare, then applied as a matmul.
def _axis_interp_weights(pos, size):
    # pos: (...,) sample coordinates along one axis -> (..., size) row weights
    oob = (pos < -1.0) | (pos > size)
    p = jnp.maximum(pos, 0.0)
    low = jnp.minimum(p.astype(jnp.int32), size - 1)
    high = jnp.minimum(low + 1, size - 1)
    p = jnp.where(low >= size - 1, jnp.float32(size - 1), p)
    l = p - low.astype(jnp.float32)
    h = 1.0 - l
    idx = jnp.arange(size, dtype=jnp.int32)
    w = (h[..., None] * (idx == low[..., None]).astype(jnp.float32)
         + l[..., None] * (idx == high[..., None]).astype(jnp.float32))
    return jnp.where(oob[..., None], 0.0, w)


def _roi_interp_map(box):
    # One box -> (PP, H*W) weights s.t. weights @ feat(H*W, C) == roi_align bin
    # values.  torchvision semantics: spatial_scale=1, aligned=False,
    # sampling_ratio=-1 (adaptive grid), pooled=2.
    H, W, P = HEIGHT, WIDTH, POOLED
    max_grid = int(math.ceil(max(H, W) / P))
    x1, y1, x2, y2 = box[0], box[1], box[2], box[3]
    roi_w = jnp.maximum(x2 - x1, 1.0)
    roi_h = jnp.maximum(y2 - y1, 1.0)
    bin_w = roi_w / P
    bin_h = roi_h / P
    grid_h = jnp.ceil(roi_h / P).astype(jnp.int32)
    grid_w = jnp.ceil(roi_w / P).astype(jnp.int32)
    pbins = jnp.arange(P, dtype=jnp.float32)
    g = jnp.arange(max_grid, dtype=jnp.float32)
    yy = y1 + pbins[:, None] * bin_h + (g[None, :] + 0.5) * bin_h / grid_h  # (P, mg)
    xx = x1 + pbins[:, None] * bin_w + (g[None, :] + 0.5) * bin_w / grid_w
    wy = _axis_interp_weights(yy, H)                                        # (P, mg, H)
    wx = _axis_interp_weights(xx, W)                                        # (P, mg, W)
    gi = jnp.arange(max_grid)
    wy = wy * (gi < grid_h).astype(jnp.float32)[None, :, None]
    wx = wx * (gi < grid_w).astype(jnp.float32)[None, :, None]
    wy_sum = wy.sum(axis=1)                                                 # (P, H)
    wx_sum = wx.sum(axis=1)                                                 # (P, W)
    count = (grid_h * grid_w).astype(jnp.float32)
    maps = wy_sum[:, None, :, None] * wx_sum[None, :, None, :] / count      # (P,P,H,W)
    return maps.reshape(P * P, H * W)                                       # rows s=sy*P+sx


# ------------------------------- parameters -----------------------------------
def init_params(key):
    ks = jax.random.split(key, 4)

    def kaiming(k, shape, fan_out):
        return jax.random.normal(k, shape, jnp.float32) * math.sqrt(2.0 / fan_out)

    conv_w = kaiming(ks[0], (CCONV, CIN, 3, 3), CCONV * 9)       # PyTorch (Co,Ci,kh,kw)
    conv_b = jnp.zeros((CCONV,), jnp.float32)
    box_w = kaiming(ks[1], (BOX_EMB, 4), BOX_EMB).T              # (4, BOX_EMB)
    box_b = jnp.zeros((BOX_EMB,), jnp.float32)
    cnn_in = CCONV * PP
    cnn_w = kaiming(ks[2], (CNN_EMB, cnn_in), CNN_EMB).T         # (cnn_in, CNN_EMB), rows (c, s)
    cnn_b = jnp.zeros((CNN_EMB,), jnp.float32)
    fus_w = kaiming(ks[3], (GCN_OUT, BOX_EMB + CNN_EMB), GCN_OUT).T  # (emb, GCN_OUT)
    fus_b = jnp.zeros((GCN_OUT,), jnp.float32)
    return dict(conv_w=conv_w, conv_b=conv_b,
                box_w=box_w, box_b=box_b,
                cnn_w=cnn_w, cnn_b=cnn_b,
                fus_w1=fus_w[:BOX_EMB], fus_w2=fus_w[BOX_EMB:], fus_b=fus_b)


# ---------------------------- shared wrapper helpers ---------------------------
def _im2col(x_nchw):
    # TODO(synk): at real CIN this writes a 9x-expanded copy of the input to HBM;
    # when mem-bound, move the 3x3 halo handling into the kernel (K-accumulator).
    Bn = x_nchw.shape[0]
    x_nhwc = jnp.transpose(x_nchw, (0, 2, 3, 1))                 # NCHW -> NHWC
    xpad = jnp.pad(x_nhwc, ((0, 0), (1, 1), (1, 1), (0, 0)))
    cols = [xpad[:, dy:dy + HEIGHT, dx:dx + WIDTH, :]
            for dy in range(3) for dx in range(3)]
    return jnp.concatenate(cols, axis=-1).reshape(Bn * HW, 9 * CIN)


def _conv_w9(params):
    # weight rows ordered (kh, kw, cin) to match the im2col concat order
    return jnp.transpose(params["conv_w"], (2, 3, 1, 0)).reshape(9 * CIN, CCONV)


def _box_features(boxes_all):
    rel_x = (boxes_all[:, 0] + boxes_all[:, 2]) * (0.5 / WIDTH)
    rel_y = (boxes_all[:, 1] + boxes_all[:, 3]) * (0.5 / HEIGHT)
    rel_w = (boxes_all[:, 2] - boxes_all[:, 0]) * (1.0 / WIDTH)
    rel_h = (boxes_all[:, 3] - boxes_all[:, 1]) * (1.0 / HEIGHT)
    return jnp.stack([rel_x, rel_y, rel_w, rel_h], axis=1)       # (N, 4)


# --------------------------------- forward ------------------------------------
def graph_base_forward(x_nchw, cell_boxes, params):
    Bn = x_nchw.shape[0]

    # ---- im2col + conv weight (bf16 MXU operands) ----
    x_cols = _im2col(x_nchw).astype(jnp.bfloat16)
    w9 = _conv_w9(params).astype(jnp.bfloat16)

    # ---- box branch fully precomputed in f32 XLA (lane-sparse, K=64 matmul) ----
    boxes_b = jnp.stack(cell_boxes, axis=0)                      # (B, R, 4)
    boxes_all = boxes_b.reshape(N_BOXES, 4)
    box_feat = _box_features(boxes_all)
    h_box = jnp.maximum(box_feat @ params["box_w"] + params["box_b"], 0.0)
    box_pre = h_box @ params["fus_w1"] + params["fus_b"]         # (N, GCN_OUT)

    # ---- per-image roi interpolation matrices, rows (pooled bin s, box r) ----
    interp = jax.vmap(jax.vmap(_roi_interp_map))(boxes_b)        # (B, R, PP, HW)
    interp = jnp.transpose(interp, (0, 2, 1, 3))                 # (B, PP, R, HW)
    interp = interp.reshape(Bn * PP * BOXES_PER_IMG, HW).astype(jnp.bfloat16)

    # ---- cnn_emb weight: rows (c, s) -> (s, c, e) chunks so the kernel's
    #      (s-major, r-minor) roi rows reproduce torch's roi.view(N, C*2*2) ----
    wc = params["cnn_w"].reshape(CCONV, PP, CNN_EMB).transpose(1, 0, 2)
    wc = wc.astype(jnp.bfloat16)

    dec_flat, fusion_feat = graph_base_fused(
        x_cols, w9, params["conv_b"].reshape(1, CCONV),
        interp, wc, params["cnn_b"].reshape(1, CNN_EMB),
        box_pre, params["fus_w2"].astype(jnp.bfloat16), Bn)

    cnn_decode_feat = dec_flat.reshape(Bn, CCONV, HEIGHT, WIDTH)  # pure reshape
    return fusion_feat, cnn_decode_feat


graph_base_forward_jit = jax.jit(graph_base_forward)


# ------------------------- pure-f32 XLA reference ------------------------------
def reference_forward(x_nchw, cell_boxes, params):
    Bn = x_nchw.shape[0]
    x_cols = _im2col(x_nchw)
    feat = jnp.maximum(x_cols @ _conv_w9(params) + params["conv_b"], 0.0)
    cnn_decode = jnp.transpose(feat.reshape(Bn, HEIGHT, WIDTH, CCONV), (0, 3, 1, 2))
    feat_b = feat.reshape(Bn, HW, CCONV)

    boxes_b = jnp.stack(cell_boxes, axis=0)
    interp = jax.vmap(jax.vmap(_roi_interp_map))(boxes_b)        # (B, R, PP, HW)
    roi = jnp.einsum('brsk,bkc->brsc', interp, feat_b)           # (B, R, PP, C)
    roi_flat = jnp.transpose(roi, (0, 1, 3, 2)).reshape(N_BOXES, CCONV * PP)
    h_cnn = jnp.maximum(roi_flat @ params["cnn_w"] + params["cnn_b"], 0.0)

    box_feat = _box_features(boxes_b.reshape(N_BOXES, 4))
    h_box = jnp.maximum(box_feat @ params["box_w"] + params["box_b"], 0.0)
    fusion = h_box @ params["fus_w1"] + h_cnn @ params["fus_w2"] + params["fus_b"]
    return fusion, cnn_decode


def _rel_fro_err(a, b):
    return float(jnp.linalg.norm(a - b) / (jnp.linalg.norm(b) + 1e-6))


# ----------------------------------- main --------------------------------------
if __name__ == "__main__":
    key = jax.random.PRNGKey(0)
    kx, kb, kp = jax.random.split(key, 3)

    x = jax.random.normal(kx, (B, CIN, HEIGHT, WIDTH), jnp.float32)   # NCHW input

    cell_boxes = []
    for bk in jax.random.split(kb, B):
        k1, k2, k3, k4 = jax.random.split(bk, 4)
        x0 = jax.random.uniform(k1, (BOXES_PER_IMG,), minval=0.0, maxval=WIDTH / 2)
        y0 = jax.random.uniform(k2, (BOXES_PER_IMG,), minval=0.0, maxval=HEIGHT / 2)
        bw = jax.random.uniform(k3, (BOXES_PER_IMG,), minval=1.5, maxval=WIDTH / 2)
        bh = jax.random.uniform(k4, (BOXES_PER_IMG,), minval=1.5, maxval=HEIGHT / 2)
        cell_boxes.append(jnp.stack([x0, y0, x0 + bw, y0 + bh], axis=1))

    params = init_params(kp)

    fusion_feat, cnn_decode_feat = graph_base_forward_jit(x, cell_boxes, params)
    jax.block_until_ready((fusion_feat, cnn_decode_feat))

    assert fusion_feat.shape == (N_BOXES, GCN_OUT)
    assert cnn_decode_feat.shape == (B, CCONV, HEIGHT, WIDTH)
    assert bool(jnp.all(jnp.isfinite(fusion_feat)))
    assert bool(jnp.all(jnp.isfinite(cnn_decode_feat)))

    # f32 reference check (bf16 MXU operands -> generous but bug-catching tol)
    ref_fusion, ref_decode = reference_forward(x, cell_boxes, params)
    err_fus = _rel_fro_err(fusion_feat, ref_fusion)
    err_dec = _rel_fro_err(cnn_decode_feat, ref_decode)
    assert err_fus < 0.10, f"fusion_feat mismatch: rel Frobenius err {err_fus}"
    assert err_dec < 0.03, f"cnn_decode_feat mismatch: rel Frobenius err {err_dec}"

    print("KERNEL_OK")
</pallas_src>

<mosaic_0001>
module attributes {stable_mosaic.version = 11 : i64} {
  func.func @_graph_base_kernel(%arg0: i32, %arg1: memref<256x1152xbf16, #tpu.memory_space<vmem>>, %arg2: memref<1152x256xbf16, #tpu.memory_space<vmem>>, %arg3: memref<1x256xf32, #tpu.memory_space<vmem>>, %arg4: memref<32x256xbf16, #tpu.memory_space<vmem>>, %arg5: memref<4x256x128xbf16, #tpu.memory_space<vmem>>, %arg6: memref<1x128xf32, #tpu.memory_space<vmem>>, %arg7: memref<8x128xf32, #tpu.memory_space<vmem>>, %arg8: memref<128x128xbf16, #tpu.memory_space<vmem>>, %arg9: memref<256x256xf32, #tpu.memory_space<vmem>>, %arg10: memref<8x128xf32, #tpu.memory_space<vmem>>) attributes {dimension_semantics = [#tpu.dimension_semantics<parallel>], iteration_bounds = array<i64: 2>, scalar_prefetch = 0 : i64, scratch_operands = 0 : i64, tpu.core_type = #tpu.core_type<tc>, window_params = [{transform_indices = @transform_0, window_bounds = array<i64: 256, 1152>}, {pipeline_mode = #tpu.pipeline_mode<synchronous>, transform_indices = @transform_1, window_bounds = array<i64: 1152, 256>}, {pipeline_mode = #tpu.pipeline_mode<synchronous>, transform_indices = @transform_2, window_bounds = array<i64: 1, 256>}, {transform_indices = @transform_3, window_bounds = array<i64: 32, 256>}, {pipeline_mode = #tpu.pipeline_mode<synchronous>, transform_indices = @transform_4, window_bounds = array<i64: 4, 256, 128>}, {pipeline_mode = #tpu.pipeline_mode<synchronous>, transform_indices = @transform_5, window_bounds = array<i64: 1, 128>}, {transform_indices = @transform_6, window_bounds = array<i64: 8, 128>}, {pipeline_mode = #tpu.pipeline_mode<synchronous>, transform_indices = @transform_7, window_bounds = array<i64: 128, 128>}, {transform_indices = @transform_8, window_bounds = array<i64: 256, 256>}, {transform_indices = @transform_9, window_bounds = array<i64: 8, 128>}]} {
    %c0 = arith.constant 0 : index
    %c0_0 = arith.constant 0 : index
    %0 = vector.load %arg1[%c0, %c0_0] : memref<256x1152xbf16, #tpu.memory_space<vmem>>, vector<256x1152xbf16>
    %c0_1 = arith.constant 0 : index
    %c0_2 = arith.constant 0 : index
    %1 = vector.load %arg2[%c0_1, %c0_2] : memref<1152x256xbf16, #tpu.memory_space<vmem>>, vector<1152x256xbf16>
    %cst = arith.constant dense<0.000000e+00> : vector<256x256xf32>
    %2 = tpu.matmul %0, %1, %cst {dimension_numbers = #tpu.dot_dimension_numbers<[1], [0], [0], [1], [0, 0, 1, 1], [], []>} : vector<256x1152xbf16>, vector<1152x256xbf16>, vector<256x256xf32> -> vector<256x256xf32>
    %c0_3 = arith.constant 0 : index
    %c0_4 = arith.constant 0 : index
    %3 = vector.load %arg3[%c0_3, %c0_4] : memref<1x256xf32, #tpu.memory_space<vmem>>, vector<1x256xf32>
    %4 = vector.broadcast %3 : vector<1x256xf32> to vector<256x256xf32>
    %5 = arith.addf %2, %4 : vector<256x256xf32>
    %cst_5 = arith.constant 0.000000e+00 : f32
    %6 = vector.broadcast %cst_5 : f32 to vector<256x256xf32>
    %7 = arith.maximumf %5, %6 : vector<256x256xf32>
    %8 = tpu.transpose %7, [1, 0] : vector<256x256xf32> -> vector<256x256xf32>
    %c0_6 = arith.constant 0 : index
    %c0_7 = arith.constant 0 : index
    %9 = vector.load %arg9[%c0_6, %c0_7] : memref<256x256xf32, #tpu.memory_space<vmem>>, vector<256x256xf32>
    tpu.vector_store %arg9[%c0_6, %c0_7], %8 {strides = array<i32>} : memref<256x256xf32, #tpu.memory_space<vmem>>, vector<256x256xf32>,
    %10 = arith.truncf %7 : vector<256x256xf32> to vector<256x256xbf16>
    %c0_8 = arith.constant 0 : index
    %c0_9 = arith.constant 0 : index
    %11 = vector.load %arg4[%c0_8, %c0_9] : memref<32x256xbf16, #tpu.memory_space<vmem>>, vector<32x256xbf16>
    %cst_10 = arith.constant dense<0.000000e+00> : vector<32x256xf32>
    %12 = tpu.matmul %11, %10, %cst_10 {dimension_numbers = #tpu.dot_dimension_numbers<[1], [0], [0], [1], [0, 0, 1, 1], [], []>} : vector<32x256xbf16>, vector<256x256xbf16>, vector<32x256xf32> -> vector<32x256xf32>
    %13 = vector.shape_cast %12 : vector<32x256xf32> to vector<4x8x256xf32>
    %14 = arith.truncf %13 : vector<4x8x256xf32> to vector<4x8x256xbf16>
    %c0_11 = arith.constant 0 : index
    %c0_12 = arith.constant 0 : index
    %c0_13 = arith.constant 0 : index
    %15 = vector.load %arg5[%c0_11, %c0_12, %c0_13] : memref<4x256x128xbf16, #tpu.memory_space<vmem>>, vector<4x256x128xbf16>
    "tpu.trace_start"() <{level = 10 : i32, message = "src,sce->sre"}> : () -> ()
    %cst_14 = arith.constant dense<0.000000e+00> : vector<4x8x128xf32>
    %16 = tpu.matmul %14, %15, %cst_14 {dimension_numbers = #tpu.dot_dimension_numbers<[2], [1], [1], [2], [0, 0, 0, 1, 1, 2], [0], [0]>} : vector<4x8x256xbf16>, vector<4x256x128xbf16>, vector<4x8x128xf32> -> vector<4x8x128xf32>
    "tpu.trace_stop"() : () -> ()
    %cst_15 = arith.constant dense<0.000000e+00> : vector<8x128xf32>
    %17 = vector.multi_reduction <add>, %16, %cst_15 [0] : vector<4x8x128xf32> to vector<8x128xf32>
    %c0_16 = arith.constant 0 : index
    %c0_17 = arith.constant 0 : index
    %18 = vector.load %arg6[%c0_16, %c0_17] : memref<1x128xf32, #tpu.memory_space<vmem>>, vector<1x128xf32>
    %19 = vector.broadcast %18 : vector<1x128xf32> to vector<8x128xf32>
    %20 = arith.addf %17, %19 : vector<8x128xf32>
    %cst_18 = arith.constant 0.000000e+00 : f32
    %21 = vector.broadcast %cst_18 : f32 to vector<8x128xf32>
    %22 = arith.maximumf %20, %21 : vector<8x128xf32>
    %23 = arith.truncf %22 : vector<8x128xf32> to vector<8x128xbf16>
    %c0_19 = arith.constant 0 : index
    %c0_20 = arith.constant 0 : index
    %24 = vector.load %arg7[%c0_19, %c0_20] : memref<8x128xf32, #tpu.memory_space<vmem>>, vector<8x128xf32>
    %c0_21 = arith.constant 0 : index
    %c0_22 = arith.constant 0 : index
    %25 = vector.load %arg8[%c0_21, %c0_22] : memref<128x128xbf16, #tpu.memory_space<vmem>>, vector<128x128xbf16>
    %cst_23 = arith.constant dense<0.000000e+00> : vector<8x128xf32>
    %26 = tpu.matmul %23, %25, %cst_23 {dimension_numbers = #tpu.dot_dimension_numbers<[1], [0], [0], [1], [0, 0, 1, 1], [], []>} : vector<8x128xbf16>, vector<128x128xbf16>, vector<8x128xf32> -> vector<8x128xf32>
    %27 = arith.addf %24, %26 : vector<8x128xf32>
    %c0_24 = arith.constant 0 : index
    %c0_25 = arith.constant 0 : index
    %28 = vector.load %arg10[%c0_24, %c0_25] : memref<8x128xf32, #tpu.memory_space<vmem>>, vector<8x128xf32>
    tpu.vector_store %arg10[%c0_24, %c0_25], %27 {strides = array<i32>} : memref<8x128xf32, #tpu.memory_space<vmem>>, vector<8x128xf32>,
    return
  }
  func.func @transform_0(%arg0: i32) -> (i32, i32) {
    %c0_i32 = arith.constant 0 : i32
    %c0_i32_0 = arith.constant 0 : i32
    return %arg0, %c0_i32 : i32, i32
  }
  func.func @transform_1(%arg0: i32) -> (i32, i32) {
    %c0_i32 = arith.constant 0 : i32
    %c0_i32_0 = arith.constant 0 : i32
    %c0_i32_1 = arith.constant 0 : i32
    return %c0_i32, %c0_i32_0 : i32, i32
  }
  func.func @transform_2(%arg0: i32) -> (i32, i32) {
    %c0_i32 = arith.constant 0 : i32
    %c0_i32_0 = arith.constant 0 : i32
    %c0_i32_1 = arith.constant 0 : i32
    return %c0_i32, %c0_i32_0 : i32, i32
  }
  func.func @transform_3(%arg0: i32) -> (i32, i32) {
    %c0_i32 = arith.constant 0 : i32
    %c0_i32_0 = arith.constant 0 : i32
    return %arg0, %c0_i32 : i32, i32
  }
  func.func @transform_4(%arg0: i32) -> (i32, i32, i32) {
    %c0_i32 = arith.constant 0 : i32
    %c0_i32_0 = arith.constant 0 : i32
    %c0_i32_1 = arith.constant 0 : i32
    %c0_i32_2 = arith.constant 0 : i32
    return %c0_i32, %c0_i32_0, %c0_i32_1 : i32, i32, i32
  }
  func.func @transform_5(%arg0: i32) -> (i32, i32) {
    %c0_i32 = arith.constant 0 : i32
    %c0_i32_0 = arith.constant 0 : i32
    %c0_i32_1 = arith.constant 0 : i32
    return %c0_i32, %c0_i32_0 : i32, i32
  }
  func.func @transform_6(%arg0: i32) -> (i32, i32) {
    %c0_i32 = arith.constant 0 : i32
    %c0_i32_0 = arith.constant 0 : i32
    return %arg0, %c0_i32 : i32, i32
  }
  func.func @transform_7(%arg0: i32) -> (i32, i32) {
    %c0_i32 = arith.constant 0 : i32
    %c0_i32_0 = arith.constant 0 : i32
    %c0_i32_1 = arith.constant 0 : i32
    return %c0_i32, %c0_i32_0 : i32, i32
  }
  func.func @transform_8(%arg0: i32) -> (i32, i32) {
    %c0_i32 = arith.constant 0 : i32
    %c0_i32_0 = arith.constant 0 : i32
    return %arg0, %c0_i32 : i32, i32
  }
  func.func @transform_9(%arg0: i32) -> (i32, i32) {
    %c0_i32 = arith.constant 0 : i32
    %c0_i32_0 = arith.constant 0 : i32
    return %arg0, %c0_i32 : i32, i32
  }
}

</mosaic_0001>

<bundles_post_ra>
// kernel: graph_base_forward.1
= control target key start
LH: loop header
LB: loop body
LE: loop exit
PB: predicated region body
PF: predicated region fallthrough
CT: control target
= control target key end

     0   :  { %s7868_s0 = inlined_call_operand.vmem [shape: bf16[512,1152], index: 0, kind: input, shape index: {}]   ;;  %s7869_s1 = inlined_call_operand.vmem [shape: bf16[1152,256], index: 1, kind: input, shape index: {}]   ;;  %s7870_s2 = inlined_call_operand.vmem [shape: f32[1,256], index: 2, kind: input, shape index: {}]   ;;  %s7871_s3 = inlined_call_operand.vmem [shape: bf16[64,256], index: 3, kind: input, shape index: {}]   ;;  %s7872_s4 = inlined_call_operand.vmem [shape: bf16[4,256,128], index: 4, kind: input, shape index: {}]   ;;  %s7873_s5 = inlined_call_operand.vmem [shape: f32[1,128], index: 5, kind: input, shape index: {}]   ;;  %s7874_s6 = inlined_call_operand.vmem [shape: f32[16,128], index: 6, kind: input, shape index: {}]   ;;  %s7875_s7 = inlined_call_operand.vmem [shape: bf16[128,128], index: 7, kind: input, shape index: {}]   ;;  %s7876_s8 = inlined_call_operand.vmem [shape: f32[512,256], index: 8, kind: output, shape index: {0}]   ;;  %s7877_s9 = inlined_call_operand.hbm [shape: f32[16,128], index: 9, kind: output, shape index: {1}]  }
   0x1   :  { %7962 = sst [smem:[#allocation76_spill]] %s7868_s0 }
   0x2   :  { %15 = vsyncpa [#allocation3], 0 }
   0x3   :  { %17 = vsyncpa [#allocation3 + $0x1], 0  ;;  %s5931_s30 = smov 0   ;;  %s5933_s10 = smov 0  }
   0x4   :  { %s5935_s11 = smov 0   ;;  %s5937_s12 = smov 0  }
   0x5 LB: > { %s5952_s13 = sadd.s32 4294967295, %s5875_s12   ;;  %s4430_s14 = sadd.s32 4294967294, %s5875_s12   ;;  %s5875_s12 = sphi %s5937_s12, %s8231_s12   ;;  %s5871_s11 = sphi %s5935_s11, %s8230_s11   ;;  %s5867_s10 = sphi %s5933_s10, %s8229_s10   ;;  %s5863_s30 = sphi %s5931_s30, %s8228_s30  }
   0x6   : > { %s5956_s15 = sadd.s32 1, %s5875_s12   ;;  %s239_s16 = sadd.s32 1, %s5871_s11 }
   0x7   : > { %s236_s17 = ssub.s32 %s5875_s12, %s5956_s15  ;;  %p249_p0 = scmp.ne.s32.totalorder %s5871_s11, %s5867_s10 }
   0x8   : > { %p237_p1 = scmp.eq.s32.totalorder %s236_s17, 0  ;;  %p250_p2 = scmp.eq.s32.totalorder %s5952_s13, 1 }
   0x9   : > { %p255_p3 = scmp.ne.s32.totalorder %s5867_s10, %s5863_s30  ;;  %p256_p4 = scmp.eq.s32.totalorder %s4430_s14, 1 }
   0xa   : > { %s5967_s18 = scalar_select %p237_p1, %s5871_s11, %s239_s16  }
   0xb   : > { %p5969_p5 = por %p250_p2, %p249_p0  ;;  %p5973_p6 = por %p256_p4, %p255_p3 }
   0xc   : > { %p4433_p7 = scmp.ge.s32.totalorder %s5875_s12, 1  ;;  %p316_p8 = scmp.lt.s32.totalorder %s5875_s12, 3 }
   0xe   : > { %p317_p9 = pnand %p4433_p7, %p316_p8 }
  0x10   : > { %320 = sbr.rel (%p317_p9) target bundleno = 1528 (0x5f8), region = 52 }
  0x17   : > { %v5311_v0 = vld [vmem:[%s7869_s1 + $0x104] ss:$8 sps:$4 sm:$0xff]   ;;  %v5313_v1 = vld [vmem:[%s7869_s1 + $0x100] ss:$8 sps:$4 sm:$0xff]   ;;  %v5314_v2 = vld [vmem:[%s7869_s1 + $0x114] ss:$8 sps:$4 sm:$0xff]  }
  0x18   : > { %2360 = vmatprep.subr.bf16.mxu0 %v5311_v0  ;;  %v5316_v3 = vld [vmem:[%s7869_s1 + $0x110] ss:$8 sps:$4 sm:$0xff]   ;;  %v5317_v4 = vld [vmem:[%s7869_s1 + $0x124] ss:$8 sps:$4 sm:$0xff]   ;;  %s4435_s16 = sshll.u32 %s5952_s13, 5  ;;  %s7965_s0 = sld [smem:[#allocation76_spill]] }
  0x19   : > { %2361 = vmatpush1.bf16.msra.mxu0 %v5313_v1  ;;  %v5319_v5 = vld [vmem:[%s7869_s1 + $0x120] ss:$8 sps:$4 sm:$0xff]   ;;  %p370_p10 = scmp.lt.s32.totalorder %s4435_s16, 63  ;;  %v5320_v6 = vld [vmem:[%s7869_s1 + $0x134] ss:$8 sps:$4 sm:$0xff]   ;;  %s4437_s22 = sshll.u32 %s5952_s13, 2 }
  0x1a   : > { %2362 = vmatprep.subr.bf16.mxu0 %v5314_v2  ;;  %v5322_v7 = vld [vmem:[%s7869_s1 + $0x130] ss:$8 sps:$4 sm:$0xff]   ;;  %v5323_v8 = vld [vmem:[%s7869_s1 + $0x144] ss:$8 sps:$4 sm:$0xff]   ;;  %v5325_v9 = vld [vmem:[%s7869_s1 + $0x140] ss:$8 sps:$4 sm:$0xff]  }
  0x1b   : > { %s8233_s16 = smov (!%p370_p10, %s4435_s16), 63  ;;  %v5326_v10 = vld [vmem:[%s7869_s1 + $0x154] ss:$8 sps:$4 sm:$0xff]   ;;  %v5328_v11 = vld [vmem:[%s7869_s1 + $0x150] ss:$8 sps:$4 sm:$0xff]   ;;  %p377_p11 = scmp.lt.s32.totalorder %s4437_s22, 7 }
  0x1c   : > { %s5268_s14 = smul.u32 36, %s8233_s16  ;;  %v5329_v12 = vld [vmem:[%s7869_s1 + $0x164] ss:$8 sps:$4 sm:$0xff]   ;;  %v5331_v14 = vld [vmem:[%s7869_s1 + $0x160] ss:$8 sps:$4 sm:$0xff]   ;;  %vm5879_vm0 = vmmov 0  }
  0x1d   : > { %2363 = vmatpush1.bf16.msra.mxu0 %v5316_v3  ;;  %v5332_v15 = vld [vmem:[%s7869_s1 + $0x174] ss:$8 sps:$4 sm:$0xff]   ;;  %v5334_v16 = vld [vmem:[%s7869_s1 + $0x170] ss:$8 sps:$4 sm:$0xff]   ;;  %v5335_v17 = vld [vmem:[%s7869_s1 + $0x184] ss:$8 sps:$4 sm:$0xff]  }
  0x1e   : > { %2364 = vmatprep.subr.bf16.mxu0 %v5317_v4  ;;  %s6022_s26 = scalar_lea.vmem %s7965_s0, %s5268_s14  ;;  %v5337_v18 = vld [vmem:[%s7869_s1 + $0x180] ss:$8 sps:$4 sm:$0xff]   ;;  %v5338_v19 = vld [vmem:[%s7869_s1 + $0x194] ss:$8 sps:$4 sm:$0xff]   ;;  %v5340_v20 = vld [vmem:[%s7869_s1 + $0x190] ss:$8 sps:$4 sm:$0xff]  }
  0x1f   : > { %v5361_v13 = vld [vmem:[%s6022_s26 + $0xc] ss:$36 sps:$4 sm:$0xff]   ;;  %v5343_v22 = vld [vmem:[%s7869_s1 + $0x1a0] ss:$8 sps:$4 sm:$0xff]   ;;  %v5344_v23 = vld [vmem:[%s7869_s1 + $0x1b4] ss:$8 sps:$4 sm:$0xff]  }
  0x20   : > { %2392 = vmatprep.mubr.bf16.mxu0 %v5361_v13  ;;  %v5341_v21 = vld [vmem:[%s7869_s1 + $0x1a4] ss:$8 sps:$4 sm:$0xff]   ;;  %v5346_v24 = vld [vmem:[%s7869_s1 + $0x1b0] ss:$8 sps:$4 sm:$0xff]   ;;  %v5349_v26 = vld [vmem:[%s7869_s1 + $0x1c0] ss:$8 sps:$4 sm:$0xff]  }
  0x21   : > { %2365 = vmatpush1.bf16.msra.mxu0 %v5319_v5  ;;  %v5347_v25 = vld [vmem:[%s7869_s1 + $0x1c4] ss:$8 sps:$4 sm:$0xff]   ;;  %v5418_v28 = vld [vmem:[%s7869_s1] ss:$8 sps:$4 sm:$0xff]   ;;  %v5350_v29 = vld [vmem:[%s7869_s1 + $0x1d4] ss:$8 sps:$4 sm:$0xff]  }
  0x22   : > { %2366 = vmatprep.subr.bf16.mxu0 %v5320_v6  ;;  %v5416_v27 = vld [vmem:[%s7869_s1 + $0x4] ss:$8 sps:$4 sm:$0xff]   ;;  %v5422_v30 = vld [vmem:[%s7869_s1 + $0x14] ss:$8 sps:$4 sm:$0xff]   ;;  %v5424_v31 = vld [vmem:[%s7869_s1 + $0x10] ss:$8 sps:$4 sm:$0xff]  }
  0x23   : > { %2167 = vmatprep.subr.bf16.mxu1 %v5416_v27  ;;  %v5352_v32 = vld [vmem:[%s7869_s1 + $0x1d0] ss:$8 sps:$4 sm:$0xff]   ;;  %v5353_v33 = vld [vmem:[%s7869_s1 + $0x1e4] ss:$8 sps:$4 sm:$0xff]   ;;  %v5433_v35 = vld [vmem:[%s7869_s1 + $0x20] ss:$8 sps:$4 sm:$0xff]  }
  0x24   : > { %2168 = vmatpush1.bf16.msra.mxu1 %v5418_v28  ;;  %v5431_v34 = vld [vmem:[%s7869_s1 + $0x24] ss:$8 sps:$4 sm:$0xff]   ;;  %v5355_v36 = vld [vmem:[%s7869_s1 + $0x1e0] ss:$8 sps:$4 sm:$0xff]   ;;  %v5356_v37 = vld [vmem:[%s7869_s1 + $0x1f4] ss:$8 sps:$4 sm:$0xff]  }
  0x25   : > { %2367 = vmatpush1.bf16.msra.mxu0 %v5322_v7  ;;  %2169 = vmatprep.subr.bf16.mxu1 %v5422_v30  ;;  %v5437_v38 = vld [vmem:[%s7869_s1 + $0x34] ss:$8 sps:$4 sm:$0xff]   ;;  %v5439_v39 = vld [vmem:[%s7869_s1 + $0x30] ss:$8 sps:$4 sm:$0xff]   ;;  %v5376_v41 = vld [vmem:[%s7869_s1 + $0x204] ss:$8 sps:$4 sm:$0xff]  }
  0x26   : > { %2368 = vmatprep.subr.bf16.mxu0 %v5323_v8  ;;  %v5358_v40 = vld [vmem:[%s7869_s1 + $0x1f0] ss:$8 sps:$4 sm:$0xff]   ;;  %v5446_v42 = vld [vmem:[%s7869_s1 + $0x44] ss:$8 sps:$4 sm:$0xff]   ;;  %v5448_v45 = vld [vmem:[%s7869_s1 + $0x40] ss:$8 sps:$4 sm:$0xff]  }
  0x27   : > { %v5359_v43 = vld [vmem:[%s6022_s26 + $0x8] ss:$36 sps:$4 sm:$0xff]   ;;  %v5362_v44 = vld [vmem:[%s6022_s26 + $0x54] ss:$36 sps:$4 sm:$0xff]   ;;  %v5365_v54 = vld [vmem:[%s6022_s26 + $0x9c] ss:$36 sps:$4 sm:$0xff]  }
  0x28   : > { %2170 = vmatpush1.bf16.msra.mxu1 %v5424_v31  ;;  %v5374_v46 = vld [vmem:[%s7869_s1 + $0x200] ss:$8 sps:$4 sm:$0xff]   ;;  %v5382_v47 = vld [vmem:[%s7869_s1 + $0x214] ss:$8 sps:$4 sm:$0xff]   ;;  %v5454_v49 = vld [vmem:[%s7869_s1 + $0x50] ss:$8 sps:$4 sm:$0xff]  }
  0x29   : > { %2369 = vmatpush1.bf16.msra.mxu0 %v5325_v9  ;;  %2171 = vmatprep.subr.bf16.mxu1 %v5431_v34  ;;  %v5452_v48 = vld [vmem:[%s7869_s1 + $0x54] ss:$8 sps:$4 sm:$0xff]   ;;  %v5380_v50 = vld [vmem:[%s7869_s1 + $0x210] ss:$8 sps:$4 sm:$0xff]   ;;  %v5461_v51 = vld [vmem:[%s7869_s1 + $0x64] ss:$8 sps:$4 sm:$0xff]  }
  0x2a   : > { %2370 = vmatprep.subr.bf16.mxu0 %v5326_v10  ;;  %v5388_v52 = vld [vmem:[%s7869_s1 + $0x224] ss:$8 sps:$4 sm:$0xff]   ;;  %v5364_v53 = vld [vmem:[%s6022_s26 + $0x50] ss:$36 sps:$4 sm:$0xff]   ;;  %v5463_v55 = vld [vmem:[%s7869_s1 + $0x60] ss:$8 sps:$4 sm:$0xff]  }
  0x2b   : > { %v5386_v56 = vld [vmem:[%s7869_s1 + $0x220] ss:$8 sps:$4 sm:$0xff]   ;;  %v5394_v57 = vld [vmem:[%s7869_s1 + $0x234] ss:$8 sps:$4 sm:$0xff]   ;;  %v5469_v59 = vld [vmem:[%s7869_s1 + $0x70] ss:$8 sps:$4 sm:$0xff]  }
  0x2c   : > { %2172 = vmatpush1.bf16.msra.mxu1 %v5433_v35  ;;  %v5467_v58 = vld [vmem:[%s7869_s1 + $0x74] ss:$8 sps:$4 sm:$0xff]   ;;  %v5392_v60 = vld [vmem:[%s7869_s1 + $0x230] ss:$8 sps:$4 sm:$0xff]   ;;  %v5476_v61 = vld [vmem:[%s7869_s1 + $0x84] ss:$8 sps:$4 sm:$0xff]  }
  0x2d   : > { %2371 = vmatpush1.bf16.msra.mxu0 %v5328_v11  ;;  %2173 = vmatprep.subr.bf16.mxu1 %v5437_v38  ;;  %v5400_v62 = vld [vmem:[%s7869_s1 + $0x244] ss:$8 sps:$4 sm:$0xff]   ;;  %v5367_v63 = vld [vmem:[%s6022_s26 + $0x98] ss:$36 sps:$4 sm:$0xff]   ;;  %v5478_v1 = vld [vmem:[%s7869_s1 + $0x80] ss:$8 sps:$4 sm:$0xff]  }
  0x2e   : > { %2372 = vmatprep.subr.bf16.mxu0 %v5329_v12  ;;  %v5368_v0 = vld [vmem:[%s6022_s26 + $0xe4] ss:$36 sps:$4 sm:$0xff]   ;;  %v5406_v3 = vld [vmem:[%s7869_s1 + $0x254] ss:$8 sps:$4 sm:$0xff]   ;;  %v5484_v5 = vld [vmem:[%s7869_s1 + $0x90] ss:$8 sps:$4 sm:$0xff]  }
  0x2f   : > { %v5398_v2 = vld [vmem:[%s7869_s1 + $0x240] ss:$8 sps:$4 sm:$0xff]   ;;  %v5482_v4 = vld [vmem:[%s7869_s1 + $0x94] ss:$8 sps:$4 sm:$0xff]   ;;  %v5404_v6 = vld [vmem:[%s7869_s1 + $0x250] ss:$8 sps:$4 sm:$0xff]  }
  0x30   : > { %2174 = vmatpush1.bf16.msra.mxu1 %v5439_v39  ;;  %v5488_v7 = vld [vmem:[%s7869_s1 + $0xa4] ss:$8 sps:$4 sm:$0xff]   ;;  %v5490_v11 = vld [vmem:[%s7869_s1 + $0xa0] ss:$8 sps:$4 sm:$0xff]   ;;  %v5421_v13 = vld [vmem:[%s7869_s1 + $0x274] ss:$8 sps:$4 sm:$0xff]  }
  0x31   : > { %2373 = vmatpush1.bf16.msra.mxu0 %v5331_v14  ;;  %2175 = vmatprep.subr.bf16.mxu1 %v5446_v42  ;;  %v5412_v8 = vld [vmem:[%s7869_s1 + $0x264] ss:$8 sps:$4 sm:$0xff]   ;;  %v5410_v12 = vld [vmem:[%s7869_s1 + $0x260] ss:$8 sps:$4 sm:$0xff]   ;;  %v5491_v14 = vld [vmem:[%s7869_s1 + $0xb4] ss:$8 sps:$4 sm:$0xff]  }
  0x32   : > { %2374 = vmatprep.subr.bf16.mxu0 %v5332_v15  ;;  %v5370_v9 = vld [vmem:[%s6022_s26 + $0xe0] ss:$36 sps:$4 sm:$0xff]   ;;  %v5371_v10 = vld [vmem:[%s6022_s26 + $0x12c] ss:$36 sps:$4 sm:$0xff]   ;;  %v5451_v34 = vld [vmem:[%s7869_s1 + $0x2b4] ss:$8 sps:$4 sm:$0xff]  }
  0x33   : > { %v5419_v15 = vld [vmem:[%s7869_s1 + $0x270] ss:$8 sps:$4 sm:$0xff]   ;;  %v5445_v28 = vld [vmem:[%s7869_s1 + $0x2a4] ss:$8 sps:$4 sm:$0xff]   ;;  %v5508_v31 = vld [vmem:[%s7869_s1 + $0xe0] ss:$8 sps:$4 sm:$0xff]  }
  0x34   : > { %2176 = vmatpush1.bf16.msra.mxu1 %v5448_v45  ;;  %v5502_v27 = vld [vmem:[%s7869_s1 + $0xd0] ss:$8 sps:$4 sm:$0xff]   ;;  %v5509_v35 = vld [vmem:[%s7869_s1 + $0xf4] ss:$8 sps:$4 sm:$0xff]   ;;  %v5460_v38 = vld [vmem:[%s7869_s1 + $0x2c4] ss:$8 sps:$4 sm:$0xff]  }
  0x35   : > { %2375 = vmatpush1.bf16.msra.mxu0 %v5334_v16  ;;  %2177 = vmatprep.subr.bf16.mxu1 %v5452_v48  ;;  %v5493_v16 = vld [vmem:[%s7869_s1 + $0xb0] ss:$8 sps:$4 sm:$0xff]   ;;  %v5515_v39 = vld [vmem:[%s6022_s26] ss:$36 sps:$4 sm:$0xff]   ;;  %s8235_s22 = smov (!%p377_p11, %s4437_s22), 7  ;;  %s4814_s29 = sshll.u32 %s8233_s16, 4 }
  0x36   : > { %2376 = vmatprep.subr.bf16.mxu0 %v5335_v17  ;;  %v5497_v17 = vld [vmem:[%s7869_s1 + $0xc4] ss:$8 sps:$4 sm:$0xff]   ;;  %v5379_v30 = vld [vmem:[%s6022_s26 + $0x170] ss:$36 sps:$4 sm:$0xff]   ;;  %s4813_s14 = sshll.u32 %s8235_s22, 3  ;;  %p383_p12 = scmp.lt.s32.totalorder %s5952_s13, 1 }
  0x37   : > { %v5389_v42 = vld [vmem:[%s6022_s26 + $0x204] ss:$36 sps:$4 sm:$0xff]   ;;  %v5464_v45 = vld [vmem:[%s7869_s1 + $0x2d0] ss:$8 sps:$4 sm:$0xff]   ;;  %s7123_s25 = scalar_lea.vmem %s7871_s3, %s4813_s14  ;;  %s366_s14 = sand.u32 1, %s5867_s10  }
  0x38   : > { %2178 = vmatpush1.bf16.msra.mxu1 %v5454_v49  ;;  %v5391_v48 = vld [vmem:[%s6022_s26 + $0x200] ss:$36 sps:$4 sm:$0xff]   ;;  %v5530_v49 = vld [vmem:[%s6022_s26 + $0x94] ss:$36 sps:$4 sm:$0xff]   ;;  %s384_s22 = scalar_select %p383_p12, %s5952_s13, 1 }
  0x39   : > { %2377 = vmatpush1.bf16.msra.mxu0 %v5337_v18  ;;  %2179 = vmatprep.subr.bf16.mxu1 %v5461_v51  ;;  %v5517_v18 = vld [vmem:[%s6022_s26 + $0x4] ss:$36 sps:$4 sm:$0xff]   ;;  %s4434_s23 = sshll.u32 %s366_s14, 3  ;;  %s4810_s17 = sshll.u32 %s5952_s13, 7 }
  0x3a   : > { %2378 = vmatprep.subr.bf16.mxu0 %v5338_v19  ;;  %v5373_v19 = vld [vmem:[%s6022_s26 + $0x128] ss:$36 sps:$4 sm:$0xff]   ;;  %2199 = vmatprep.mubr.bf16.mxu1 %v5517_v18  ;;  %s4440_s24 = sshll.u32 %s384_s22, 3  ;;  %s4304_s22 = scalar_lea.sflag [#allocation3], %s366_s14 }
  0x3b   : > { %v5473_v51 = vld [vmem:[%s7869_s1 + $0x2e0] ss:$8 sps:$4 sm:$0xff]  }
  0x3c   : > { %2180 = vmatpush1.bf16.msra.mxu1 %v5463_v55  ;;  %v5532_v55 = vld [vmem:[%s6022_s26 + $0x90] ss:$36 sps:$4 sm:$0xff]   ;;  %v5470_v18 = vld [vmem:[%s6022_s26 + $0x444] ss:$36 sps:$4 sm:$0xff]  }
  0x3d   : > { %2379 = vmatpush1.bf16.msra.mxu0 %v5340_v20  ;;  %2181 = vmatprep.subr.bf16.mxu1 %v5467_v58  ;;  %v5430_v20 = vld [vmem:[%s7869_s1 + $0x284] ss:$8 sps:$4 sm:$0xff]   ;;  %v5401_v58 = vld [vmem:[%s6022_s26 + $0x294] ss:$36 sps:$4 sm:$0xff]  }
  0x3e   : > { %2380 = vmatprep.subr.bf16.mxu0 %v5341_v21  ;;  %v5377_v21 = vld [vmem:[%s6022_s26 + $0x174] ss:$36 sps:$4 sm:$0xff]  }
  0x40   : > { %2182 = vmatpush1.bf16.msra.mxu1 %v5469_v59  ;;  %v5541_v59 = vld [vmem:[%s6022_s26 + $0xd8] ss:$36 sps:$4 sm:$0xff]  }
  0x41   : > { %2381 = vmatpush1.bf16.msra.mxu0 %v5343_v22  ;;  %2183 = vmatprep.subr.bf16.mxu1 %v5476_v61  ;;  %v5428_v22 = vld [vmem:[%s7869_s1 + $0x280] ss:$8 sps:$4 sm:$0xff]  }
  0x42   : > { %2382 = vmatprep.subr.bf16.mxu0 %v5344_v23  ;;  %v5499_v23 = vld [vmem:[%s7869_s1 + $0xc0] ss:$8 sps:$4 sm:$0xff]  }
  0x43   : > { %v5548_v61 = vld [vmem:[%s6022_s26 + $0x124] ss:$36 sps:$4 sm:$0xff]  }
  0x44   : > { %2184 = vmatpush1.bf16.msra.mxu1 %v5478_v1  ;;  %v5557_v1 = vld [vmem:[%s6022_s26 + $0x16c] ss:$36 sps:$4 sm:$0xff]  }
  0x45   : > { %2383 = vmatpush1.bf16.msra.mxu0 %v5346_v24  ;;  %2185 = vmatprep.subr.bf16.mxu1 %v5482_v4  ;;  %v5436_v24 = vld [vmem:[%s7869_s1 + $0x294] ss:$8 sps:$4 sm:$0xff]   ;;  %v5415_v4 = vld [vmem:[%s6022_s26 + $0x320] ss:$36 sps:$4 sm:$0xff]  }
  0x46   : > { %2384 = vmatprep.subr.bf16.mxu0 %v5347_v25  ;;  %v5500_v25 = vld [vmem:[%s7869_s1 + $0xd4] ss:$8 sps:$4 sm:$0xff]  }
  0x48   : > { %2186 = vmatpush1.bf16.msra.mxu1 %v5484_v5  ;;  %v5566_v5 = vld [vmem:[%s6022_s26 + $0x1b4] ss:$36 sps:$4 sm:$0xff]  }
  0x49   : > { %2385 = vmatpush1.bf16.msra.mxu0 %v5349_v26  ;;  %2187 = vmatprep.subr.bf16.mxu1 %v5488_v7  ;;  %v5434_v26 = vld [vmem:[%s7869_s1 + $0x290] ss:$8 sps:$4 sm:$0xff]  }
  0x4a   : > { %2386 = vmatprep.subr.bf16.mxu0 %v5350_v29  ;;  %v5506_v29 = vld [vmem:[%s7869_s1 + $0xe4] ss:$8 sps:$4 sm:$0xff]   ;;  %v5568_v7 = vld [vmem:[%s6022_s26 + $0x1b0] ss:$36 sps:$4 sm:$0xff]  }
  0x4c   : > { %2188 = vmatpush1.bf16.msra.mxu1 %v5490_v11  ;;  %v5577_v11 = vld [vmem:[%s6022_s26 + $0x1f8] ss:$36 sps:$4 sm:$0xff]  }
  0x4d   : > { %2387 = vmatpush1.bf16.msra.mxu0 %v5352_v32  ;;  %2189 = vmatprep.subr.bf16.mxu1 %v5491_v14  ;;  %v5383_v32 = vld [vmem:[%s6022_s26 + $0x1bc] ss:$36 sps:$4 sm:$0xff]  }
  0x4e   : > { %2388 = vmatprep.subr.bf16.mxu0 %v5353_v33  ;;  %v5443_v33 = vld [vmem:[%s7869_s1 + $0x2a0] ss:$8 sps:$4 sm:$0xff]  }
  0x4f   : > { %v5455_v14 = vld [vmem:[%s6022_s26 + $0x3fc] ss:$36 sps:$4 sm:$0xff]  }
  0x50   : > { %2190 = vmatpush1.bf16.msra.mxu1 %v5493_v16  ;;  %v5457_v16 = vld [vmem:[%s6022_s26 + $0x3f8] ss:$36 sps:$4 sm:$0xff]  }
  0x51   : > { %2389 = vmatpush1.bf16.msra.mxu0 %v5355_v36  ;;  %2191 = vmatprep.subr.bf16.mxu1 %v5497_v17  ;;  %v5449_v36 = vld [vmem:[%s7869_s1 + $0x2b0] ss:$8 sps:$4 sm:$0xff]  }
  0x52   : > { %2390 = vmatprep.subr.bf16.mxu0 %v5356_v37  ;;  %v5511_v37 = vld [vmem:[%s7869_s1 + $0xf0] ss:$8 sps:$4 sm:$0xff]  }
  0x53   : > { %v5596_v17 = vld [vmem:[%s6022_s26 + $0x28c] ss:$36 sps:$4 sm:$0xff]  }
  0x54   : > { %2192 = vmatpush1.bf16.msra.mxu1 %v5499_v23  ;;  %v6336_v23 = vld [vmem:[%s7869_s1 + $0x400] ss:$8 sps:$4 sm:$0xff]  }
  0x55   : > { %2391 = vmatpush1.bf16.msra.mxu0 %v5358_v40  ;;  %2193 = vmatprep.subr.bf16.mxu1 %v5500_v25  ;;  %v5385_v40 = vld [vmem:[%s6022_s26 + $0x1b8] ss:$36 sps:$4 sm:$0xff]   ;;  %v5485_v25 = vld [vmem:[%s6022_s26 + $0x10] ss:$36 sps:$4 sm:$0xff]  }
  0x56   : > { %2553 = vmatprep.subr.bf16.mxu0 %v5376_v41  ;;  %v5521_v41 = vld [vmem:[%s6022_s26 + $0x4c] ss:$36 sps:$4 sm:$0xff]  }
  0x58   : > { %2393 = vmatmul.mubr.bf16.vlgmr.msra.gmra.mrb[0].mxu0 %v5359_v43  ;;  %2194 = vmatpush1.bf16.msra.mxu1 %v5502_v27  ;;  %v5458_v43 = vld [vmem:[%s7869_s1 + $0x2c0] ss:$8 sps:$4 sm:$0xff]  }
  0x59   : > { %2402 = vmatprep.mubr.bf16.mxu0 %v5362_v44  ;;  %2554 = vmatpush1.bf16.msra.mxu0 %v5374_v46  ;;  %v5466_v44 = vld [vmem:[%s7869_s1 + $0x2d4] ss:$8 sps:$4 sm:$0xff]   ;;  %v5475_v46 = vld [vmem:[%s7869_s1 + $0x2e4] ss:$8 sps:$4 sm:$0xff]  }
  0x5a   : > { %2555 = vmatprep.subr.bf16.mxu0 %v5382_v47  ;;  %2195 = vmatprep.subr.bf16.mxu1 %v5506_v29  ;;  %v5523_v47 = vld [vmem:[%s6022_s26 + $0x48] ss:$36 sps:$4 sm:$0xff]   ;;  %v5620_v27 = vld [vmem:[%s6022_s26 + $0x31c] ss:$36 sps:$4 sm:$0xff]  }
  0x5b   : > { %v5494_v29 = vld [vmem:[%s6022_s26 + $0x5c] ss:$36 sps:$4 sm:$0xff]  }
  0x5c   : > { %2196 = vmatpush1.bf16.msra.mxu1 %v5508_v31  ;;  %v5535_v31 = vld [vmem:[%s7869_s1 + $0x314] ss:$8 sps:$4 sm:$0xff]  }
  0x5d   : > { %2556 = vmatpush1.bf16.msra.mxu0 %v5380_v50  ;;  %2197 = vmatprep.subr.bf16.mxu1 %v5509_v35  ;;  %v5395_v50 = vld [vmem:[%s6022_s26 + $0x24c] ss:$36 sps:$4 sm:$0xff]  }
  0x5e   : > { %2557 = vmatprep.subr.bf16.mxu0 %v5388_v52  ;;  %v5481_v52 = vld [vmem:[%s7869_s1 + $0x2f4] ss:$8 sps:$4 sm:$0xff]   ;;  %v5544_v35 = vld [vmem:[%s7869_s1 + $0x324] ss:$8 sps:$4 sm:$0xff]  }
  0x60   : > { %2403 = vmatmul.mubr.bf16.gmra.mrb[4].mxu0 %v5364_v53  ;;  %2198 = vmatpush1.bf16.msra.mxu1 %v5511_v37  ;;  %v5479_v53 = vld [vmem:[%s7869_s1 + $0x2f0] ss:$8 sps:$4 sm:$0xff]   ;;  %v6381_v37 = vld [vmem:[%s7869_s1 + $0x420] ss:$8 sps:$4 sm:$0xff]  }
  0x61   : > { %2412 = vmatprep.mubr.bf16.mxu0 %v5365_v54  ;;  %2558 = vmatpush1.bf16.msra.mxu0 %v5386_v56  ;;  %v5526_v54 = vld [vmem:[%s7869_s1 + $0x304] ss:$8 sps:$4 sm:$0xff]  }
  0x62   : > { %2559 = vmatprep.subr.bf16.mxu0 %v5394_v57  ;;  %v5397_v56 = vld [vmem:[%s6022_s26 + $0x248] ss:$36 sps:$4 sm:$0xff]   ;;  %v5539_v57 = vld [vmem:[%s6022_s26 + $0xdc] ss:$36 sps:$4 sm:$0xff]  }
  0x63   : > { %2200 = vmatmul.mubr.bf16.vlgmr.msra.gmra.mrb[0].mxu1 %v5515_v39  ;;  %v5632_v39 = vld [vmem:[%s6022_s26 + $0x364] ss:$36 sps:$4 sm:$0xff]  }
  0x64   : > { %2209 = vmatprep.mubr.bf16.mxu1 %v5521_v41  ;;  %v5503_v41 = vld [vmem:[%s6022_s26 + $0xa4] ss:$36 sps:$4 sm:$0xff]  }
  0x65   : > { %2560 = vmatpush1.bf16.msra.mxu0 %v5392_v60  ;;  %v5403_v60 = vld [vmem:[%s6022_s26 + $0x290] ss:$36 sps:$4 sm:$0xff]  }
  0x66   : > { %2561 = vmatprep.subr.bf16.mxu0 %v5400_v62  ;;  %v5407_v62 = vld [vmem:[%s6022_s26 + $0x2dc] ss:$36 sps:$4 sm:$0xff]  }
  0x68   : > { %2413 = vmatmul.mubr.bf16.gmra.mrb[8].mxu0 %v5367_v63  ;;  %v5550_v63 = vld [vmem:[%s6022_s26 + $0x120] ss:$36 sps:$4 sm:$0xff]  }
  0x69   : > { %2422 = vmatprep.mubr.bf16.mxu0 %v5368_v0  ;;  %2562 = vmatpush1.bf16.msra.mxu0 %v5398_v2  ;;  %v5409_v0 = vld [vmem:[%s6022_s26 + $0x2d8] ss:$36 sps:$4 sm:$0xff]   ;;  %v5413_v2 = vld [vmem:[%s6022_s26 + $0x324] ss:$36 sps:$4 sm:$0xff]  }
  0x6a   : > { %2563 = vmatprep.subr.bf16.mxu0 %v5406_v3  ;;  %v5559_v3 = vld [vmem:[%s6022_s26 + $0x168] ss:$36 sps:$4 sm:$0xff]  }
  0x6b   : > { %2210 = vmatmul.mubr.bf16.gmra.mrb[4].mxu1 %v5523_v47  ;;  %v5562_v47 = vld [vmem:[%s7869_s1 + $0x344] ss:$8 sps:$4 sm:$0xff]  }
  0x6c   : > { %2219 = vmatprep.mubr.bf16.mxu1 %v5530_v49  ;;  %v6421_v49 = vld [vmem:[%s7869_s1 + $0x440] ss:$8 sps:$4 sm:$0xff]  }
  0x6d   : > { %2564 = vmatpush1.bf16.msra.mxu0 %v5404_v6  ;;  %v5425_v6 = vld [vmem:[%s6022_s26 + $0x36c] ss:$36 sps:$4 sm:$0xff]  }
  0x6e   : > { %2565 = vmatprep.subr.bf16.mxu0 %v5412_v8  ;;  %v5427_v8 = vld [vmem:[%s6022_s26 + $0x368] ss:$36 sps:$4 sm:$0xff]  }
  0x70   : > { %2423 = vmatmul.mubr.bf16.gmra.mrb[12].mxu0 %v5370_v9  ;;  %v5575_v9 = vld [vmem:[%s6022_s26 + $0x1fc] ss:$36 sps:$4 sm:$0xff]  }
  0x71   : > { %2432 = vmatprep.mubr.bf16.mxu0 %v5371_v10  ;;  %2566 = vmatpush1.bf16.msra.mxu0 %v5410_v12  ;;  %v5440_v10 = vld [vmem:[%s6022_s26 + $0x3b4] ss:$36 sps:$4 sm:$0xff]  }
  0x72   : > { %2567 = vmatprep.subr.bf16.mxu0 %v5421_v13  ;;  %v5442_v12 = vld [vmem:[%s6022_s26 + $0x3b0] ss:$36 sps:$4 sm:$0xff]   ;;  %v5584_v13 = vld [vmem:[%s6022_s26 + $0x244] ss:$36 sps:$4 sm:$0xff]  }
  0x73   : > { %2220 = vmatmul.mubr.bf16.gmra.mrb[8].mxu1 %v5532_v55  ;;  %v5571_v55 = vld [vmem:[%s7869_s1 + $0x354] ss:$8 sps:$4 sm:$0xff]  }
  0x74   : > { %2229 = vmatprep.mubr.bf16.mxu1 %v5539_v57  ;;  %v5569_v57 = vld [vmem:[%s7869_s1 + $0x350] ss:$8 sps:$4 sm:$0xff]  }
  0x75   : > { %2568 = vmatpush1.bf16.msra.mxu0 %v5419_v15  ;;  %v5586_v15 = vld [vmem:[%s6022_s26 + $0x240] ss:$36 sps:$4 sm:$0xff]  }
  0x76   : > { %2569 = vmatprep.subr.bf16.mxu0 %v5430_v20  ;;  %v5472_v20 = vld [vmem:[%s6022_s26 + $0x440] ss:$36 sps:$4 sm:$0xff]  }
  0x78   : > { %2433 = vmatmul.mubr.bf16.gmra.mrb[16].mxu0 %v5373_v19  ;;  %v5598_v19 = vld [vmem:[%s6022_s26 + $0x288] ss:$36 sps:$4 sm:$0xff]  }
  0x79   : > { %2442 = vmatprep.mubr.bf16.mxu0 %v5377_v21  ;;  %2570 = vmatpush1.bf16.msra.mxu0 %v5428_v22  ;;  %v5608_v21 = vld [vmem:[%s6022_s26 + $0x2d4] ss:$36 sps:$4 sm:$0xff]  }
  0x7a   : > { %2571 = vmatprep.subr.bf16.mxu0 %v5436_v24  ;;  %v5487_v22 = vld [vmem:[%s6022_s26 + $0x14] ss:$36 sps:$4 sm:$0xff]   ;;  %v6341_v24 = vld [vmem:[%s7869_s1 + $0x404] ss:$8 sps:$4 sm:$0xff]  }
  0x7b   : > { %2230 = vmatmul.mubr.bf16.gmra.mrb[12].mxu1 %v5541_v59  ;;  %4932 = vmatprep.subr.bf16.mxu1 %v6341_v24  ;;  %v5580_v59 = vld [vmem:[%s7869_s1 + $0x364] ss:$8 sps:$4 sm:$0xff]  }
  0x7c   : > { %2239 = vmatprep.mubr.bf16.mxu1 %v5548_v61  ;;  %4940 = vmatpush1.bf16.msra.mxu1 %v6336_v23  ;;  %v6461_v61 = vld [vmem:[%s7869_s1 + $0x460] ss:$8 sps:$4 sm:$0xff]  }
  0x7d   : > { %2572 = vmatpush1.bf16.msra.mxu0 %v5434_v26  ;;  %v5610_v26 = vld [vmem:[%s6022_s26 + $0x2d0] ss:$36 sps:$4 sm:$0xff]  }
  0x7e   : > { %2573 = vmatprep.subr.bf16.mxu0 %v5445_v28  ;;  %v6350_v28 = vld [vmem:[%s7869_s1 + $0x414] ss:$8 sps:$4 sm:$0xff]  }
  0x7f   : > { %4933 = vmatprep.subr.bf16.mxu1 %v6350_v28 }
  0x80   : > { %2443 = vmatmul.mubr.bf16.gmra.mrb[20].mxu0 %v5379_v30  ;;  %v5524_v30 = vld [vmem:[%s7869_s1 + $0x300] ss:$8 sps:$4 sm:$0xff]  }
  0x81   : > { %2452 = vmatprep.mubr.bf16.mxu0 %v5383_v32  ;;  %2574 = vmatpush1.bf16.msra.mxu0 %v5443_v33  ;;  %v6363_v32 = vld [vmem:[%s7869_s1 + $0x410] ss:$8 sps:$4 sm:$0xff]  }
  0x82   : > { %2575 = vmatprep.subr.bf16.mxu0 %v5451_v34  ;;  %v5533_v33 = vld [vmem:[%s7869_s1 + $0x310] ss:$8 sps:$4 sm:$0xff]   ;;  %v6372_v34 = vld [vmem:[%s7869_s1 + $0x424] ss:$8 sps:$4 sm:$0xff]   ;;  %4941 = vmatpush1.bf16.msra.mxu1 %v6363_v32 }
  0x83   : > { %2240 = vmatmul.mubr.bf16.gmra.mrb[16].mxu1 %v5550_v63  ;;  %4934 = vmatprep.subr.bf16.mxu1 %v6372_v34  ;;  %v5659_v63 = vld [vmem:[%s6022_s26 + $0x3f4] ss:$36 sps:$4 sm:$0xff]  }
  0x84   : > { %2249 = vmatprep.mubr.bf16.mxu1 %v5557_v1  ;;  %v5518_v1 = vld [vmem:[%s6022_s26 + $0x134] ss:$36 sps:$4 sm:$0xff]  }
  0x85   : > { %2576 = vmatpush1.bf16.msra.mxu0 %v5449_v36  ;;  %v5622_v36 = vld [vmem:[%s6022_s26 + $0x318] ss:$36 sps:$4 sm:$0xff]  }
  0x86   : > { %2577 = vmatprep.subr.bf16.mxu0 %v5460_v38  ;;  %v5496_v38 = vld [vmem:[%s6022_s26 + $0x58] ss:$36 sps:$4 sm:$0xff]   ;;  %4942 = vmatpush1.bf16.msra.mxu1 %v6381_v37 }
  0x88   : > { %2453 = vmatmul.mubr.bf16.gmra.mrb[24].mxu0 %v5385_v40  ;;  %v6389_v40 = vld [vmem:[%s7869_s1 + $0x434] ss:$8 sps:$4 sm:$0xff]  }
  0x89   : > { %2462 = vmatprep.mubr.bf16.mxu0 %v5389_v42  ;;  %2578 = vmatpush1.bf16.msra.mxu0 %v5458_v43  ;;  %v5542_v42 = vld [vmem:[%s7869_s1 + $0x320] ss:$8 sps:$4 sm:$0xff]   ;;  %v5553_v43 = vld [vmem:[%s7869_s1 + $0x334] ss:$8 sps:$4 sm:$0xff]  }
  0x8a   : > { %2579 = vmatprep.subr.bf16.mxu0 %v5466_v44  ;;  %v6402_v44 = vld [vmem:[%s7869_s1 + $0x430] ss:$8 sps:$4 sm:$0xff]   ;;  %4935 = vmatprep.subr.bf16.mxu1 %v6389_v40 }
  0x8b   : > { %2250 = vmatmul.mubr.bf16.gmra.mrb[20].mxu1 %v5559_v3  ;;  %v5589_v3 = vld [vmem:[%s7869_s1 + $0x374] ss:$8 sps:$4 sm:$0xff]  }
  0x8c   : > { %2259 = vmatprep.mubr.bf16.mxu1 %v5566_v5  ;;  %4943 = vmatpush1.bf16.msra.mxu1 %v6402_v44  ;;  %v5587_v5 = vld [vmem:[%s7869_s1 + $0x370] ss:$8 sps:$4 sm:$0xff]  }
  0x8d   : > { %2580 = vmatpush1.bf16.msra.mxu0 %v5464_v45  ;;  %v5551_v45 = vld [vmem:[%s7869_s1 + $0x330] ss:$8 sps:$4 sm:$0xff]  }
  0x8e   : > { %2581 = vmatprep.subr.bf16.mxu0 %v5475_v46  ;;  %v6412_v46 = vld [vmem:[%s7869_s1 + $0x444] ss:$8 sps:$4 sm:$0xff]  }
  0x8f   : > { %4936 = vmatprep.subr.bf16.mxu1 %v6412_v46 }
  0x90   : > { %2463 = vmatmul.mubr.bf16.gmra.mrb[28].mxu0 %v5391_v48  ;;  %v5634_v48 = vld [vmem:[%s6022_s26 + $0x360] ss:$36 sps:$4 sm:$0xff]   ;;  %4944 = vmatpush1.bf16.msra.mxu1 %v6421_v49 }
  0x91   : > { %2472 = vmatprep.mubr.bf16.mxu0 %v5395_v50  ;;  %2582 = vmatpush1.bf16.msra.mxu0 %v5473_v51  ;;  %v5505_v50 = vld [vmem:[%s6022_s26 + $0xa0] ss:$36 sps:$4 sm:$0xff]   ;;  %v5647_v51 = vld [vmem:[%s6022_s26 + $0x3ac] ss:$36 sps:$4 sm:$0xff]  }
  0x92   : > { %2583 = vmatprep.subr.bf16.mxu0 %v5481_v52  ;;  %v6429_v52 = vld [vmem:[%s7869_s1 + $0x454] ss:$8 sps:$4 sm:$0xff]  }
  0x93   : > { %2260 = vmatmul.mubr.bf16.gmra.mrb[24].mxu1 %v5568_v7  ;;  %4937 = vmatprep.subr.bf16.mxu1 %v6429_v52  ;;  %v5661_v7 = vld [vmem:[%s6022_s26 + $0x3f0] ss:$36 sps:$4 sm:$0xff]  }
  0x94   : > { %2269 = vmatprep.mubr.bf16.mxu1 %v5575_v9  ;;  %v5671_v9 = vld [vmem:[%s6022_s26 + $0x43c] ss:$36 sps:$4 sm:$0xff]  }
  0x95   : > { %2584 = vmatpush1.bf16.msra.mxu0 %v5479_v53  ;;  %v5512_v53 = vld [vmem:[%s6022_s26 + $0xec] ss:$36 sps:$4 sm:$0xff]  }
  0x96   : > { %2746 = vmatprep.subr.bf16.mxu0 %v5526_v54  ;;  %v5560_v54 = vld [vmem:[%s7869_s1 + $0x340] ss:$8 sps:$4 sm:$0xff]  }
  0x98   : > { %2473 = vmatmul.mubr.bf16.gmra.mrb[32].mxu0 %v5397_v56  ;;  %v6442_v56 = vld [vmem:[%s7869_s1 + $0x450] ss:$8 sps:$4 sm:$0xff]  }
  0x99   : > { %2482 = vmatprep.mubr.bf16.mxu0 %v5401_v58  ;;  %v6452_v58 = vld [vmem:[%s7869_s1 + $0x464] ss:$8 sps:$4 sm:$0xff]   ;;  %4945 = vmatpush1.bf16.msra.mxu1 %v6442_v56 }
  0x9a   : > { %4938 = vmatprep.subr.bf16.mxu1 %v6452_v58 }
  0x9b   : > { %2270 = vmatmul.mubr.bf16.gmra.mrb[28].mxu1 %v5577_v11  ;;  %v5593_v11 = vld [vmem:[%s7869_s1 + $0x380] ss:$8 sps:$4 sm:$0xff]  }
  0x9c   : > { %2279 = vmatprep.mubr.bf16.mxu1 %v5584_v13  ;;  %v5599_v13 = vld [vmem:[%s7869_s1 + $0x390] ss:$8 sps:$4 sm:$0xff]  }
  0x9d   : > { %4946 = vmatpush1.bf16.msra.mxu1 %v6461_v61 }
  0xa0   : > { %2483 = vmatmul.mubr.bf16.gmra.mrb[36].mxu0 %v5403_v60  ;;  %v5649_v60 = vld [vmem:[%s6022_s26 + $0x3a8] ss:$36 sps:$4 sm:$0xff]  }
  0xa1   : > { %2492 = vmatprep.mubr.bf16.mxu0 %v5407_v62  ;;  %v5514_v62 = vld [vmem:[%s6022_s26 + $0xe8] ss:$36 sps:$4 sm:$0xff]  }
  0xa3   : > { %2280 = vmatmul.mubr.bf16.gmra.mrb[32].mxu1 %v5586_v15  ;;  %v5673_v15 = vld [vmem:[%s6022_s26 + $0x438] ss:$36 sps:$4 sm:$0xff]  }
  0xa4   : > { %2289 = vmatprep.mubr.bf16.mxu1 %v5596_v17  ;;  %v5536_v17 = vld [vmem:[%s6022_s26 + $0x1c4] ss:$36 sps:$4 sm:$0xff]  }
  0xa8   : > { %2493 = vmatmul.mubr.bf16.gmra.mrb[40].mxu0 %v5409_v0  ;;  %v6469_v0 = vld [vmem:[%s7869_s1 + $0x474] ss:$8 sps:$4 sm:$0xff]  }
  0xa9   : > { %2502 = vmatprep.mubr.bf16.mxu0 %v5413_v2  ;;  %v5578_v2 = vld [vmem:[%s7869_s1 + $0x360] ss:$8 sps:$4 sm:$0xff]   ;;  %4939 = vmatprep.subr.bf16.mxu1 %v6469_v0 }
  0xab   : > { %2290 = vmatmul.mubr.bf16.gmra.mrb[36].mxu1 %v5598_v19  ;;  %v5613_v19 = vld [vmem:[%s7869_s1 + $0x3b4] ss:$8 sps:$4 sm:$0xff]  }
  0xac   : > { %2299 = vmatprep.mubr.bf16.mxu1 %v5608_v21  ;;  %v5611_v21 = vld [vmem:[%s7869_s1 + $0x3b0] ss:$8 sps:$4 sm:$0xff]  }
  0xb0   : > { %2503 = vmatmul.mubr.bf16.gmra.mrb[44].mxu0 %v5415_v4  ;;  %v6482_v4 = vld [vmem:[%s7869_s1 + $0x470] ss:$8 sps:$4 sm:$0xff]  }
  0xb1   : > { %2512 = vmatprep.mubr.bf16.mxu0 %v5425_v6  ;;  %v5595_v6 = vld [vmem:[%s7869_s1 + $0x384] ss:$8 sps:$4 sm:$0xff]   ;;  %4947 = vmatpush1.bf16.msra.mxu1 %v6482_v4 }
  0xb3   : > { %2300 = vmatmul.mubr.bf16.gmra.mrb[40].mxu1 %v5610_v26  ;;  %v5538_v26 = vld [vmem:[%s6022_s26 + $0x1c0] ss:$36 sps:$4 sm:$0xff]  }
  0xb4   : > { %2309 = vmatprep.mubr.bf16.mxu1 %v5620_v27  ;;  %v5545_v27 = vld [vmem:[%s6022_s26 + $0x20c] ss:$36 sps:$4 sm:$0xff]  }
  0xb8   : > { %2513 = vmatmul.mubr.bf16.gmra.mrb[48].mxu0 %v5427_v8  ;;  %v5520_v8 = vld [vmem:[%s6022_s26 + $0x130] ss:$36 sps:$4 sm:$0xff]  }
  0xb9   : > { %2522 = vmatprep.mubr.bf16.mxu0 %v5440_v10  ;;  %v5527_v10 = vld [vmem:[%s6022_s26 + $0x17c] ss:$36 sps:$4 sm:$0xff]  }
  0xbb   : > { %2310 = vmatmul.mubr.bf16.gmra.mrb[44].mxu1 %v5622_v36  ;;  %v5547_v36 = vld [vmem:[%s6022_s26 + $0x208] ss:$36 sps:$4 sm:$0xff]  }
  0xbc   : > { %2319 = vmatprep.mubr.bf16.mxu1 %v5632_v39  ;;  %v5629_v39 = vld [vmem:[%s7869_s1 + $0x3e0] ss:$8 sps:$4 sm:$0xff]  }
  0xc0   : > { %2523 = vmatmul.mubr.bf16.gmra.mrb[52].mxu0 %v5442_v12  ;;  %v5601_v12 = vld [vmem:[%s7869_s1 + $0x394] ss:$8 sps:$4 sm:$0xff]  }
  0xc1   : > { %2532 = vmatprep.mubr.bf16.mxu0 %v5455_v14  ;;  %v5607_v14 = vld [vmem:[%s7869_s1 + $0x3a4] ss:$8 sps:$4 sm:$0xff]  }
  0xc3   : > { %2320 = vmatmul.mubr.bf16.gmra.mrb[48].mxu1 %v5634_v48  ;;  %v5695_v48 = vld [vmem:[%s6022_s26 + $0x1d0] ss:$36 sps:$4 sm:$0xff]  }
  0xc4   : > { %2329 = vmatprep.mubr.bf16.mxu1 %v5647_v51  ;;  %v5572_v51 = vld [vmem:[%s6022_s26 + $0x2e4] ss:$36 sps:$4 sm:$0xff]  }
  0xc8   : > { %2533 = vmatmul.mubr.bf16.gmra.mrb[56].mxu0 %v5457_v16  ;;  %v5529_v16 = vld [vmem:[%s6022_s26 + $0x178] ss:$36 sps:$4 sm:$0xff]  }
  0xc9   : > { %2542 = vmatprep.mubr.bf16.mxu0 %v5470_v18  ;;  %v5605_v18 = vld [vmem:[%s7869_s1 + $0x3a0] ss:$8 sps:$4 sm:$0xff]  }
  0xcb   : > { %2330 = vmatmul.mubr.bf16.gmra.mrb[52].mxu1 %v5649_v60  ;;  %v5707_v60 = vld [vmem:[%s6022_s26 + $0x2a8] ss:$36 sps:$4 sm:$0xff]  }
  0xcc   : > { %2339 = vmatprep.mubr.bf16.mxu1 %v5659_v63  ;;  %v5602_v63 = vld [vmem:[%s6022_s26 + $0x3bc] ss:$36 sps:$4 sm:$0xff]  }
  0xd0   : > { %2543 = vmatmul.mubr.bf16.gmra.mrb[60].mxu0 %v5472_v20  ;;  %v5877_v20 = vmov 0  }
  0xd1   : > { %2585 = vmatprep.mubr.bf16.mxu0 %v5487_v22  ;;  %v5619_v22 = vld [vmem:[%s7869_s1 + $0x3c4] ss:$8 sps:$4 sm:$0xff]  }
  0xd3   : > { %2340 = vmatmul.mubr.bf16.gmra.mrb[56].mxu1 %v5661_v7  ;;  %v5626_v7 = vld [vmem:[%s6022_s26 + $0x44c] ss:$36 sps:$4 sm:$0xff]  }
  0xd4   : > { %2349 = vmatprep.mubr.bf16.mxu1 %v5671_v9  ;;  %v5628_v9 = vld [vmem:[%s6022_s26 + $0x448] ss:$36 sps:$4 sm:$0xff]  }
  0xd8   : > { %2586 = vmatmul.mubr.bf16.vlgmr.msra.gmra.mrb[0].mxu0 %v5485_v25  ;;  %v5683_v25 = vld [vmem:[%s6022_s26 + $0xf8] ss:$36 sps:$4 sm:$0xff]  }
  0xd9   : > { %2595 = vmatprep.mubr.bf16.mxu0 %v5494_v29  ;;  %2747 = vmatpush1.bf16.msra.mxu0 %v5524_v30  ;;  %v5617_v29 = vld [vmem:[%s7869_s1 + $0x3c0] ss:$8 sps:$4 sm:$0xff]   ;;  %v5625_v30 = vld [vmem:[%s7869_s1 + $0x3d4] ss:$8 sps:$4 sm:$0xff]  }
  0xda   : > { %2748 = vmatprep.subr.bf16.mxu0 %v5535_v31  ;;  %v5623_v31 = vld [vmem:[%s7869_s1 + $0x3d0] ss:$8 sps:$4 sm:$0xff]  }
  0xdb   : > { %2350 = vmatmul.mubr.bf16.gmra.mrb[60].mxu1 %v5673_v15  ;;  %v5658_v15 = vld [vmem:[%s6022_s26 + $0x60] ss:$36 sps:$4 sm:$0xff]  }
  0xdc   : > { %3001 = vmatprep.mubr.bf16.mxu1 %v5877_v20 }
  0xdd   : > { %2749 = vmatpush1.bf16.msra.mxu0 %v5533_v33  ;;  %v5631_v33 = vld [vmem:[%s7869_s1 + $0x3e4] ss:$8 sps:$4 sm:$0xff]  }
  0xde   : > { %2750 = vmatprep.subr.bf16.mxu0 %v5544_v35  ;;  %v5687_v35 = vld [vmem:[%s6022_s26 + $0x140] ss:$36 sps:$4 sm:$0xff]  }
  0xe0   : > { %2596 = vmatmul.mubr.bf16.gmra.mrb[4].mxu0 %v5496_v38  ;;  %v5554_v38 = vld [vmem:[%s6022_s26 + $0x254] ss:$36 sps:$4 sm:$0xff]  }
  0xe1   : > { %2605 = vmatprep.mubr.bf16.mxu0 %v5503_v41  ;;  %2751 = vmatpush1.bf16.msra.mxu0 %v5542_v42  ;;  %v5640_v41 = vld [vmem:[%s7869_s1 + $0x3f4] ss:$8 sps:$4 sm:$0xff]   ;;  %v5638_v42 = vld [vmem:[%s7869_s1 + $0x3f0] ss:$8 sps:$4 sm:$0xff]  }
  0xe2   : > { %2752 = vmatprep.subr.bf16.mxu0 %v5553_v43  ;;  %v5691_v43 = vld [vmem:[%s6022_s26 + $0x188] ss:$36 sps:$4 sm:$0xff]  }
  0xe3   : > { %3002 = vmatmul.mubr.bf16.vlgmr.msra.gmra.mrb[64].mxu1 %v5683_v25 }
  0xe4   : > { %3011 = vmatprep.mubr.bf16.mxu1 %v5877_v20 }
  0xe5   : > { %2753 = vmatpush1.bf16.msra.mxu0 %v5551_v45  ;;  %v5556_v45 = vld [vmem:[%s6022_s26 + $0x250] ss:$36 sps:$4 sm:$0xff]  }
  0xe6   : > { %2754 = vmatprep.subr.bf16.mxu0 %v5562_v47  ;;  %v5563_v47 = vld [vmem:[%s6022_s26 + $0x29c] ss:$36 sps:$4 sm:$0xff]  }
  0xe8   : > { %2606 = vmatmul.mubr.bf16.gmra.mrb[8].mxu0 %v5505_v50  ;;  %v5565_v50 = vld [vmem:[%s6022_s26 + $0x298] ss:$36 sps:$4 sm:$0xff]  }
  0xe9   : > { %2615 = vmatprep.mubr.bf16.mxu0 %v5512_v53  ;;  %2755 = vmatpush1.bf16.msra.mxu0 %v5560_v54  ;;  %v5699_v53 = vld [vmem:[%s6022_s26 + $0x218] ss:$36 sps:$4 sm:$0xff]   ;;  %v5581_v54 = vld [vmem:[%s6022_s26 + $0x32c] ss:$36 sps:$4 sm:$0xff]  }
  0xea   : > { %2756 = vmatprep.subr.bf16.mxu0 %v5571_v55  ;;  %v5703_v55 = vld [vmem:[%s6022_s26 + $0x260] ss:$36 sps:$4 sm:$0xff]  }
  0xeb   : > { %3012 = vmatmul.mubr.bf16.gmra.mrb[68].mxu1 %v5687_v35 }
  0xec   : > { %3021 = vmatprep.mubr.bf16.mxu1 %v5877_v20 }
  0xed   : > { %2757 = vmatpush1.bf16.msra.mxu0 %v5569_v57  ;;  %v5583_v57 = vld [vmem:[%s6022_s26 + $0x328] ss:$36 sps:$4 sm:$0xff]  }
  0xee   : > { %2758 = vmatprep.subr.bf16.mxu0 %v5580_v59  ;;  %v5590_v59 = vld [vmem:[%s6022_s26 + $0x374] ss:$36 sps:$4 sm:$0xff]  }
  0xf0   : > { %2616 = vmatmul.mubr.bf16.gmra.mrb[12].mxu0 %v5514_v62  ;;  %v5592_v62 = vld [vmem:[%s6022_s26 + $0x370] ss:$36 sps:$4 sm:$0xff]  }
  0xf1   : > { %2625 = vmatprep.mubr.bf16.mxu0 %v5518_v1  ;;  %2759 = vmatpush1.bf16.msra.mxu0 %v5578_v2  ;;  %v5711_v1 = vld [vmem:[%s6022_s26 + $0x2f0] ss:$36 sps:$4 sm:$0xff]   ;;  %v5604_v2 = vld [vmem:[%s6022_s26 + $0x3b8] ss:$36 sps:$4 sm:$0xff]  }
  0xf2   : > { %2760 = vmatprep.subr.bf16.mxu0 %v5589_v3  ;;  %v5614_v3 = vld [vmem:[%s6022_s26 + $0x404] ss:$36 sps:$4 sm:$0xff]  }
  0xf3   : > { %3022 = vmatmul.mubr.bf16.gmra.mrb[72].mxu1 %v5691_v43  ;;  %v5696_v43 = vld [vmem:[%s6022_s26 + $0x214] ss:$36 sps:$4 sm:$0xff]  }
  0xf4   : > { %3031 = vmatprep.mubr.bf16.mxu1 %v5877_v20 }
  0xf5   : > { %2761 = vmatpush1.bf16.msra.mxu0 %v5587_v5  ;;  %v5715_v5 = vld [vmem:[%s6022_s26 + $0x338] ss:$36 sps:$4 sm:$0xff]  }
  0xf6   : > { %2762 = vmatprep.subr.bf16.mxu0 %v5595_v6  ;;  %v5616_v6 = vld [vmem:[%s6022_s26 + $0x400] ss:$36 sps:$4 sm:$0xff]  }
  0xf8   : > { %2626 = vmatmul.mubr.bf16.gmra.mrb[16].mxu0 %v5520_v8  ;;  %v5719_v8 = vld [vmem:[%s6022_s26 + $0x380] ss:$36 sps:$4 sm:$0xff]  }
  0xf9   : > { %2635 = vmatprep.mubr.bf16.mxu0 %v5527_v10  ;;  %2763 = vmatpush1.bf16.msra.mxu0 %v5593_v11  ;;  %v5646_v10 = vld [vmem:[%s6022_s26 + $0x1c] ss:$36 sps:$4 sm:$0xff]   ;;  %v5723_v11 = vld [vmem:[%s6022_s26 + $0x3c8] ss:$36 sps:$4 sm:$0xff]  }
  0xfa   : > { %2764 = vmatprep.subr.bf16.mxu0 %v5601_v12  ;;  %v5644_v12 = vld [vmem:[%s6022_s26 + $0x18] ss:$36 sps:$4 sm:$0xff]  }
  0xfb   : > { %3032 = vmatmul.mubr.bf16.gmra.mrb[76].mxu1 %v5695_v48 }
  0xfc   : > { %3041 = vmatprep.mubr.bf16.mxu1 %v5877_v20 }
  0xfd   : > { %2765 = vmatpush1.bf16.msra.mxu0 %v5599_v13  ;;  %v5656_v13 = vld [vmem:[%s6022_s26 + $0x64] ss:$36 sps:$4 sm:$0xff]  }
  0xfe   : > { %2766 = vmatprep.subr.bf16.mxu0 %v5607_v14  ;;  %v5727_v14 = vld [vmem:[%s6022_s26 + $0x410] ss:$36 sps:$4 sm:$0xff]  }
 0x100   : > { %2636 = vmatmul.mubr.bf16.gmra.mrb[20].mxu0 %v5529_v16  ;;  %v5668_v16 = vld [vmem:[%s6022_s26 + $0xac] ss:$36 sps:$4 sm:$0xff]  }
 0x101   : > { %2645 = vmatprep.mubr.bf16.mxu0 %v5536_v17  ;;  %2767 = vmatpush1.bf16.msra.mxu0 %v5605_v18  ;;  %v5680_v17 = vld [vmem:[%s6022_s26 + $0xf4] ss:$36 sps:$4 sm:$0xff]  }
 0x102   : > { %2768 = vmatprep.subr.bf16.mxu0 %v5613_v19  ;;  %v5682_v18 = vld [vmem:[%s6022_s26 + $0xf0] ss:$36 sps:$4 sm:$0xff]  }
 0x103   : > { %3042 = vmatmul.mubr.bf16.gmra.mrb[80].mxu1 %v5699_v53  ;;  %v5700_v53 = vld [vmem:[%s6022_s26 + $0x25c] ss:$36 sps:$4 sm:$0xff]  }
 0x104   : > { %3051 = vmatprep.mubr.bf16.mxu1 %v5877_v20 }
 0x105   : > { %2769 = vmatpush1.bf16.msra.mxu0 %v5611_v21 }
 0x106   : > { %2770 = vmatprep.subr.bf16.mxu0 %v5619_v22 }
 0x108   : > { %2646 = vmatmul.mubr.bf16.gmra.mrb[24].mxu0 %v5538_v26 }
 0x109   : > { %2655 = vmatprep.mubr.bf16.mxu0 %v5545_v27  ;;  %2771 = vmatpush1.bf16.msra.mxu0 %v5617_v29  ;;  %v5688_v27 = vld [vmem:[%s6022_s26 + $0x184] ss:$36 sps:$4 sm:$0xff]  }
 0x10a   : > { %2772 = vmatprep.subr.bf16.mxu0 %v5625_v30 }
 0x10b   : > { %3052 = vmatmul.mubr.bf16.gmra.mrb[84].mxu1 %v5703_v55 }
 0x10c   : > { %3061 = vmatprep.mubr.bf16.mxu1 %v5877_v20 }
 0x10d   : > { %2773 = vmatpush1.bf16.msra.mxu0 %v5623_v31 }
 0x10e   : > { %2774 = vmatprep.subr.bf16.mxu0 %v5631_v33  ;;  %v5690_v33 = vld [vmem:[%s6022_s26 + $0x180] ss:$36 sps:$4 sm:$0xff]  }
 0x110   : > { %2656 = vmatmul.mubr.bf16.gmra.mrb[28].mxu0 %v5547_v36  ;;  %v5692_v36 = vld [vmem:[%s6022_s26 + $0x1cc] ss:$36 sps:$4 sm:$0xff]  }
 0x111   : > { %2665 = vmatprep.mubr.bf16.mxu0 %v5554_v38  ;;  %2775 = vmatpush1.bf16.msra.mxu0 %v5629_v39 }
 0x112   : > { %2776 = vmatprep.subr.bf16.mxu0 %v5640_v41  ;;  %v5694_v41 = vld [vmem:[%s6022_s26 + $0x1c8] ss:$36 sps:$4 sm:$0xff]  }
 0x113   : > { %3062 = vmatmul.mubr.bf16.gmra.mrb[88].mxu1 %v5707_v60  ;;  %v5704_v60 = vld [vmem:[%s6022_s26 + $0x2a4] ss:$36 sps:$4 sm:$0xff]  }
 0x114   : > { %3071 = vmatprep.mubr.bf16.mxu1 %v5877_v20 }
 0x115   : > { %2777 = vmatpush1.bf16.msra.mxu0 %v5638_v42 }
 0x116   : > { %2939 = vmatprep.subr.bf16.mxu0 %v6341_v24  ;;  %v5574_v24 = vld [vmem:[%s6022_s26 + $0x2e0] ss:$36 sps:$4 sm:$0xff]  }
 0x118   : > { %2666 = vmatmul.mubr.bf16.gmra.mrb[32].mxu0 %v5556_v45 }
 0x119   : > { %2675 = vmatprep.mubr.bf16.mxu0 %v5563_v47 }
 0x11b   : > { %3072 = vmatmul.mubr.bf16.gmra.mrb[92].mxu1 %v5711_v1 }
 0x11c   : > { %3081 = vmatprep.mubr.bf16.mxu1 %v5877_v20 }
 0x120   : > { %2676 = vmatmul.mubr.bf16.gmra.mrb[36].mxu0 %v5565_v50  ;;  %v5698_v50 = vld [vmem:[%s6022_s26 + $0x210] ss:$36 sps:$4 sm:$0xff]  }
 0x121   : > { %2685 = vmatprep.mubr.bf16.mxu0 %v5572_v51 }
 0x123   : > { %3082 = vmatmul.mubr.bf16.gmra.mrb[96].mxu1 %v5715_v5  ;;  %v5708_v5 = vld [vmem:[%s6022_s26 + $0x2ec] ss:$36 sps:$4 sm:$0xff]  }
 0x124   : > { %3091 = vmatprep.mubr.bf16.mxu1 %v5877_v20 }
 0x128   : > { %2686 = vmatmul.mubr.bf16.gmra.mrb[40].mxu0 %v5574_v24 }
 0x129   : > { %2695 = vmatprep.mubr.bf16.mxu0 %v5581_v54 }
 0x12b   : > { %3092 = vmatmul.mubr.bf16.gmra.mrb[100].mxu1 %v5719_v8 }
 0x12c   : > { %3101 = vmatprep.mubr.bf16.mxu1 %v5877_v20 }
 0x130   : > { %2696 = vmatmul.mubr.bf16.gmra.mrb[44].mxu0 %v5583_v57  ;;  %v5702_v57 = vld [vmem:[%s6022_s26 + $0x258] ss:$36 sps:$4 sm:$0xff]  }
 0x131   : > { %2705 = vmatprep.mubr.bf16.mxu0 %v5590_v59 }
 0x133   : > { %3102 = vmatmul.mubr.bf16.gmra.mrb[104].mxu1 %v5723_v11  ;;  %v5712_v11 = vld [vmem:[%s6022_s26 + $0x334] ss:$36 sps:$4 sm:$0xff]  }
 0x134   : > { %3111 = vmatprep.mubr.bf16.mxu1 %v5877_v20 }
 0x138   : > { %2706 = vmatmul.mubr.bf16.gmra.mrb[48].mxu0 %v5592_v62 }
 0x139   : > { %2715 = vmatprep.mubr.bf16.mxu0 %v5602_v63 }
 0x13b   : > { %3112 = vmatmul.mubr.bf16.gmra.mrb[108].mxu1 %v5727_v14 }
 0x13c   : > { %3121 = vmatprep.mubr.bf16.mxu1 %v5877_v20 }
 0x140   : > { %2716 = vmatmul.mubr.bf16.gmra.mrb[52].mxu0 %v5604_v2  ;;  %v5706_v2 = vld [vmem:[%s6022_s26 + $0x2a0] ss:$36 sps:$4 sm:$0xff]  }
 0x141   : > { %2725 = vmatprep.mubr.bf16.mxu0 %v5614_v3 }
 0x148   : > { %2726 = vmatmul.mubr.bf16.gmra.mrb[56].mxu0 %v5616_v6 }
 0x149   : > { %2735 = vmatprep.mubr.bf16.mxu0 %v5626_v7 }
 0x150   : > { %2736 = vmatmul.mubr.bf16.gmra.mrb[60].mxu0 %v5628_v9  ;;  %v5710_v9 = vld [vmem:[%s6022_s26 + $0x2e8] ss:$36 sps:$4 sm:$0xff]  }
 0x151   : > { %2778 = vmatprep.mubr.bf16.mxu0 %v5646_v10 }
 0x158   : > { %2779 = vmatmul.mubr.bf16.vlgmr.msra.gmra.mrb[0].mxu0 %v5644_v12 }
 0x159   : > { %2788 = vmatprep.mubr.bf16.mxu0 %v5656_v13  ;;  %2940 = vmatpush1.bf16.msra.mxu0 %v6336_v23  ;;  %v5731_v23 = vld [vmem:[%s6022_s26 + $0x458] ss:$36 sps:$4 sm:$0xff]  }
 0x15a   : > { %2941 = vmatprep.subr.bf16.mxu0 %v6350_v28  ;;  %v5670_v28 = vld [vmem:[%s6022_s26 + $0xa8] ss:$36 sps:$4 sm:$0xff]   ;;  %3122 = vmatmul.mubr.bf16.gmra.mrb[112].mxu1 %v5731_v23  ;;  %v5716_v23 = vld [vmem:[%s6022_s26 + $0x37c] ss:$36 sps:$4 sm:$0xff]  }
 0x15d   : > { %2942 = vmatpush1.bf16.msra.mxu0 %v6363_v32  ;;  %v6606_v32 = vpop.f32.mrb[0].mxu1 }
 0x15e   : > { %2943 = vmatprep.subr.bf16.mxu0 %v6372_v34  ;;  %7966 = vst [vmem:[#allocation5_spill] sm:$0xff] %v6606_v32  ;;  %v6609_v34 = vpop.f32.mrb[1].mxu1 }
 0x15f   : > { %7967 = vst [vmem:[#allocation6_spill] sm:$0xff] %v6609_v34 }
 0x160   : > { %2789 = vmatmul.mubr.bf16.gmra.mrb[4].mxu0 %v5658_v15  ;;  %v5714_v15 = vld [vmem:[%s6022_s26 + $0x330] ss:$36 sps:$4 sm:$0xff]  }
 0x161   : > { %2798 = vmatprep.mubr.bf16.mxu0 %v5668_v16  ;;  %2944 = vmatpush1.bf16.msra.mxu0 %v6381_v37  ;;  %v6612_v37 = vpop.f32.mrb[2].mxu1 }
 0x162   : > { %2945 = vmatprep.subr.bf16.mxu0 %v6389_v40  ;;  %7968 = vst [vmem:[#allocation7_spill] sm:$0xff] %v6612_v37  ;;  %v6614_v40 = vpop.f32.mrb[3].mxu1  ;;  %v5734_v37 = vld [vmem:[%s6022_s26 + $0xb0] ss:$36 sps:$4 sm:$0xff]  }
 0x163   : > { %7969 = vst [vmem:[#allocation8_spill] sm:$0xff] %v6614_v40 }
 0x165   : > { %2946 = vmatpush1.bf16.msra.mxu0 %v6402_v44  ;;  %v6617_v44 = vpop.f32.mrb[4].mxu1 }
 0x166   : > { %2947 = vmatprep.subr.bf16.mxu0 %v6412_v46  ;;  %7970 = vst [vmem:[#allocation9_spill] sm:$0xff] %v6617_v44  ;;  %v5684_v46 = vld [vmem:[%s6022_s26 + $0x13c] ss:$36 sps:$4 sm:$0xff]   ;;  %v6621_v19 = vpop.f32.mrb[5].mxu1 }
 0x167   : > { %7971 = vst [vmem:[#allocation10_spill] sm:$0xff] %v6621_v19 }
 0x168   : > { %2799 = vmatmul.mubr.bf16.gmra.mrb[8].mxu0 %v5670_v28 }
 0x169   : > { %2808 = vmatprep.mubr.bf16.mxu0 %v5680_v17  ;;  %2948 = vmatpush1.bf16.msra.mxu0 %v6421_v49  ;;  %v6624_v49 = vpop.f32.mrb[6].mxu1 }
 0x16a   : > { %2949 = vmatprep.subr.bf16.mxu0 %v6429_v52  ;;  %7972 = vst [vmem:[#allocation11_spill] sm:$0xff] %v6624_v49  ;;  %v6626_v21 = vpop.f32.mrb[7].mxu1 }
 0x16b   : > { %7973 = vst [vmem:[#allocation12_spill] sm:$0xff] %v6626_v21  ;;  %v6628_v52 = vpop.f32.mrb[8].mxu1 }
 0x16c   : > { %7974 = vst [vmem:[#allocation13_spill] sm:$0xff] %v6628_v52  ;;  %v6631_v22 = vpop.f32.mrb[9].mxu1 }
 0x16d   : > { %2950 = vmatpush1.bf16.msra.mxu0 %v6442_v56  ;;  %7975 = vst [vmem:[#allocation14_spill] sm:$0xff] %v6631_v22  ;;  %v6634_v56 = vpop.f32.mrb[10].mxu1 }
 0x16e   : > { %2951 = vmatprep.subr.bf16.mxu0 %v6452_v58  ;;  %7976 = vst [vmem:[#allocation15_spill] sm:$0xff] %v6634_v56  ;;  %v6636_v25 = vpop.f32.mrb[11].mxu1  ;;  %v5686_v58 = vld [vmem:[%s6022_s26 + $0x138] ss:$36 sps:$4 sm:$0xff]  }
 0x16f   : > { %7977 = vst [vmem:[#allocation16_spill] sm:$0xff] %v6636_v25  ;;  %v6639_v26 = vpop.f32.mrb[12].mxu1 }
 0x170   : > { %2809 = vmatmul.mubr.bf16.gmra.mrb[12].mxu0 %v5682_v18  ;;  %v6643_v29 = vpop.f32.mrb[13].mxu1 }
 0x171   : > { %2818 = vmatprep.mubr.bf16.mxu0 %v5684_v46  ;;  %2952 = vmatpush1.bf16.msra.mxu0 %v6461_v61  ;;  %v6645_v61 = vpop.f32.mrb[14].mxu1  ;;  %v5718_v46 = vld [vmem:[%s6022_s26 + $0x378] ss:$36 sps:$4 sm:$0xff]  }
 0x172   : > { %2953 = vmatprep.subr.bf16.mxu0 %v6469_v0  ;;  %v6647_v30 = vpop.f32.mrb[15].mxu1 }
 0x173   : > { %v6649_v0 = vpop.f32.mrb[16].mxu1 }
 0x174   : > { %v6651_v31 = vpop.f32.mrb[17].mxu1 }
 0x175   : > { %2954 = vmatpush1.bf16.msra.mxu0 %v6482_v4  ;;  %v6654_v35 = vpop.f32.mrb[18].mxu1 }
 0x176   : > { %v6657_v4 = vpop.f32.mrb[19].mxu1 }
 0x177   : > { %v6659_v38 = vpop.f32.mrb[20].mxu1 }
 0x178   : > { %2819 = vmatmul.mubr.bf16.gmra.mrb[16].mxu0 %v5686_v58  ;;  %v6661_v39 = vpop.f32.mrb[21].mxu1 }
 0x179   : > { %2828 = vmatprep.mubr.bf16.mxu0 %v5688_v27  ;;  %v6664_v42 = vpop.f32.mrb[22].mxu1  ;;  %v5720_v27 = vld [vmem:[%s6022_s26 + $0x3c4] ss:$36 sps:$4 sm:$0xff]  }
 0x17a   : > { %v6667_v45 = vpop.f32.mrb[23].mxu1 }
 0x17b   : > { %v6669_v47 = vpop.f32.mrb[24].mxu1 }
 0x17c   : > { %v6671_v48 = vpop.f32.mrb[25].mxu1 }
 0x17d   : > { %v6674_v51 = vpop.f32.mrb[26].mxu1 }
 0x17e   : > { %v6677_v24 = vpop.f32.mrb[27].mxu1 }
 0x17f   : > { %v6679_v54 = vpop.f32.mrb[28].mxu1 }
 0x180   : > { %2829 = vmatmul.mubr.bf16.gmra.mrb[20].mxu0 %v5690_v33  ;;  %v6681_v55 = vpop.f32.mrb[29].mxu1 }
 0x181   : > { %2838 = vmatprep.mubr.bf16.mxu0 %v5692_v36  ;;  %v6684_v59 = vpop.f32.mrb[30].mxu1 }
 0x182   : > { %v6687_v62 = vpop.f32.mrb[31].mxu1 }
 0x183   : > { %v6689_v63 = vpop.f32.mrb[32].mxu1 }
 0x184   : > { %v6691_v1 = vpop.f32.mrb[33].mxu1 }
 0x185   : > { %v6694_v3 = vpop.f32.mrb[34].mxu1 }
 0x186   : > { %v6697_v6 = vpop.f32.mrb[35].mxu1 }
 0x187   : > { %v6699_v7 = vpop.f32.mrb[36].mxu1 }
 0x188   : > { %2839 = vmatmul.mubr.bf16.gmra.mrb[24].mxu0 %v5694_v41  ;;  %v6701_v8 = vpop.f32.mrb[37].mxu1 }
 0x189   : > { %2848 = vmatprep.mubr.bf16.mxu0 %v5696_v43  ;;  %7978 = vst [vmem:[#allocation17_spill] sm:$0xff] %v6701_v8  ;;  %v6704_v10 = vpop.f32.mrb[38].mxu1  ;;  %v5722_v43 = vld [vmem:[%s6022_s26 + $0x3c0] ss:$36 sps:$4 sm:$0xff]  }
 0x18a   : > { %7979 = vst [vmem:[#allocation18_spill] sm:$0xff] %v6704_v10  ;;  %v6707_v12 = vpop.f32.mrb[39].mxu1 }
 0x18b   : > { %7980 = vst [vmem:[#allocation19_spill] sm:$0xff] %v6707_v12  ;;  %v6709_v13 = vpop.f32.mrb[40].mxu1 }
 0x18c   : > { %7981 = vst [vmem:[#allocation20_spill] sm:$0xff] %v6709_v13  ;;  %v6711_v14 = vpop.f32.mrb[41].mxu1 }
 0x18d   : > { %7982 = vst [vmem:[#allocation21_spill] sm:$0xff] %v6711_v14  ;;  %v6714_v16 = vpop.f32.mrb[42].mxu1 }
 0x18e   : > { %7983 = vst [vmem:[#allocation22_spill] sm:$0xff] %v6714_v16  ;;  %v6717_v28 = vpop.f32.mrb[43].mxu1 }
 0x18f   : > { %7984 = vst [vmem:[#allocation23_spill] sm:$0xff] %v6717_v28  ;;  %v6719_v17 = vpop.f32.mrb[44].mxu1 }
 0x190   : > { %2849 = vmatmul.mubr.bf16.gmra.mrb[28].mxu0 %v5698_v50  ;;  %7985 = vst [vmem:[#allocation24_spill] sm:$0xff] %v6719_v17  ;;  %v6721_v18 = vpop.f32.mrb[45].mxu1 }
 0x191   : > { %2858 = vmatprep.mubr.bf16.mxu0 %v5700_v53  ;;  %7986 = vst [vmem:[#allocation25_spill] sm:$0xff] %v6721_v18  ;;  %v6724_v58 = vpop.f32.mrb[46].mxu1  ;;  %v5724_v53 = vld [vmem:[%s6022_s26 + $0x40c] ss:$36 sps:$4 sm:$0xff]  }
 0x192   : > { %7987 = vst [vmem:[#allocation26_spill] sm:$0xff] %v6724_v58  ;;  %v6727_v33 = vpop.f32.mrb[47].mxu1 }
 0x193   : > { %7988 = vst [vmem:[#allocation27_spill] sm:$0xff] %v6727_v33 }
 0x196   : > { %v6729_v36 = vpop.f32.mrb[48].mxu1 }
 0x197   : > { %7989 = vst [vmem:[#allocation28_spill] sm:$0xff] %v6729_v36  ;;  %v6731_v41 = vpop.f32.mrb[49].mxu1 }
 0x198   : > { %2859 = vmatmul.mubr.bf16.gmra.mrb[32].mxu0 %v5702_v57  ;;  %7990 = vst [vmem:[#allocation29_spill] sm:$0xff] %v6731_v41  ;;  %v6734_v50 = vpop.f32.mrb[50].mxu1 }
 0x199   : > { %2868 = vmatprep.mubr.bf16.mxu0 %v5704_v60  ;;  %7991 = vst [vmem:[#allocation30_spill] sm:$0xff] %v6734_v50  ;;  %v6737_v57 = vpop.f32.mrb[51].mxu1 }
 0x19a   : > { %7992 = vst [vmem:[#allocation31_spill] sm:$0xff] %v6737_v57 }
 0x19e   : > { %v6739_v60 = vpop.f32.mrb[52].mxu1 }
 0x19f   : > { %7993 = vst [vmem:[#allocation32_spill] sm:$0xff] %v6739_v60 }
 0x1a0   : > { %2869 = vmatmul.mubr.bf16.gmra.mrb[36].mxu0 %v5706_v2  ;;  %v6741_v2 = vpop.f32.mrb[53].mxu1 }
 0x1a1   : > { %2878 = vmatprep.mubr.bf16.mxu0 %v5708_v5  ;;  %7994 = vst [vmem:[#allocation33_spill] sm:$0xff] %v6741_v2  ;;  %v5726_v5 = vld [vmem:[%s6022_s26 + $0x408] ss:$36 sps:$4 sm:$0xff]  }
 0x1a8   : > { %2879 = vmatmul.mubr.bf16.gmra.mrb[40].mxu0 %v5710_v9  ;;  %v6744_v9 = vpop.f32.mrb[54].mxu1 }
 0x1a9   : > { %2888 = vmatprep.mubr.bf16.mxu0 %v5712_v11  ;;  %7995 = vst [vmem:[#allocation34_spill] sm:$0xff] %v6744_v9  ;;  %v5728_v11 = vld [vmem:[%s6022_s26 + $0x454] ss:$36 sps:$4 sm:$0xff]  }
 0x1b0   : > { %2889 = vmatmul.mubr.bf16.gmra.mrb[44].mxu0 %v5714_v15  ;;  %v6747_v15 = vpop.f32.mrb[55].mxu1 }
 0x1b1   : > { %2898 = vmatprep.mubr.bf16.mxu0 %v5716_v23  ;;  %7996 = vst [vmem:[#allocation35_spill] sm:$0xff] %v6747_v15  ;;  %v6749_v23 = vpop.f32.mrb[56].mxu1 }
 0x1b2   : > { %7997 = vst [vmem:[#allocation36_spill] sm:$0xff] %v6749_v23 }
 0x1b8   : > { %2899 = vmatmul.mubr.bf16.gmra.mrb[48].mxu0 %v5718_v46  ;;  %v6751_v46 = vpop.f32.mrb[57].mxu1 }
 0x1b9   : > { %2908 = vmatprep.mubr.bf16.mxu0 %v5720_v27  ;;  %7998 = vst [vmem:[#allocation37_spill] sm:$0xff] %v6751_v46  ;;  %v5730_v27 = vld [vmem:[%s6022_s26 + $0x450] ss:$36 sps:$4 sm:$0xff]  }
 0x1c0   : > { %2909 = vmatmul.mubr.bf16.gmra.mrb[52].mxu0 %v5722_v43  ;;  %v6754_v43 = vpop.f32.mrb[58].mxu1 }
 0x1c1   : > { %2918 = vmatprep.mubr.bf16.mxu0 %v5724_v53  ;;  %7999 = vst [vmem:[#allocation38_spill] sm:$0xff] %v6754_v43  ;;  %v6756_v53 = vpop.f32.mrb[59].mxu1 }
 0x1c2   : > { %8000 = vst [vmem:[#allocation39_spill] sm:$0xff] %v6756_v53  ;;  %v6759_v25 = vpop.f32.mrb[60].mxu1 }
 0x1c3   : > { %8001 = vst [vmem:[#allocation40_spill] sm:$0xff] %v6759_v25  ;;  %v6761_v56 = vpop.f32.mrb[61].mxu1 }
 0x1c4   : > { %8002 = vst [vmem:[#allocation41_spill] sm:$0xff] %v6761_v56 }
 0x1c8   : > { %2919 = vmatmul.mubr.bf16.gmra.mrb[56].mxu0 %v5726_v5  ;;  %v5732_v5 = vld [vmem:[%s6022_s26 + $0x20] ss:$36 sps:$4 sm:$0xff]  }
 0x1c9   : > { %2928 = vmatprep.mubr.bf16.mxu0 %v5728_v11  ;;  %v6764_v11 = vpop.f32.mrb[62].mxu1 }
 0x1ca   : > { %8003 = vst [vmem:[#allocation42_spill] sm:$0xff] %v6764_v11  ;;  %v6766_v22 = vpop.f32.mrb[63].mxu1 }
 0x1cb   : > { %8004 = vst [vmem:[#allocation43_spill] sm:$0xff] %v6766_v22  ;;  %v6769_v52 = vpop.f32.mrb[64].mxu1 }
 0x1cc   : > { %v6771_v21 = vpop.f32.mrb[65].mxu1 }
 0x1cd   : > { %v6774_v49 = vpop.f32.mrb[66].mxu1 }
 0x1ce   : > { %v6776_v19 = vpop.f32.mrb[67].mxu1 }
 0x1cf   : > { %v6779_v44 = vpop.f32.mrb[68].mxu1 }
 0x1d0   : > { %2929 = vmatmul.mubr.bf16.gmra.mrb[60].mxu0 %v5730_v27  ;;  %v5733_v27 = vld [vmem:[%s6022_s26 + $0x68] ss:$36 sps:$4 sm:$0xff]   ;;  %v6781_v40 = vpop.f32.mrb[69].mxu1  ;;  %s368_s26 = scalar_lea.vmem [#allocation2], %s4434_s23  ;;  %s5880_s23 = smov [#allocation2]  }
 0x1d1   : > { %2971 = vmatprep.mubr.bf16.mxu0 %v5877_v20  ;;  %s4321_s16 = sshll.u32 %s368_s26, 4  ;;  %s7828_s16 = int_to_ptr.vmem [resolvable:$true] %s4321_s16 }
 0x1d2   : > { %s5813_s13 = scalar_lea.vmem %s7828_s16, 128 }
 0x1d3   : > { %p5814_p13 = scmp.ne.s32.totalorder %s7828_s16, %s5813_s13 }
 0x1d5   : > { %p5815_p0 = pnand %p5814_p13, %p5969_p5 }
 0x1d7   : > { %p5816_p1 = pneg %p5815_p0 }
 0x1d8   : > { %2972 = vmatmul.mubr.bf16.vlgmr.msra.gmra.mrb[0].mxu0 %v5732_v5  ;;  %v6784_v5 = vpop.f32.mrb[70].mxu1 }
 0x1d9   : > { %2981 = vmatprep.mubr.bf16.mxu0 %v5877_v20  ;;  %v6786_v34 = vpop.f32.mrb[71].mxu1 }
 0x1da   : > { %v6788_v32 = vpop.f32.mrb[72].mxu1 }
 0x1db   : > { %v6790_v22 = vpop.f32.mrb[73].mxu1 }
 0x1dc   : > { %v6792_v11 = vpop.f32.mrb[74].mxu1 }
 0x1dd   : > { %v6794_v56 = vpop.f32.mrb[75].mxu1 }
 0x1e0   : > { %2982 = vmatmul.mubr.bf16.gmra.mrb[4].mxu0 %v5733_v27  ;;  %v6796_v27 = vpop.f32.mrb[76].mxu1 }
 0x1e1   : > { %2991 = vmatprep.mubr.bf16.mxu0 %v5877_v20  ;;  %v6798_v20 = vpop.f32.mrb[77].mxu1 }
 0x1e2   : > { %v6800_v25 = vpop.f32.mrb[78].mxu1 }
 0x1e3   : > { %v6802_v53 = vpop.f32.mrb[79].mxu1 }
 0x1e4   : > { %v6804_v43 = vpop.f32.mrb[80].mxu1 }
 0x1e5   : > { %v6806_v46 = vpop.f32.mrb[81].mxu1 }
 0x1e8   : > { %2992 = vmatmul.mubr.bf16.gmra.mrb[8].mxu0 %v5734_v37  ;;  %v6808_v37 = vpop.f32.mrb[82].mxu1 }
 0x1e9   : > { %v6810_v23 = vpop.f32.mrb[83].mxu1 }
 0x1ea   : > { %v6812_v15 = vpop.f32.mrb[84].mxu1 }
 0x1eb   : > { %v6814_v9 = vpop.f32.mrb[85].mxu1 }
 0x1ec   : > { %v6816_v2 = vpop.f32.mrb[86].mxu1 }
 0x1ed   : > { %v6818_v60 = vpop.f32.mrb[87].mxu1 }
 0x1ee   : > { %v6820_v57 = vpop.f32.mrb[88].mxu1 }
 0x1ef   : > { %8005 = vst [vmem:[#allocation44_spill] sm:$0xff] %v6820_v57  ;;  %v6822_v50 = vpop.f32.mrb[89].mxu1 }
 0x1f0   : > { %8006 = vst [vmem:[#allocation45_spill] sm:$0xff] %v6822_v50  ;;  %v6824_v41 = vpop.f32.mrb[90].mxu1 }
 0x1f1   : > { %8007 = vst [vmem:[#allocation46_spill] sm:$0xff] %v6824_v41  ;;  %v6826_v36 = vpop.f32.mrb[91].mxu1 }
 0x1f2   : > { %8008 = vst [vmem:[#allocation47_spill] sm:$0xff] %v6826_v36  ;;  %v6828_v33 = vpop.f32.mrb[92].mxu1 }
 0x1f3   : > { %8009 = vst [vmem:[#allocation48_spill] sm:$0xff] %v6828_v33  ;;  %v6830_v58 = vpop.f32.mrb[93].mxu1 }
 0x1f4   : > { %8010 = vst [vmem:[#allocation49_spill] sm:$0xff] %v6830_v58  ;;  %v6832_v18 = vpop.f32.mrb[94].mxu1 }
 0x1f5   : > { %8011 = vst [vmem:[#allocation50_spill] sm:$0xff] %v6832_v18  ;;  %v6834_v17 = vpop.f32.mrb[95].mxu1 }
 0x1f6   : > { %8012 = vst [vmem:[#allocation51_spill] sm:$0xff] %v6834_v17  ;;  %v6836_v28 = vpop.f32.mrb[96].mxu1 }
 0x1f7   : > { %8013 = vst [vmem:[#allocation52_spill] sm:$0xff] %v6836_v28  ;;  %v6838_v16 = vpop.f32.mrb[97].mxu1 }
 0x1f8   : > { %8014 = vst [vmem:[#allocation53_spill] sm:$0xff] %v6838_v16  ;;  %v6840_v14 = vpop.f32.mrb[98].mxu1 }
 0x1f9   : > { %8015 = vst [vmem:[#allocation54_spill] sm:$0xff] %v6840_v14  ;;  %v6842_v13 = vpop.f32.mrb[99].mxu1 }
 0x1fa   : > { %8016 = vst [vmem:[#allocation55_spill] sm:$0xff] %v6842_v13  ;;  %v701_v13 = vlaneseq }
 0x1fe   : > { %v6844_v50 = vpop.f32.mrb[100].mxu1 }
 0x1ff   : > { %8017 = vst [vmem:[#allocation56_spill] sm:$0xff] %v6844_v50  ;;  %v6846_v41 = vpop.f32.mrb[101].mxu1 }
 0x200   : > { %8018 = vst [vmem:[#allocation57_spill] sm:$0xff] %v6846_v41  ;;  %v6848_v36 = vpop.f32.mrb[102].mxu1 }
 0x201   : > { %8019 = vst [vmem:[#allocation58_spill] sm:$0xff] %v6848_v36  ;;  %v6850_v33 = vpop.f32.mrb[103].mxu1  ;;  %v702_v36 = vshrl.u32 %v701_v13, 7 }
 0x202   : > { %8020 = vst [vmem:[#allocation59_spill] sm:$0xff] %v6850_v33 }
 0x206   : > { %v6852_v58 = vpop.f32.mrb[104].mxu1 }
 0x207   : > { %8021 = vst [vmem:[#allocation60_spill] sm:$0xff] %v6852_v58  ;;  %v6854_v18 = vpop.f32.mrb[105].mxu1  ;;  %v703_v58 = vsub.s32 0, %v702_v36 }
 0x208   : > { %8022 = vst [vmem:[#allocation61_spill] sm:$0xff] %v6854_v18  ;;  %v6856_v17 = vpop.f32.mrb[106].mxu1 }
 0x209   : > { %8023 = vst [vmem:[#allocation62_spill] sm:$0xff] %v6856_v17  ;;  %v6858_v28 = vpop.f32.mrb[107].mxu1 }
 0x20a   : > { %8024 = vst [vmem:[#allocation63_spill] sm:$0xff] %v6858_v28  ;;  %v699_v28 = vld [vmem:[%s7870_s2] sm:$0x3] }
 0x20e   : > { %v6860_v16 = vpop.f32.mrb[108].mxu1 }
 0x20f   : > { %8025 = vst [vmem:[#allocation64_spill] sm:$0xff] %v6860_v16  ;;  %v6862_v14 = vpop.f32.mrb[109].mxu1  ;;  %v707_v16 = vsub.s32 1, %v702_v36 }
 0x210   : > { %8026 = vst [vmem:[#allocation65_spill] sm:$0xff] %v6862_v14  ;;  %v6864_v50 = vpop.f32.mrb[110].mxu1  ;;  %v6879_v14 = vrot.slane %v699_v28, %v703_v58 }
 0x211   : > { %8027 = vst [vmem:[#allocation66_spill] sm:$0xff] %v6864_v50  ;;  %v6866_v41 = vpop.f32.mrb[111].mxu1  ;;  %v6881_v50 = vrot.slane %v699_v28, %v707_v16 }
 0x212   : > { %8028 = vst [vmem:[#allocation67_spill] sm:$0xff] %v6866_v41  ;;  %v2232_v13 = vadd.f32 %v6639_v26, %v6879_v14 }
 0x213   : > { %v2238_v36 = vadd.f32 %v6647_v30, %v6881_v50  ;;  %v2242_v30 = vadd.f32 %v6649_v0, %v6879_v14 }
 0x22d   : > { %v6868_v57 = vpop.f32.mrb[112].mxu1 }
 0x22e   : > { %8029 = vst [vmem:[#allocation68_spill] sm:$0xff] %v6868_v57  ;;  %v6870_v33 = vpop.f32.mrb[113].mxu1 }
 0x22f   : > { %8030 = vst [vmem:[#allocation69_spill] sm:$0xff] %v6870_v33  ;;  %v6872_v18 = vpop.f32.mrb[114].mxu1  ;;  %v2234_v33 = vadd.f32 %v6643_v29, %v6881_v50 }
 0x230   : > { %8031 = vst [vmem:[#allocation70_spill] sm:$0xff] %v6872_v18  ;;  %v6877_v17 = vpop.f32.mrb[115].mxu1  ;;  %v2236_v18 = vadd.f32 %v6645_v61, %v6879_v14 }
 0x231   : > { %8032 = vst [vmem:[#allocation71_spill] sm:$0xff] %v6877_v17 }
 0x243   : > { %v2810_v57 = vpop.f32.mrb[12].mxu0 }
 0x244   : > { %v4973_v41 = vadd.f32 %v2810_v57, %v2232_v13  ;;  %v2812_v12 = vpop.f32.mrb[13].mxu0 }
 0x245   : > { %v4976_v17 = vadd.f32 %v2812_v12, %v2234_v33  ;;  %v2814_v58 = vpop.f32.mrb[14].mxu0 }
 0x246   : > { %v4979_v10 = vadd.f32 %v2814_v58, %v2236_v18  ;;  %v6892_v16 = vadd.f32 %v4973_v41, %v6769_v52  ;;  %v2816_v28 = vpop.f32.mrb[15].mxu0  ;;  %v2244_v52 = vadd.f32 %v6651_v31, %v6881_v50  ;;  %v2248_v41 = vadd.f32 %v6657_v4, %v6881_v50 }
 0x247   : > { %v4982_v26 = vadd.f32 %v2816_v28, %v2238_v36  ;;  %v6895_v8 = vadd.f32 %v4976_v17, %v6771_v21 }
 0x248   : > { %v6898_v29 = vadd.f32 %v4979_v10, %v6774_v49  ;;  %v7903_v12 = vmax.f32 %v6892_v16, 0.0  ;;  %v2246_v49 = vadd.f32 %v6654_v35, %v6879_v14 }
 0x249   : > { %v6901_v61 = vadd.f32 %v4982_v26, %v6776_v19  ;;  %v7902_v33 = vmax.f32 %v6895_v8, 0.0 }
 0x24a   : > { %v7899_v18 = vmax.f32 %v6898_v29, 0.0 }
 0x24b   : > { %v7898_v21 = vmax.f32 %v6901_v61, 0.0  ;;  %v2820_v17 = vpop.f32.mrb[16].mxu0 }
 0x24c   : > { %v6917_v19 = vpack.c.bf16 %v7899_v18, %v7903_v12  ;;  %v4985_v0 = vadd.f32 %v2820_v17, %v2242_v30  ;;  %v2822_v10 = vpop.f32.mrb[17].mxu0  ;;  %v2252_v17 = vadd.f32 %v6659_v38, %v6879_v14  ;;  %v8058_v12 = vld [vmem:[#allocation51_spill] sm:$0xff] }
 0x24d   : > { %v6925_v31 = vpack.c.bf16 %v7898_v21, %v7902_v33  ;;  %v4988_v57 = vadd.f32 %v2822_v10, %v2244_v52  ;;  %v2824_v13 = vpop.f32.mrb[18].mxu0  ;;  %v8052_v21 = vld [vmem:[#allocation48_spill] sm:$0xff]  ;;  %v8056_v33 = vld [vmem:[#allocation50_spill] sm:$0xff] }
 0x24e   : > { %v4991_v35 = vadd.f32 %v2824_v13, %v2246_v49  ;;  %v6928_v36 = vadd.f32 %v4985_v0, %v6779_v44  ;;  %v2826_v58 = vpop.f32.mrb[19].mxu0  ;;  %v2254_v44 = vadd.f32 %v6661_v39, %v6881_v50 }
 0x24f   : > { %v4994_v28 = vadd.f32 %v2826_v58, %v2248_v41  ;;  %v6931_v26 = vadd.f32 %v4988_v57, %v6781_v40  ;;  %v2258_v57 = vadd.f32 %v6667_v45, %v6881_v50 }
 0x250   : > { %v6934_v30 = vadd.f32 %v4991_v35, %v6784_v5  ;;  %v7897_v52 = vmax.f32 %v6928_v36, 0.0  ;;  %v2256_v5 = vadd.f32 %v6664_v42, %v6879_v14 }
 0x251   : > { %v6937_v4 = vadd.f32 %v4994_v28, %v6786_v34  ;;  %v7896_v0 = vmax.f32 %v6931_v26, 0.0 }
 0x252   : > { %v7878_v49 = vmax.f32 %v6934_v30, 0.0 }
 0x253   : > { %v7879_v40 = vmax.f32 %v6937_v4, 0.0  ;;  %v2830_v10 = vpop.f32.mrb[20].mxu0 }
 0x254   : > { %v6953_v34 = vpack.c.bf16 %v7878_v49, %v7897_v52  ;;  %v4997_v38 = vadd.f32 %v2830_v10, %v2252_v17  ;;  %v2832_v41 = vpop.f32.mrb[21].mxu0 }
 0x255   : > { %v6961_v39 = vpack.c.bf16 %v7879_v40, %v7896_v0  ;;  %v5000_v13 = vadd.f32 %v2832_v41, %v2254_v44  ;;  %v2834_v35 = vpop.f32.mrb[22].mxu0  ;;  %v2262_v40 = vadd.f32 %v6669_v47, %v6879_v14 }
 0x256   : > { %v5003_v42 = vadd.f32 %v2834_v35, %v2256_v5  ;;  %v6964_v58 = vadd.f32 %v4997_v38, %v6788_v32  ;;  %v2836_v28 = vpop.f32.mrb[23].mxu0  ;;  %v2264_v32 = vadd.f32 %v6671_v48, %v6881_v50 }
 0x257   : > { %v5006_v49 = vadd.f32 %v2836_v28, %v2258_v57  ;;  %v6967_v17 = vadd.f32 %v5000_v13, %v6790_v22  ;;  %v2268_v57 = vadd.f32 %v6677_v24, %v6881_v50 }
 0x258   : > { %v6970_v10 = vadd.f32 %v5003_v42, %v6792_v11  ;;  %v7893_v44 = vmax.f32 %v6964_v58, 0.0  ;;  %v2266_v11 = vadd.f32 %v6674_v51, %v6879_v14 }
 0x259   : > { %v6973_v45 = vadd.f32 %v5006_v49, %v6794_v56  ;;  %v7892_v38 = vmax.f32 %v6967_v17, 0.0 }
 0x25a   : > { %v7880_v5 = vmax.f32 %v6970_v10, 0.0 }
 0x25b   : > { %v7881_v22 = vmax.f32 %v6973_v45, 0.0  ;;  %v2840_v41 = vpop.f32.mrb[24].mxu0 }
 0x25c   : > { %v6989_v56 = vpack.c.bf16 %v7880_v5, %v7893_v44  ;;  %v5009_v47 = vadd.f32 %v2840_v41, %v2262_v40  ;;  %v2842_v49 = vpop.f32.mrb[25].mxu0 }
 0x25d   : > { %v6997_v48 = vpack.c.bf16 %v7881_v22, %v7892_v38  ;;  %v5012_v13 = vadd.f32 %v2842_v49, %v2264_v32  ;;  %v2844_v35 = vpop.f32.mrb[26].mxu0  ;;  %v2272_v22 = vadd.f32 %v6679_v54, %v6879_v14  ;;  %v8046_v38 = vld [vmem:[#allocation47_spill] sm:$0xff] }
 0x25e   : > { %v5015_v51 = vadd.f32 %v2844_v35, %v2266_v11  ;;  %v7000_v42 = vadd.f32 %v5009_v47, %v6796_v27  ;;  %v2846_v28 = vpop.f32.mrb[27].mxu0  ;;  %v2274_v27 = vadd.f32 %v6681_v55, %v6881_v50 }
 0x25f   : > { %v5018_v5 = vadd.f32 %v2846_v28, %v2268_v57  ;;  %v7003_v40 = vadd.f32 %v5012_v13, %v6798_v20  ;;  %v2278_v57 = vadd.f32 %v6687_v62, %v6881_v50 }
 0x260   : > { %v7006_v41 = vadd.f32 %v5015_v51, %v6800_v25  ;;  %v7891_v32 = vmax.f32 %v7000_v42, 0.0  ;;  %v2276_v25 = vadd.f32 %v6684_v59, %v6879_v14 }
 0x261   : > { %v7009_v24 = vadd.f32 %v5018_v5, %v6802_v53  ;;  %v7888_v47 = vmax.f32 %v7003_v40, 0.0 }
 0x262   : > { %v7882_v11 = vmax.f32 %v7006_v41, 0.0 }
 0x263   : > { %v7883_v20 = vmax.f32 %v7009_v24, 0.0  ;;  %v2850_v49 = vpop.f32.mrb[28].mxu0 }
 0x264   : > { %v7025_v54 = vpack.c.bf16 %v7882_v11, %v7891_v32  ;;  %v5021_v53 = vadd.f32 %v2850_v49, %v2272_v22  ;;  %v2852_v5 = vpop.f32.mrb[29].mxu0  ;;  %v8044_v32 = vld [vmem:[#allocation46_spill] sm:$0xff] }
 0x265   : > { %v7033_v55 = vpack.c.bf16 %v7883_v20, %v7888_v47  ;;  %v5024_v13 = vadd.f32 %v2852_v5, %v2274_v27  ;;  %v2854_v35 = vpop.f32.mrb[30].mxu0  ;;  %v2282_v20 = vadd.f32 %v6689_v63, %v6879_v14 }
 0x266   : > { %v5027_v59 = vadd.f32 %v2854_v35, %v2276_v25  ;;  %v7036_v51 = vadd.f32 %v5021_v53, %v6804_v43  ;;  %v2856_v28 = vpop.f32.mrb[31].mxu0  ;;  %v2284_v43 = vadd.f32 %v6691_v1, %v6881_v50 }
 0x267   : > { %v5030_v11 = vadd.f32 %v2856_v28, %v2278_v57  ;;  %v7039_v22 = vadd.f32 %v5024_v13, %v6806_v46  ;;  %v2288_v57 = vadd.f32 %v6697_v6, %v6881_v50 }
 0x268   : > { %v7042_v49 = vadd.f32 %v5027_v59, %v6808_v37  ;;  %v7887_v27 = vmax.f32 %v7036_v51, 0.0  ;;  %v2286_v37 = vadd.f32 %v6694_v3, %v6879_v14 }
 0x269   : > { %v7045_v62 = vadd.f32 %v5030_v11, %v6810_v23  ;;  %v7886_v53 = vmax.f32 %v7039_v22, 0.0 }
 0x26a   : > { %v7884_v25 = vmax.f32 %v7042_v49, 0.0 }
 0x26b   : > { %v7885_v46 = vmax.f32 %v7045_v62, 0.0  ;;  %v2860_v5 = vpop.f32.mrb[32].mxu0 }
 0x26c   : > { %v7061_v63 = vpack.c.bf16 %v7884_v25, %v7887_v27  ;;  %v5033_v23 = vadd.f32 %v2860_v5, %v2282_v20  ;;  %v2862_v11 = vpop.f32.mrb[33].mxu0  ;;  %v8040_v27 = vld [vmem:[#allocation44_spill] sm:$0xff] }
 0x26d   : > { %v7069_v1 = vpack.c.bf16 %v7885_v46, %v7886_v53  ;;  %v5036_v13 = vadd.f32 %v2862_v11, %v2284_v43  ;;  %v2864_v3 = vpop.f32.mrb[34].mxu0  ;;  %v2292_v43 = vadd.f32 %v6699_v7, %v6879_v14 }
 0x26e   : > { %v5039_v35 = vadd.f32 %v2864_v3, %v2286_v37  ;;  %v7072_v59 = vadd.f32 %v5033_v23, %v6812_v15  ;;  %v2866_v28 = vpop.f32.mrb[35].mxu0  ;;  %v8037_v15 = vld [vmem:[#allocation17_spill] sm:$0xff] }
 0x26f   : > { %v5042_v25 = vadd.f32 %v2866_v28, %v2288_v57  ;;  %v7075_v20 = vadd.f32 %v5036_v13, %v6814_v9  ;;  %v2294_v23 = vadd.f32 %v8037_v15, %v6881_v50 }
 0x270   : > { %8033 = vst [vmem:[#allocation72_spill] sm:$0xff] %v7072_v59  ;;  %v7078_v6 = vadd.f32 %v5039_v35, %v6816_v2  ;;  %v7890_v11 = vmax.f32 %v7072_v59, 0.0  ;;  %v8038_v2 = vld [vmem:[#allocation18_spill] sm:$0xff]  ;;  %v8039_v35 = vld [vmem:[#allocation19_spill] sm:$0xff]  ;;  %v8103_v59 = vld [vmem:[#allocation64_spill] sm:$0xff] }
 0x271   : > { %8034 = vst [vmem:[#allocation73_spill] sm:$0xff] %v7075_v20  ;;  %v7081_v5 = vadd.f32 %v5042_v25, %v6818_v60  ;;  %v7895_v57 = vmax.f32 %v7075_v20, 0.0  ;;  %v2296_v60 = vadd.f32 %v8038_v2, %v6879_v14  ;;  %v2298_v28 = vadd.f32 %v8039_v35, %v6881_v50 }
 0x272   : > { %8035 = vst [vmem:[#allocation74_spill] sm:$0xff] %v7078_v6  ;;  %v7889_v37 = vmax.f32 %v7078_v6, 0.0  ;;  %v8089_v6 = vld [vmem:[#allocation60_spill] sm:$0xff] }
 0x273   : > { %8036 = vst [vmem:[#allocation75_spill] sm:$0xff] %v7081_v5  ;;  %v7894_v9 = vmax.f32 %v7081_v5, 0.0  ;;  %v2870_v13 = vpop.f32.mrb[36].mxu0 }
 0x274   : > { %v7098_v7 = vpack.c.bf16 %v7889_v37, %v7890_v11  ;;  %v5045_v25 = vadd.f32 %v2870_v13, %v2292_v43  ;;  %v2872_v3 = vpop.f32.mrb[37].mxu0  ;;  %v8042_v13 = vld [vmem:[#allocation45_spill] sm:$0xff] }
 0x275   : > { %v7106_v15 = vpack.c.bf16 %v7894_v9, %v7895_v57  ;;  %v5048_v46 = vadd.f32 %v2872_v3, %v2294_v23  ;;  %v2874_v2 = vpop.f32.mrb[38].mxu0  ;;  %v5737_v3 = vld [vmem:[%s7123_s25 + $0x4] ss:$8 sps:$4 sm:$0xff]  }
 0x276   : > { %v5051_v53 = vadd.f32 %v2874_v2, %v2296_v60  ;;  %v7109_v47 = vadd.f32 %v5045_v25, %v8040_v27  ;;  %v2876_v37 = vpop.f32.mrb[39].mxu0  ;;  %v8048_v27 = vld [vmem:[#allocation20_spill] sm:$0xff]  ;;  %v8051_v9 = vld [vmem:[#allocation23_spill] sm:$0xff]  ;;  %3476 = vmatprep.mubr.bf16.mxu1 %v5737_v3 }
 0x277   : > { %v5054_v43 = vadd.f32 %v2876_v37, %v2298_v28  ;;  %v7112_v11 = vadd.f32 %v5048_v46, %v8042_v13  ;;  %v2302_v23 = vadd.f32 %v8048_v27, %v6879_v14  ;;  %v8050_v28 = vld [vmem:[#allocation22_spill] sm:$0xff]  ;;  %v2308_v57 = vadd.f32 %v8051_v9, %v6881_v50 }
 0x278   : > { %8041 = vst [vmem:[#allocation17_spill] sm:$0xff] %v7109_v47  ;;  %v7115_v35 = vadd.f32 %v5051_v53, %v8044_v32  ;;  %v7901_v37 = vmax.f32 %v7109_v47, 0.0  ;;  %v8049_v53 = vld [vmem:[#allocation21_spill] sm:$0xff]  ;;  %v2306_v2 = vadd.f32 %v8050_v28, %v6879_v14  ;;  %v8076_v47 = vld [vmem:[#allocation56_spill] sm:$0xff] }
 0x279   : > { %8043 = vst [vmem:[#allocation18_spill] sm:$0xff] %v7112_v11  ;;  %v7118_v44 = vadd.f32 %v5054_v43, %v8046_v38  ;;  %v7906_v46 = vmax.f32 %v7112_v11, 0.0  ;;  %v2304_v60 = vadd.f32 %v8049_v53, %v6881_v50 }
 0x27a   : > { %8045 = vst [vmem:[#allocation19_spill] sm:$0xff] %v7115_v35  ;;  %v7900_v32 = vmax.f32 %v7115_v35, 0.0 }
 0x27b   : > { %8047 = vst [vmem:[#allocation44_spill] sm:$0xff] %v7118_v44  ;;  %v7905_v38 = vmax.f32 %v7118_v44, 0.0  ;;  %v2880_v25 = vpop.f32.mrb[40].mxu0  ;;  %v8064_v44 = vld [vmem:[#allocation52_spill] sm:$0xff] }
 0x27c   : > { %v7140_v43 = vpack.c.bf16 %v7900_v32, %v7901_v37  ;;  %v5057_v13 = vadd.f32 %v2880_v25, %v2302_v23  ;;  %v2882_v27 = vpop.f32.mrb[41].mxu0  ;;  %v8054_v23 = vld [vmem:[#allocation49_spill] sm:$0xff] }
 0x27d   : > { %v7148_v53 = vpack.c.bf16 %v7905_v38, %v7906_v46  ;;  %v5060_v0 = vadd.f32 %v2882_v27, %v2304_v60  ;;  %v2884_v52 = vpop.f32.mrb[42].mxu0  ;;  %v8060_v38 = vld [vmem:[#allocation24_spill] sm:$0xff]  ;;  %v8063_v27 = vld [vmem:[#allocation27_spill] sm:$0xff] }
 0x27e   : > { %v5063_v28 = vadd.f32 %v2884_v52, %v2306_v2  ;;  %v7151_v18 = vadd.f32 %v5057_v13, %v8052_v21  ;;  %v2886_v32 = vpop.f32.mrb[43].mxu0  ;;  %v2312_v60 = vadd.f32 %v8060_v38, %v6879_v14  ;;  %v8061_v21 = vld [vmem:[#allocation25_spill] sm:$0xff] }
 0x27f   : > { %v5066_v37 = vadd.f32 %v2886_v32, %v2308_v57  ;;  %v7154_v25 = vadd.f32 %v5060_v0, %v8054_v23  ;;  %v2314_v2 = vadd.f32 %v8061_v21, %v6881_v50 }
 0x280   : > { %8053 = vst [vmem:[#allocation45_spill] sm:$0xff] %v7151_v18  ;;  %v7157_v9 = vadd.f32 %v5063_v28, %v8056_v33  ;;  %v7911_v3 = vmax.f32 %v7151_v18, 0.0  ;;  %v8062_v33 = vld [vmem:[#allocation26_spill] sm:$0xff]  ;;  %v2318_v28 = vadd.f32 %v8063_v27, %v6881_v50  ;;  %v8070_v27 = vld [vmem:[#allocation55_spill] sm:$0xff] }
 0x281   : > { %8055 = vst [vmem:[#allocation46_spill] sm:$0xff] %v7154_v25  ;;  %v7160_v35 = vadd.f32 %v5066_v37, %v8058_v12  ;;  %v7915_v57 = vmax.f32 %v7154_v25, 0.0  ;;  %v2316_v13 = vadd.f32 %v8062_v33, %v6879_v14 }
 0x282   : > { %8057 = vst [vmem:[#allocation47_spill] sm:$0xff] %v7157_v9  ;;  %v7910_v52 = vmax.f32 %v7157_v9, 0.0 }
 0x283   : > { %8059 = vst [vmem:[#allocation20_spill] sm:$0xff] %v7160_v35  ;;  %v7914_v0 = vmax.f32 %v7160_v35, 0.0  ;;  %v2890_v32 = vpop.f32.mrb[44].mxu0 }
 0x284   : > { %v7176_v12 = vpack.c.bf16 %v7910_v52, %v7911_v3  ;;  %v5069_v37 = vadd.f32 %v2890_v32, %v2312_v60  ;;  %v2892_v38 = vpop.f32.mrb[45].mxu0  ;;  %v8066_v3 = vld [vmem:[#allocation53_spill] sm:$0xff]  ;;  %v8068_v32 = vld [vmem:[#allocation54_spill] sm:$0xff] }
 0x285   : > { %v7184_v23 = vpack.c.bf16 %v7914_v0, %v7915_v57  ;;  %v5072_v21 = vadd.f32 %v2892_v38, %v2314_v2  ;;  %v2894_v46 = vpop.f32.mrb[46].mxu0  ;;  %v8072_v0 = vld [vmem:[#allocation28_spill] sm:$0xff]  ;;  %v8074_v38 = vld [vmem:[#allocation30_spill] sm:$0xff] }
 0x286   : > { %v5075_v33 = vadd.f32 %v2894_v46, %v2316_v13  ;;  %v7187_v18 = vadd.f32 %v5069_v37, %v8064_v44  ;;  %v2896_v9 = vpop.f32.mrb[47].mxu0  ;;  %v2322_v57 = vadd.f32 %v8072_v0, %v6879_v14  ;;  %v8073_v44 = vld [vmem:[#allocation29_spill] sm:$0xff] }
 0x287   : > { %v5078_v52 = vadd.f32 %v2896_v9, %v2318_v28  ;;  %v7190_v60 = vadd.f32 %v5072_v21, %v8066_v3  ;;  %v2324_v13 = vadd.f32 %v8073_v44, %v6881_v50  ;;  %v2326_v28 = vadd.f32 %v8074_v38, %v6879_v14 }
 0x288   : > { %8065 = vst [vmem:[#allocation21_spill] sm:$0xff] %v7187_v18  ;;  %v7193_v11 = vadd.f32 %v5075_v33, %v8068_v32  ;;  %v7921_v2 = vmax.f32 %v7187_v18, 0.0  ;;  %v8075_v33 = vld [vmem:[#allocation31_spill] sm:$0xff] }
 0x289   : > { %8067 = vst [vmem:[#allocation22_spill] sm:$0xff] %v7190_v60  ;;  %v7196_v25 = vadd.f32 %v5078_v52, %v8070_v27  ;;  %v7925_v9 = vmax.f32 %v7190_v60, 0.0  ;;  %v2328_v32 = vadd.f32 %v8075_v33, %v6881_v50  ;;  %v8082_v33 = vld [vmem:[#allocation59_spill] sm:$0xff] }
 0x28a   : > { %8069 = vst [vmem:[#allocation23_spill] sm:$0xff] %v7193_v11  ;;  %v7920_v46 = vmax.f32 %v7193_v11, 0.0 }
 0x28b   : > { %8071 = vst [vmem:[#allocation48_spill] sm:$0xff] %v7196_v25  ;;  %v7924_v3 = vmax.f32 %v7196_v25, 0.0  ;;  %v2900_v37 = vpop.f32.mrb[48].mxu0 }
 0x28c   : > { %v7212_v52 = vpack.c.bf16 %v7920_v46, %v7921_v2  ;;  %v5081_v0 = vadd.f32 %v2900_v37, %v2322_v57  ;;  %v2902_v21 = vpop.f32.mrb[49].mxu0  ;;  %v8078_v2 = vld [vmem:[#allocation57_spill] sm:$0xff]  ;;  %v8080_v37 = vld [vmem:[#allocation58_spill] sm:$0xff] }
 0x28d   : > { %v7220_v27 = vpack.c.bf16 %v7924_v3, %v7925_v9  ;;  %v5084_v44 = vadd.f32 %v2902_v21, %v2324_v13  ;;  %v2904_v35 = vpop.f32.mrb[50].mxu0  ;;  %v8084_v3 = vld [vmem:[#allocation32_spill] sm:$0xff]  ;;  %v8086_v21 = vld [vmem:[#allocation34_spill] sm:$0xff] }
 0x28e   : > { %v5087_v38 = vadd.f32 %v2904_v35, %v2326_v28  ;;  %v7223_v18 = vadd.f32 %v5081_v0, %v8076_v47  ;;  %v2906_v11 = vpop.f32.mrb[51].mxu0  ;;  %v2332_v9 = vadd.f32 %v8084_v3, %v6879_v14  ;;  %v8085_v47 = vld [vmem:[#allocation33_spill] sm:$0xff] }
 0x28f   : > { %v5090_v46 = vadd.f32 %v2906_v11, %v2328_v32  ;;  %v7226_v57 = vadd.f32 %v5084_v44, %v8078_v2  ;;  %v2334_v28 = vadd.f32 %v8085_v47, %v6881_v50  ;;  %v2336_v32 = vadd.f32 %v8086_v21, %v6879_v14 }
 0x290   : > { %8077 = vst [vmem:[#allocation49_spill] sm:$0xff] %v7223_v18  ;;  %v7229_v5 = vadd.f32 %v5087_v38, %v8080_v37  ;;  %v7931_v13 = vmax.f32 %v7223_v18, 0.0  ;;  %v8088_v38 = vld [vmem:[#allocation35_spill] sm:$0xff] }
 0x291   : > { %8079 = vst [vmem:[#allocation50_spill] sm:$0xff] %v7226_v57  ;;  %v7232_v60 = vadd.f32 %v5090_v46, %v8082_v33  ;;  %v7935_v11 = vmax.f32 %v7226_v57, 0.0  ;;  %v2338_v37 = vadd.f32 %v8088_v38, %v6881_v50  ;;  %v8095_v38 = vld [vmem:[#allocation63_spill] sm:$0xff] }
 0x292   : > { %8081 = vst [vmem:[#allocation51_spill] sm:$0xff] %v7229_v5  ;;  %v7930_v35 = vmax.f32 %v7229_v5, 0.0 }
 0x293   : > { %8083 = vst [vmem:[#allocation24_spill] sm:$0xff] %v7232_v60  ;;  %v7934_v2 = vmax.f32 %v7232_v60, 0.0  ;;  %v2910_v0 = vpop.f32.mrb[52].mxu0 }
 0x294   : > { %v7248_v46 = vpack.c.bf16 %v7930_v35, %v7931_v13  ;;  %v5093_v3 = vadd.f32 %v2910_v0, %v2332_v9  ;;  %v2912_v44 = vpop.f32.mrb[53].mxu0  ;;  %v8091_v13 = vld [vmem:[#allocation61_spill] sm:$0xff]  ;;  %v8093_v0 = vld [vmem:[#allocation62_spill] sm:$0xff] }
 0x295   : > { %v7256_v33 = vpack.c.bf16 %v7934_v2, %v7935_v11  ;;  %v5096_v47 = vadd.f32 %v2912_v44, %v2334_v28  ;;  %v2914_v25 = vpop.f32.mrb[54].mxu0  ;;  %v8097_v2 = vld [vmem:[#allocation36_spill] sm:$0xff]  ;;  %v8099_v44 = vld [vmem:[#allocation38_spill] sm:$0xff] }
 0x296   : > { %8087 = vst [vmem:[#allocation25_spill] sm:$0xff] %v7248_v46  ;;  %v5099_v21 = vadd.f32 %v2914_v25, %v2336_v32  ;;  %v7259_v18 = vadd.f32 %v5093_v3, %v8089_v6  ;;  %v2916_v5 = vpop.f32.mrb[55].mxu0  ;;  %v2342_v11 = vadd.f32 %v8097_v2, %v6879_v14  ;;  %v8098_v6 = vld [vmem:[#allocation37_spill] sm:$0xff] }
 0x297   : > { %v5102_v35 = vadd.f32 %v2916_v5, %v2338_v37  ;;  %v7262_v9 = vadd.f32 %v5096_v47, %v8091_v13  ;;  %v2344_v32 = vadd.f32 %v8098_v6, %v6881_v50  ;;  %v2346_v37 = vadd.f32 %v8099_v44, %v6879_v14 }
 0x298   : > { %8090 = vst [vmem:[#allocation26_spill] sm:$0xff] %v7259_v18  ;;  %v7265_v20 = vadd.f32 %v5099_v21, %v8093_v0  ;;  %v7941_v28 = vmax.f32 %v7259_v18, 0.0  ;;  %v8101_v21 = vld [vmem:[#allocation39_spill] sm:$0xff] }
 0x299   : > { %8092 = vst [vmem:[#allocation27_spill] sm:$0xff] %v7262_v9  ;;  %v7268_v57 = vadd.f32 %v5102_v35, %v8095_v38  ;;  %v7944_v5 = vmax.f32 %v7262_v9, 0.0  ;;  %v2348_v0 = vadd.f32 %v8101_v21, %v6881_v50  ;;  %v8109_v21 = vld [vmem:[#allocation67_spill] sm:$0xff] }
 0x29a   : > { %8094 = vst [vmem:[#allocation52_spill] sm:$0xff] %v7265_v20  ;;  %v7940_v25 = vmax.f32 %v7265_v20, 0.0 }
 0x29b   : > { %8096 = vst [vmem:[#allocation53_spill] sm:$0xff] %v7268_v57  ;;  %v7943_v13 = vmax.f32 %v7268_v57, 0.0  ;;  %v2920_v3 = vpop.f32.mrb[56].mxu0 }
 0x29c   : > { %v7284_v35 = vpack.c.bf16 %v7940_v25, %v7941_v28  ;;  %v5105_v2 = vadd.f32 %v2920_v3, %v2342_v11  ;;  %v2922_v47 = vpop.f32.mrb[57].mxu0  ;;  %v8105_v28 = vld [vmem:[#allocation65_spill] sm:$0xff]  ;;  %v8107_v3 = vld [vmem:[#allocation66_spill] sm:$0xff] }
 0x29d   : > { %v7292_v38 = vpack.c.bf16 %v7943_v13, %v7944_v5  ;;  %v5108_v6 = vadd.f32 %v2922_v47, %v2344_v32  ;;  %v2924_v60 = vpop.f32.mrb[58].mxu0  ;;  %v8111_v13 = vld [vmem:[#allocation40_spill] sm:$0xff]  ;;  %v8113_v47 = vld [vmem:[#allocation42_spill] sm:$0xff] }
 0x29e   : > { %8100 = vst [vmem:[#allocation54_spill] sm:$0xff] %v7284_v35  ;;  %v5111_v44 = vadd.f32 %v2924_v60, %v2346_v37  ;;  %v7295_v18 = vadd.f32 %v5105_v2, %v8103_v59  ;;  %v2926_v20 = vpop.f32.mrb[59].mxu0  ;;  %v2352_v5 = vadd.f32 %v8111_v13, %v6879_v14  ;;  %v8112_v59 = vld [vmem:[#allocation41_spill] sm:$0xff] }
 0x29f   : > { %8102 = vst [vmem:[#allocation55_spill] sm:$0xff] %v7292_v38  ;;  %v5114_v25 = vadd.f32 %v2926_v20, %v2348_v0  ;;  %v7298_v11 = vadd.f32 %v5108_v6, %v8105_v28  ;;  %v2354_v37 = vadd.f32 %v8112_v59, %v6881_v50  ;;  %v2356_v0 = vadd.f32 %v8113_v47, %v6879_v14  ;;  %v8117_v38 = vld [vmem:[#allocation68_spill] sm:$0xff] }
 0x2a0   : > { %8104 = vst [vmem:[#allocation28_spill] sm:$0xff] %v7295_v18  ;;  %v7301_v35 = vadd.f32 %v5111_v44, %v8107_v3  ;;  %v7949_v32 = vmax.f32 %v7295_v18, 0.0  ;;  %v8115_v44 = vld [vmem:[#allocation43_spill] sm:$0xff] }
 0x2a1   : > { %8106 = vst [vmem:[#allocation29_spill] sm:$0xff] %v7298_v11  ;;  %v7304_v9 = vadd.f32 %v5114_v25, %v8109_v21  ;;  %v7952_v20 = vmax.f32 %v7298_v11, 0.0  ;;  %v2358_v3 = vadd.f32 %v8115_v44, %v6881_v50  ;;  %v8123_v44 = vld [vmem:[#allocation71_spill] sm:$0xff] }
 0x2a2   : > { %8108 = vst [vmem:[#allocation30_spill] sm:$0xff] %v7301_v35  ;;  %v7948_v60 = vmax.f32 %v7301_v35, 0.0 }
 0x2a3   : > { %8110 = vst [vmem:[#allocation31_spill] sm:$0xff] %v7304_v9  ;;  %v7951_v28 = vmax.f32 %v7304_v9, 0.0  ;;  %v2930_v2 = vpop.f32.mrb[60].mxu0 }
 0x2a4   : > { %v7320_v25 = vpack.c.bf16 %v7948_v60, %v7949_v32  ;;  %v5117_v13 = vadd.f32 %v2930_v2, %v2352_v5  ;;  %v2932_v6 = vpop.f32.mrb[61].mxu0  ;;  %v8119_v32 = vld [vmem:[#allocation69_spill] sm:$0xff]  ;;  %v8121_v2 = vld [vmem:[#allocation70_spill] sm:$0xff] }
 0x2a5   : > { %v7328_v21 = vpack.c.bf16 %v7951_v28, %v7952_v20  ;;  %v5120_v59 = vadd.f32 %v2932_v6, %v2354_v37  ;;  %v2934_v57 = vpop.f32.mrb[62].mxu0  ;;  %v8125_v28 = vld [vmem:[#allocation5_spill] sm:$0xff]  ;;  %v8127_v6 = vld [vmem:[#allocation7_spill] sm:$0xff] }
 0x2a6   : > { %8114 = vst [vmem:[#allocation56_spill] sm:$0xff] %v7320_v25  ;;  %v5123_v47 = vadd.f32 %v2934_v57, %v2356_v0  ;;  %v7331_v18 = vadd.f32 %v5117_v13, %v8117_v38  ;;  %v2936_v35 = vpop.f32.mrb[63].mxu0  ;;  %v2202_v20 = vadd.f32 %v8125_v28, %v6879_v14  ;;  %v8126_v38 = vld [vmem:[#allocation6_spill] sm:$0xff] }
 0x2a7   : > { %8116 = vst [vmem:[#allocation57_spill] sm:$0xff] %v7328_v21  ;;  %v5126_v60 = vadd.f32 %v2936_v35, %v2358_v3  ;;  %v7334_v5 = vadd.f32 %v5120_v59, %v8119_v32  ;;  %v2204_v0 = vadd.f32 %v8126_v38, %v6881_v50  ;;  %v2206_v3 = vadd.f32 %v8127_v6, %v6879_v14 }
 0x2a8   : > { %8118 = vst [vmem:[#allocation58_spill] sm:$0xff] %v7331_v18  ;;  %v7337_v25 = vadd.f32 %v5123_v47, %v8121_v2  ;;  %v7957_v37 = vmax.f32 %v7331_v18, 0.0  ;;  %v8129_v47 = vld [vmem:[#allocation8_spill] sm:$0xff] }
 0x2a9   : > { %8120 = vst [vmem:[#allocation59_spill] sm:$0xff] %v7334_v5  ;;  %v7340_v11 = vadd.f32 %v5126_v60, %v8123_v44  ;;  %v7961_v35 = vmax.f32 %v7334_v5, 0.0  ;;  %v2208_v2 = vadd.f32 %v8129_v47, %v6881_v50  ;;  %v8131_v5 = vld [vmem:[#allocation10_spill] sm:$0xff] }
 0x2aa   : > { %8122 = vst [vmem:[#allocation32_spill] sm:$0xff] %v7337_v25  ;;  %v7956_v57 = vmax.f32 %v7337_v25, 0.0 }
 0x2ab   : > { %8124 = vst [vmem:[#allocation33_spill] sm:$0xff] %v7340_v11  ;;  %v7960_v32 = vmax.f32 %v7340_v11, 0.0  ;;  %v2973_v13 = vpop.f32.mrb[0].mxu0  ;;  %v2214_v11 = vadd.f32 %v8131_v5, %v6881_v50 }
 0x2ac   : > { %v7356_v60 = vpack.c.bf16 %v7956_v57, %v7957_v37  ;;  %v4949_v28 = vadd.f32 %v2973_v13, %v2202_v20  ;;  %v2975_v59 = vpop.f32.mrb[1].mxu0  ;;  %v8130_v13 = vld [vmem:[#allocation9_spill] sm:$0xff] }
 0x2ad   : > { %v7364_v44 = vpack.c.bf16 %v7960_v32, %v7961_v35  ;;  %v4951_v38 = vadd.f32 %v2975_v59, %v2204_v0  ;;  %v2977_v9 = vpop.f32.mrb[2].mxu0  ;;  %v2212_v47 = vadd.f32 %v8130_v13, %v6879_v14  ;;  %v8132_v0 = vld [vmem:[#allocation11_spill] sm:$0xff] }
 0x2ae   : > { %8128 = vst [vmem:[#allocation34_spill] sm:$0xff] %v7356_v60  ;;  %v3132_v6 = vmax.f32 %v4949_v28, 0.0  ;;  %v4953_v21 = vadd.f32 %v2977_v9, %v2206_v3  ;;  %v2979_v18 = vpop.f32.mrb[3].mxu0  ;;  %v2216_v28 = vadd.f32 %v8132_v0, %v6879_v14  ;;  %v8135_v0 = vld [vmem:[#allocation14_spill] sm:$0xff] }
 0x2af   : > { %v3133_v46 = vmax.f32 %v4951_v38, 0.0  ;;  %v4955_v25 = vadd.f32 %v2979_v18, %v2208_v2  ;;  %v8133_v18 = vld [vmem:[#allocation12_spill] sm:$0xff] }
 0x2b0   : > { %v3134_v57 = vmax.f32 %v4953_v21, 0.0  ;;  %3196 = vxpose.xlu0.b32.start [1/16] %v3132_v6, 128  ;;  %v2218_v21 = vadd.f32 %v8133_v18, %v6881_v50  ;;  %v8137_v18 = vld [vmem:[#allocation16_spill] sm:$0xff] }
 0x2b1   : > { %v3135_v20 = vmax.f32 %v4955_v25, 0.0  ;;  %3228 = vxpose.xlu1.b32.start [1/16] %v3133_v46, 128 }
 0x2b2   : > { %v3388_v37 = vpack.c.bf16 %v3134_v57, %v3132_v6 }
 0x2b3   : > { %v3389_v32 = vpack.c.bf16 %v3135_v20, %v3133_v46  ;;  %v2983_v35 = vpop.f32.mrb[4].mxu0 }
 0x2b4   : > { %v4957_v9 = vadd.f32 %v2983_v35, %v2212_v47  ;;  %v2985_v3 = vpop.f32.mrb[5].mxu0  ;;  %3197 = vxpose.xlu0.b32.cont [2/16] %v3134_v57, 128  ;;  %v8134_v35 = vld [vmem:[#allocation13_spill] sm:$0xff] }
 0x2b5   : > { %v4959_v25 = vadd.f32 %v2985_v3, %v2214_v11  ;;  %v2987_v59 = vpop.f32.mrb[6].mxu0  ;;  %3229 = vxpose.xlu1.b32.cont [2/16] %v3135_v20, 128  ;;  %3444 = vmatprep.subr.bf16.mxu1 %v3389_v32  ;;  %v2222_v57 = vadd.f32 %v8134_v35, %v6879_v14  ;;  %v2224_v11 = vadd.f32 %v8135_v0, %v6881_v50  ;;  %v8136_v32 = vld [vmem:[#allocation15_spill] sm:$0xff] }
 0x2b6   : > { %v3136_v2 = vmax.f32 %v4957_v9, 0.0  ;;  %v4961_v38 = vadd.f32 %v2987_v59, %v2216_v28  ;;  %v2989_v6 = vpop.f32.mrb[7].mxu0  ;;  %3445 = vmatpush1.bf16.msra.mxu1 %v3388_v37  ;;  %v2226_v28 = vadd.f32 %v8136_v32, %v6879_v14  ;;  %v5744_v32 = vld [vmem:[%s7872_s4 + $0x8] sm:$0xff]  }
 0x2b7   : > { %v3137_v5 = vmax.f32 %v4959_v25, 0.0  ;;  %v4963_v46 = vadd.f32 %v2989_v6, %v2218_v21  ;;  %v2228_v21 = vadd.f32 %v8137_v18, %v6881_v50  ;;  %v8138_v50 = vmax.f32 %v6892_v16, 0.0  ;;  %v8182_v18 = vld [vmem:[#allocation46_spill] sm:$0xff] }
 0x2b8   : > { %v3138_v13 = vmax.f32 %v4961_v38, 0.0  ;;  %3198 = vxpose.xlu0.b32.cont [3/16] %v3136_v2, 128  ;;  %v8142_v16 = vmax.f32 %v6928_v36, 0.0  ;;  %v8148_v36 = vmax.f32 %v6970_v10, 0.0  ;;  %v8156_v10 = vmax.f32 %v7042_v49, 0.0  ;;  %v8168_v49 = vld [vmem:[#allocation75_spill] sm:$0xff] }
 0x2b9   : > { %v3139_v60 = vmax.f32 %v4963_v46, 0.0  ;;  %3230 = vxpose.xlu1.b32.cont [3/16] %v3137_v5, 128 }
 0x2ba   : > { %v3390_v47 = vpack.c.bf16 %v3138_v13, %v3136_v2 }
 0x2bb   : > { %v3391_v3 = vpack.c.bf16 %v3139_v60, %v3137_v5  ;;  %v2993_v20 = vpop.f32.mrb[8].mxu0 }
 0x2bc   : > { %v4965_v9 = vadd.f32 %v2993_v20, %v2222_v57  ;;  %v2995_v37 = vpop.f32.mrb[9].mxu0  ;;  %3199 = vxpose.xlu0.b32.cont [4/16] %v3138_v13, 128  ;;  %v8140_v13 = vmax.f32 %v6898_v29, 0.0  ;;  %v8144_v29 = vmax.f32 %v6934_v30, 0.0  ;;  %v8150_v30 = vmax.f32 %v7000_v42, 0.0  ;;  %v8160_v42 = vld [vmem:[#allocation72_spill] sm:$0xff] }
 0x2bd   : > { %v4967_v25 = vadd.f32 %v2995_v37, %v2224_v11  ;;  %v2997_v59 = vpop.f32.mrb[10].mxu0  ;;  %3231 = vxpose.xlu1.b32.cont [4/16] %v3139_v60, 128  ;;  %3446 = vmatprep.subr.bf16.mxu1 %v3391_v3  ;;  %v8139_v60 = vmax.f32 %v6895_v8, 0.0  ;;  %v8143_v8 = vmax.f32 %v6931_v26, 0.0  ;;  %v8149_v26 = vmax.f32 %v6973_v45, 0.0  ;;  %v8178_v3 = vld [vmem:[#allocation44_spill] sm:$0xff] }
 0x2be   : > { %v3140_v38 = vmax.f32 %v4965_v9, 0.0  ;;  %v4969_v2 = vadd.f32 %v2997_v59, %v2226_v28  ;;  %v2999_v6 = vpop.f32.mrb[11].mxu0  ;;  %3447 = vmatpush1.bf16.msra.mxu1 %v3390_v47  ;;  %v8141_v47 = vmax.f32 %v6901_v61, 0.0  ;;  %v8145_v61 = vmax.f32 %v6937_v4, 0.0  ;;  %v5745_v28 = vld [vmem:[%s7872_s4 + $0x50] sm:$0xff]  }
 0x2bf   : > { %v3141_v46 = vmax.f32 %v4967_v25, 0.0  ;;  %v4971_v5 = vadd.f32 %v2999_v6, %v2228_v21  ;;  %v8151_v4 = vmax.f32 %v7003_v40, 0.0  ;;  %v8157_v45 = vmax.f32 %v7045_v62, 0.0  ;;  %v8180_v9 = vld [vmem:[#allocation45_spill] sm:$0xff] }
 0x2c0   : > { %v3142_v35 = vmax.f32 %v4969_v2, 0.0  ;;  %3200 = vxpose.xlu0.b32.cont [5/16] %v3140_v38, 128  ;;  %v8161_v40 = vmax.f32 %v8160_v42, 0.0  ;;  %v8169_v62 = vmax.f32 %v8168_v49, 0.0  ;;  %v8179_v20 = vmax.f32 %v8178_v3, 0.0  ;;  %v5740_v25 = vld [vmem:[%s7123_s25 + $0x10] ss:$8 sps:$4 sm:$0xff]  }
 0x2c1   : > { %v3143_v0 = vmax.f32 %v4971_v5, 0.0  ;;  %3232 = vxpose.xlu1.b32.cont [5/16] %v3141_v46, 128  ;;  %v8181_v37 = vmax.f32 %v8180_v9, 0.0  ;;  %v8183_v21 = vmax.f32 %v8182_v18, 0.0  ;;  %v5746_v59 = vld [vmem:[%s7872_s4 + $0x10] sm:$0xff]   ;;  %v8184_v2 = vld [vmem:[#allocation47_spill] sm:$0xff] }
 0x2c2   : > { %v3392_v14 = vpack.c.bf16 %v3142_v35, %v3140_v38  ;;  %v5747_v38 = vld [vmem:[%s7872_s4 + $0x58] sm:$0xff]   ;;  %v8185_v6 = vmax.f32 %v8184_v2, 0.0  ;;  %v5757_v3 = vld [vmem:[%s7872_s4 + $0xc0] sm:$0xff]   ;;  %v5761_v2 = vld [vmem:[%s7872_s4 + $0xd0] sm:$0xff]  }
 0x2c3   : > { %v3393_v57 = vpack.c.bf16 %v3143_v0, %v3141_v46  ;;  %v8186_v46 = vld [vmem:[#allocation20_spill] sm:$0xff]  ;;  %v5758_v9 = vld [vmem:[%s7872_s4 + $0x80] sm:$0xff]  }
 0x2c4   : > { %3201 = vxpose.xlu0.b32.cont [6/16] %v3142_v35, 128  ;;  %v8187_v5 = vmax.f32 %v8186_v46, 0.0  ;;  %v5748_v35 = vld [vmem:[%s7872_s4 + $0x18] sm:$0xff]  }
 0x2c5   : > { %3233 = vxpose.xlu1.b32.cont [6/16] %v3143_v0, 128  ;;  %3448 = vmatprep.subr.bf16.mxu1 %v3393_v57  ;;  %v5749_v0 = vld [vmem:[%s7872_s4 + $0x60] sm:$0xff]  }
 0x2c6   : > { %3449 = vmatpush1.bf16.msra.mxu1 %v3392_v14  ;;  %v8188_v14 = vld [vmem:[#allocation21_spill] sm:$0xff] }
 0x2c7   : > { %3450 = vmatprep.subr.bf16.mxu1 %v6925_v31  ;;  %v8147_v31 = vmax.f32 %v6967_v17, 0.0  ;;  %v8155_v17 = vmax.f32 %v7039_v22, 0.0  ;;  %v8189_v57 = vmax.f32 %v8188_v14, 0.0 }
 0x2c8   : > { %3202 = vxpose.xlu0.b32.cont [7/16] %v8138_v50, 128  ;;  %v8190_v50 = vld [vmem:[#allocation22_spill] sm:$0xff] }
 0x2c9   : > { %3234 = vxpose.xlu1.b32.cont [7/16] %v8139_v60, 128  ;;  %v8191_v60 = vmax.f32 %v8190_v50, 0.0  ;;  %v5765_v50 = vld [vmem:[%s7872_s4 + $0xe0] sm:$0xff]  }
 0x2ca   : > { %3451 = vmatpush1.bf16.msra.mxu1 %v6917_v19  ;;  %v8146_v19 = vmax.f32 %v6964_v58, 0.0  ;;  %v8154_v58 = vmax.f32 %v7036_v51, 0.0  ;;  %v8166_v51 = vld [vmem:[#allocation74_spill] sm:$0xff] }
 0x2cb   : > { %3452 = vmatprep.subr.bf16.mxu1 %v6961_v39  ;;  %v8153_v39 = vmax.f32 %v7009_v24, 0.0  ;;  %v8167_v22 = vmax.f32 %v8166_v51, 0.0 }
 0x2cc   : > { %3203 = vxpose.xlu0.b32.cont [8/16] %v8140_v13, 128  ;;  %v5750_v13 = vld [vmem:[%s7872_s4 + $0x20] sm:$0xff]  }
 0x2cd   : > { %3235 = vxpose.xlu1.b32.cont [8/16] %v8141_v47, 128  ;;  %v5751_v47 = vld [vmem:[%s7872_s4 + $0x68] sm:$0xff]  }
 0x2ce   : > { %3453 = vmatpush1.bf16.msra.mxu1 %v6953_v34  ;;  %v8152_v34 = vmax.f32 %v7006_v41, 0.0  ;;  %v8162_v41 = vld [vmem:[#allocation73_spill] sm:$0xff] }
 0x2cf   : > { %3454 = vmatprep.subr.bf16.mxu1 %v6997_v48  ;;  %v8159_v48 = vld [vmem:[#allocation55_spill] sm:$0xff]  ;;  %v8163_v24 = vmax.f32 %v8162_v41, 0.0 }
 0x2d0   : > { %3204 = vxpose.xlu0.b32.cont [9/16] %v8142_v16, 128  ;;  %v8192_v16 = vld [vmem:[#allocation23_spill] sm:$0xff] }
 0x2d1   : > { %3236 = vxpose.xlu1.b32.cont [9/16] %v8143_v8, 128  ;;  %v8193_v8 = vmax.f32 %v8192_v16, 0.0  ;;  %v5769_v16 = vld [vmem:[%s7872_s4 + $0xf0] sm:$0xff]  }
 0x2d2   : > { %3455 = vmatpush1.bf16.msra.mxu1 %v6989_v56  ;;  %v8158_v56 = vld [vmem:[#allocation25_spill] sm:$0xff] }
 0x2d3   : > { %3456 = vmatprep.subr.bf16.mxu1 %v7033_v55  ;;  %v8165_v55 = vld [vmem:[#allocation57_spill] sm:$0xff] }
 0x2d4   : > { %3205 = vxpose.xlu0.b32.cont [10/16] %v8144_v29, 128  ;;  %v8194_v29 = vld [vmem:[#allocation48_spill] sm:$0xff] }
 0x2d5   : > { %3237 = vxpose.xlu1.b32.cont [10/16] %v8145_v61, 128  ;;  %v8195_v61 = vmax.f32 %v8194_v29, 0.0  ;;  %v5771_v29 = vld [vmem:[%s7872_s4 + $0xf8] sm:$0xff]  }
 0x2d6   : > { %3457 = vmatpush1.bf16.msra.mxu1 %v7025_v54  ;;  %v8164_v54 = vld [vmem:[#allocation54_spill] sm:$0xff] }
 0x2d7   : > { %3458 = vmatprep.subr.bf16.mxu1 %v7069_v1  ;;  %v5741_v1 = vld [vmem:[%s7872_s4 + $0x40] sm:$0xff]  }
 0x2d8   : > { %3206 = vxpose.xlu0.b32.cont [11/16] %v8146_v19, 128  ;;  %v5752_v19 = vld [vmem:[%s7872_s4 + $0x28] sm:$0xff]  }
 0x2d9   : > { %3238 = vxpose.xlu1.b32.cont [11/16] %v8147_v31, 128  ;;  %v5753_v31 = vld [vmem:[%s7872_s4 + $0x70] sm:$0xff]  }
 0x2da   : > { %3459 = vmatpush1.bf16.msra.mxu1 %v7061_v63  ;;  %v8170_v63 = vld [vmem:[#allocation56_spill] sm:$0xff] }
 0x2db   : > { %3460 = vmatprep.subr.bf16.mxu1 %v7106_v15 }
 0x2dc   : > { %3207 = vxpose.xlu0.b32.cont [12/16] %v8148_v36, 128  ;;  %v8196_v36 = vld [vmem:[#allocation49_spill] sm:$0xff] }
 0x2dd   : > { %3239 = vxpose.xlu1.b32.cont [12/16] %v8149_v26, 128  ;;  %v8197_v26 = vmax.f32 %v8196_v36, 0.0 }
 0x2de   : > { %3461 = vmatpush1.bf16.msra.mxu1 %v7098_v7  ;;  %v8171_v7 = vld [vmem:[#allocation17_spill] sm:$0xff] }
 0x2df   : > { %3462 = vmatprep.subr.bf16.mxu1 %v7148_v53  ;;  %v8172_v15 = vmax.f32 %v8171_v7, 0.0 }
 0x2e0   : > { %3208 = vxpose.xlu0.b32.cont [13/16] %v8150_v30, 128  ;;  %v8198_v30 = vld [vmem:[#allocation50_spill] sm:$0xff] }
 0x2e1   : > { %3240 = vxpose.xlu1.b32.cont [13/16] %v8151_v4, 128  ;;  %v8199_v4 = vmax.f32 %v8198_v30, 0.0  ;;  %v5775_v30 = vld [vmem:[%s7872_s4 + $0x148] sm:$0xff]  }
 0x2e2   : > { %3463 = vmatpush1.bf16.msra.mxu1 %v7140_v43  ;;  %v8173_v43 = vld [vmem:[#allocation18_spill] sm:$0xff] }
 0x2e3   : > { %3464 = vmatprep.subr.bf16.mxu1 %v7184_v23  ;;  %v8174_v53 = vmax.f32 %v8173_v43, 0.0  ;;  %v8175_v23 = vld [vmem:[#allocation34_spill] sm:$0xff] }
 0x2e4   : > { %3209 = vxpose.xlu0.b32.cont [14/16] %v8152_v34, 128  ;;  %v5754_v34 = vld [vmem:[%s7872_s4 + $0x30] sm:$0xff]  }
 0x2e5   : > { %3241 = vxpose.xlu1.b32.cont [14/16] %v8153_v39, 128  ;;  %v8200_v39 = vld [vmem:[#allocation51_spill] sm:$0xff] }
 0x2e6   : > { %3465 = vmatpush1.bf16.msra.mxu1 %v7176_v12  ;;  %v5735_v12 = vld [vmem:[%s7123_s25] ss:$8 sps:$4 sm:$0xff]  }
 0x2e7   : > { %3466 = vmatprep.subr.bf16.mxu1 %v7220_v27  ;;  %v5742_v27 = vld [vmem:[%s7872_s4] sm:$0xff]  }
 0x2e8   : > { %3210 = vxpose.xlu0.b32.cont [15/16] %v8154_v58, 128  ;;  %v8201_v58 = vmax.f32 %v8200_v39, 0.0  ;;  %v5778_v39 = vld [vmem:[%s7872_s4 + $0x110] sm:$0xff]  }
 0x2e9   : > { %3242 = vxpose.xlu1.b32.cont [15/16] %v8155_v17, 128  ;;  %v8202_v17 = vld [vmem:[#allocation24_spill] sm:$0xff] }
 0x2ea   : > { %3467 = vmatpush1.bf16.msra.mxu1 %v7212_v52  ;;  %v5738_v52 = vld [vmem:[%s7123_s25 + $0x14] ss:$8 sps:$4 sm:$0xff]   ;;  %s7747_s25 = scalar_lea.vmem %s7876_s8, %s4814_s29  ;;  %s386_s29 = scalar_lea.vmem %s7874_s6, %s4440_s24 }
 0x2eb   : > { %3468 = vmatprep.subr.bf16.mxu1 %v7256_v33  ;;  %v5743_v33 = vld [vmem:[%s7872_s4 + $0x48] sm:$0xff]   ;;  %s5817_s24 = sshll.u32 %s5880_s23, 4  ;;  %s5818_s24 = int_to_ptr.vmem [resolvable:$false] %s5817_s24 }
 0x2ec   : > { %3211 = vxpose.xlu0.b32.end [16/16] %v8156_v10, 128  ;;  %v8203_v10 = vmax.f32 %v8202_v17, 0.0  ;;  %v5780_v17 = vld [vmem:[%s7872_s4 + $0x118] sm:$0xff]   ;;  %s5819_s0 = scalar_lea.vmem %s5818_s24, 256  ;;  %p5820_p2 = scmp.lt.s32.totalorder %s7828_s16, %s5818_s24 }
 0x2ed   : > { %3243 = vxpose.xlu1.b32.end [16/16] %v8157_v45, 128  ;;  %v8204_v45 = vld [vmem:[#allocation26_spill] sm:$0xff]  ;;  %p5821_p3 = scmp.lt.s32.totalorder %s5819_s0, %s5813_s13 }
 0x2ee   : > { %3469 = vmatpush1.bf16.msra.mxu1 %v8158_v56  ;;  %v8205_v56 = vmax.f32 %v8204_v45, 0.0  ;;  %v5782_v45 = vld [vmem:[%s7872_s4 + $0x120] sm:$0xff]  }
 0x2ef   : > { %3470 = vmatprep.subr.bf16.mxu1 %v8159_v48  ;;  %v8206_v48 = vld [vmem:[#allocation27_spill] sm:$0xff]  ;;  %p5822_p4 = por %p5821_p3, %p5820_p2 }
 0x2f0   : > { %3260 = vxpose.xlu0.b32.start [1/16] %v8161_v40, 128  ;;  %v8207_v42 = vmax.f32 %v8206_v48, 0.0  ;;  %v8208_v40 = vld [vmem:[#allocation52_spill] sm:$0xff] }
 0x2f1   : > { %3292 = vxpose.xlu1.b32.start [1/16] %v8163_v24, 128  ;;  %v8209_v41 = vmax.f32 %v8208_v40, 0.0  ;;  %v8210_v24 = vld [vmem:[#allocation53_spill] sm:$0xff]  ;;  %v5784_v48 = vld [vmem:[%s7872_s4 + $0x128] sm:$0xff]   ;;  %p5823_p7 = pnand %p5822_p4, %p5816_p1 }
 0x2f2   : > { %3471 = vmatpush1.bf16.msra.mxu1 %v8164_v54  ;;  %v8211_v54 = vmax.f32 %v8210_v24, 0.0  ;;  %v5786_v40 = vld [vmem:[%s7872_s4 + $0x130] sm:$0xff]   ;;  %v5788_v24 = vld [vmem:[%s7872_s4 + $0x138] sm:$0xff]  }
 0x2f3   : > { %3472 = vmatprep.subr.bf16.mxu1 %v8165_v55  ;;  %v8212_v55 = vld [vmem:[#allocation28_spill] sm:$0xff] }
 0x2f4   : > { %3261 = vxpose.xlu0.b32.cont [2/16] %v8167_v22, 128  ;;  %v8213_v51 = vmax.f32 %v8212_v55, 0.0  ;;  %v8214_v22 = vld [vmem:[#allocation29_spill] sm:$0xff] }
 0x2f5   : > { %3293 = vxpose.xlu1.b32.cont [2/16] %v8169_v62, 128  ;;  %v8215_v49 = vmax.f32 %v8214_v22, 0.0  ;;  %v8216_v62 = vld [vmem:[#allocation30_spill] sm:$0xff]  ;;  %v5791_v22 = vld [vmem:[%s7872_s4 + $0x1c8] sm:$0xff]  }
 0x2f6   : > { %3473 = vmatpush1.bf16.msra.mxu1 %v8170_v63  ;;  %v8217_v63 = vmax.f32 %v8216_v62, 0.0  ;;  %v5792_v62 = vld [vmem:[%s7872_s4 + $0x188] sm:$0xff]  }
 0x2f7   : > { %3474 = vmatprep.subr.bf16.mxu1 %v7364_v44  ;;  %v8176_v44 = vld [vmem:[#allocation19_spill] sm:$0xff] }
 0x2f8   : > { %3262 = vxpose.xlu0.b32.cont [3/16] %v8172_v15, 128  ;;  %v8177_v11 = vmax.f32 %v8176_v44, 0.0  ;;  %v8220_v15 = vld [vmem:[#allocation58_spill] sm:$0xff] }
 0x2f9   : > { %3294 = vxpose.xlu1.b32.cont [3/16] %v8174_v53, 128  ;;  %v8221_v43 = vmax.f32 %v8220_v15, 0.0  ;;  %v8222_v53 = vld [vmem:[#allocation59_spill] sm:$0xff]  ;;  %v5755_v44 = vld [vmem:[%s7872_s4 + $0x78] sm:$0xff]  }
 0x2fa   : > { %3475 = vmatpush1.bf16.msra.mxu1 %v8175_v23  ;;  %v8224_v23 = vld [vmem:[#allocation32_spill] sm:$0xff]  ;;  %v5796_v15 = vld [vmem:[%s7872_s4 + $0x198] sm:$0xff]  }
 0x2fb   : > { %4815 = vmatprep.subr.bf16.mxu1 %v5741_v1  ;;  %v8218_v1 = vld [vmem:[#allocation31_spill] sm:$0xff] }
 0x2fc   : > { %3263 = vxpose.xlu0.b32.cont [4/16] %v8177_v11, 128  ;;  %v8219_v7 = vmax.f32 %v8218_v1, 0.0  ;;  %v5756_v11 = vld [vmem:[%s7872_s4 + $0x38] sm:$0xff]   ;;  %v5794_v1 = vld [vmem:[%s7872_s4 + $0x190] sm:$0xff]  }
 0x2fd   : > { %3295 = vxpose.xlu1.b32.cont [4/16] %v8179_v20, 128  ;;  %3477 = vmatmul.mubr.bf16.vlgmr.msra.gmra.mrb[116].mxu1 %v5735_v12  ;;  %v8223_v12 = vmax.f32 %v8222_v53, 0.0  ;;  %v5798_v53 = vld [vmem:[%s7872_s4 + $0x1a0] sm:$0xff]  }
 0x2fe   : > { %3486 = vmatprep.mubr.bf16.mxu1 %v5738_v52  ;;  %4816 = vmatpush3.bf16.msra.mxu1 %v5742_v27  ;;  %v8225_v52 = vmax.f32 %v8224_v23, 0.0  ;;  %v8226_v27 = vld [vmem:[#allocation33_spill] sm:$0xff]  ;;  %v5800_v23 = vld [vmem:[%s7872_s4 + $0x1a8] sm:$0xff]  }
 0x2ff   : > { %4817 = vmatprep.subr.bf16.mxu1 %v5743_v33  ;;  %v8227_v33 = vmax.f32 %v8226_v27, 0.0  ;;  %v5802_v27 = vld [vmem:[%s7872_s4 + $0x1b0] sm:$0xff]  }
 0x300   : > { %3264 = vxpose.xlu0.b32.cont [5/16] %v8181_v37, 128 }
 0x301   : > { %3296 = vxpose.xlu1.b32.cont [5/16] %v8183_v21, 128  ;;  %v5759_v21 = vld [vmem:[%s7872_s4 + $0xc8] sm:$0xff]  }
 0x302   : > { %4818 = vmatpush3.bf16.msra.mxu1 %v5744_v32 }
 0x303   : > { %4819 = vmatprep.subr.bf16.mxu1 %v5745_v28 }
 0x304   : > { %3265 = vxpose.xlu0.b32.cont [6/16] %v8185_v6, 128 }
 0x305   : > { %3297 = vxpose.xlu1.b32.cont [6/16] %v8187_v5, 128  ;;  %3487 = vmatmul.mubr.bf16.gmra.mrb[120].mxu1 %v5740_v25  ;;  %v5762_v5 = vld [vmem:[%s7872_s4 + $0x90] sm:$0xff]  }
 0x306   : > { %4820 = vmatpush3.bf16.msra.mxu1 %v5746_v59 }
 0x307   : > { %4821 = vmatprep.subr.bf16.mxu1 %v5747_v38  ;;  %v5760_v38 = vld [vmem:[%s7872_s4 + $0x88] sm:$0xff]  }
 0x308   : > { %3266 = vxpose.xlu0.b32.cont [7/16] %v8189_v57, 128  ;;  %v5764_v57 = vld [vmem:[%s7872_s4 + $0x98] sm:$0xff]  }
 0x309   : > { %3298 = vxpose.xlu1.b32.cont [7/16] %v8191_v60, 128  ;;  %v5766_v60 = vld [vmem:[%s7872_s4 + $0xa0] sm:$0xff]  }
 0x30a   : > { %4822 = vmatpush3.bf16.msra.mxu1 %v5748_v35 }
 0x30b   : > { %4823 = vmatprep.subr.bf16.mxu1 %v5749_v0  ;;  %v5763_v0 = vld [vmem:[%s7872_s4 + $0xd8] sm:$0xff]  }
 0x30c   : > { %3267 = vxpose.xlu0.b32.cont [8/16] %v8193_v8, 128  ;;  %v5770_v8 = vld [vmem:[%s7872_s4 + $0xb0] sm:$0xff]  }
 0x30d   : > { %3299 = vxpose.xlu1.b32.cont [8/16] %v8195_v61, 128  ;;  %v5772_v61 = vld [vmem:[%s7872_s4 + $0xb8] sm:$0xff]  }
 0x30e   : > { %4824 = vmatpush3.bf16.msra.mxu1 %v5750_v13  ;;  %v5767_v13 = vld [vmem:[%s7872_s4 + $0xe8] sm:$0xff]  }
 0x30f   : > { %4825 = vmatprep.subr.bf16.mxu1 %v5751_v47  ;;  %v5768_v47 = vld [vmem:[%s7872_s4 + $0xa8] sm:$0xff]  }
 0x310   : > { %3268 = vxpose.xlu0.b32.cont [9/16] %v8197_v26, 128 }
 0x311   : > { %3300 = vxpose.xlu1.b32.cont [9/16] %v8199_v4, 128  ;;  %v5776_v4 = vld [vmem:[%s7872_s4 + $0x108] sm:$0xff]  }
 0x312   : > { %4826 = vmatpush3.bf16.msra.mxu1 %v5752_v19  ;;  %v5773_v19 = vld [vmem:[%s7872_s4 + $0x140] sm:$0xff]  }
 0x313   : > { %4827 = vmatprep.subr.bf16.mxu1 %v5753_v31  ;;  %v5774_v31 = vld [vmem:[%s7872_s4 + $0x100] sm:$0xff]  }
 0x314   : > { %3269 = vxpose.xlu0.b32.cont [10/16] %v8201_v58, 128  ;;  %v5779_v58 = vld [vmem:[%s7872_s4 + $0x158] sm:$0xff]  }
 0x315   : > { %3301 = vxpose.xlu1.b32.cont [10/16] %v8203_v10, 128  ;;  %v5781_v10 = vld [vmem:[%s7872_s4 + $0x160] sm:$0xff]  }
 0x316   : > { %4828 = vmatpush3.bf16.msra.mxu1 %v5754_v34  ;;  %v5777_v34 = vld [vmem:[%s7872_s4 + $0x150] sm:$0xff]  }
 0x317   : > { %4829 = vmatprep.subr.bf16.mxu1 %v5755_v44  ;;  %v5804_v44 = vld [vmem:[%s7872_s4 + $0x1b8] sm:$0xff]  }
 0x318   : > { %3270 = vxpose.xlu0.b32.cont [11/16] %v8205_v56, 128  ;;  %v5783_v56 = vld [vmem:[%s7872_s4 + $0x168] sm:$0xff]  }
 0x319   : > { %3302 = vxpose.xlu1.b32.cont [11/16] %v8207_v42, 128  ;;  %v5785_v42 = vld [vmem:[%s7872_s4 + $0x170] sm:$0xff]  }
 0x31a   : > { %4830 = vmatpush3.bf16.msra.mxu1 %v5756_v11 }
 0x31b   : > { %4837 = vmatprep.subr.bf16.mxu1 %v5757_v3  ;;  %v5805_v3 = vld [vmem:[%s7875_s7] sm:$0xff]  }
 0x31c   : > { %3271 = vxpose.xlu0.b32.cont [12/16] %v8209_v41, 128  ;;  %v5787_v41 = vld [vmem:[%s7872_s4 + $0x178] sm:$0xff]  }
 0x31d   : > { %3303 = vxpose.xlu1.b32.cont [12/16] %v8211_v54, 128  ;;  %v5789_v54 = vld [vmem:[%s7872_s4 + $0x1c0] sm:$0xff]  }
 0x320   : > { %3272 = vxpose.xlu0.b32.cont [13/16] %v8213_v51, 128  ;;  %v5790_v51 = vld [vmem:[%s7872_s4 + $0x180] sm:$0xff]  }
 0x321   : > { %3304 = vxpose.xlu1.b32.cont [13/16] %v8215_v49, 128 }
 0x324   : > { %3273 = vxpose.xlu0.b32.cont [14/16] %v8217_v63, 128  ;;  %v5793_v63 = vld [vmem:[%s7872_s4 + $0x1d0] sm:$0xff]  }
 0x325   : > { %3305 = vxpose.xlu1.b32.cont [14/16] %v8219_v7, 128  ;;  %v5795_v7 = vld [vmem:[%s7872_s4 + $0x1d8] sm:$0xff]  }
 0x328   : > { %3274 = vxpose.xlu0.b32.cont [15/16] %v8221_v43, 128  ;;  %v5797_v43 = vld [vmem:[%s7872_s4 + $0x1e0] sm:$0xff]  }
 0x329   : > { %3306 = vxpose.xlu1.b32.cont [15/16] %v8223_v12, 128  ;;  %v5799_v12 = vld [vmem:[%s7872_s4 + $0x1e8] sm:$0xff]  }
 0x32c   : > { %3275 = vxpose.xlu0.b32.end [16/16] %v8225_v52, 128  ;;  %v5801_v52 = vld [vmem:[%s7872_s4 + $0x1f0] sm:$0xff]  }
 0x32d   : > { %3307 = vxpose.xlu1.b32.end [16/16] %v8227_v33, 128  ;;  %v5803_v33 = vld [vmem:[%s7872_s4 + $0x1f8] sm:$0xff]  }
 0x3d0   : > { %v3478_v20 = vpop.f32.mrb[116].mxu1 }
 0x3d1   : > { %v3480_v32 = vpop.f32.mrb[117].mxu1  ;;  %v3497_v18 = vpack.c.bf16 %v3478_v20, %v3478_v20  ;;  %v5878_v20 = vmov 0.0  }
 0x3d2   : > { %v3498_v28 = vpack.c.bf16 %v3480_v32, %v3480_v32  ;;  %v3482_v37 = vpop.f32.mrb[118].mxu1  ;;  %v5806_v32 = vld [vmem:[%s7875_s7 + $0x8] sm:$0xff]  }
 0x3d3   : > { %v3484_v25 = vpop.f32.mrb[119].mxu1  ;;  %v3499_v26 = vpack.c.bf16 %v3482_v37, %v3482_v37  ;;  %v5809_v37 = vld [vmem:[%s7875_s7 + $0x20] sm:$0xff]  }
 0x3d4   : > { %3761 = vmatprep.mubr.bf16.mxu1 %v3498_v28  ;;  %v3500_v59 = vpack.c.bf16 %v3484_v25, %v3484_v25  ;;  %v5807_v28 = vld [vmem:[%s7875_s7 + $0x10] sm:$0xff]   ;;  %v5812_v25 = vld [vmem:[%s7875_s7 + $0x38] sm:$0xff]  }
 0x3d5   : > { %3762 = vmatmul.mubr.bf16.vlgmr.msra.gmra.mrb[124].mxu1 %v3497_v18  ;;  %v5810_v18 = vld [vmem:[%s7875_s7 + $0x28] sm:$0xff]  }
 0x3d6   : > { %4838 = vmatpush3.bf16.msra.mxu1 %v5758_v9  ;;  %3897 = vmatprep.mubr.bf16.mxu1 %v3500_v59  ;;  %v5808_v9 = vld [vmem:[%s7875_s7 + $0x18] sm:$0xff]   ;;  %v3244_v59 = vpop.trf.xlu1 }
 0x3d7   : > { %4839 = vmatprep.subr.bf16.mxu1 %v5759_v21  ;;  %v5811_v21 = vld [vmem:[%s7875_s7 + $0x30] sm:$0xff]   ;;  %3356 = vst [vmem:[%s7747_s25 + $0x100] sm:$0xff] %v3244_v59 }
 0x3d8   : > { %v7578_v6 = vpop.f32.mrb[120].mxu1 }
 0x3d9   : > { %v3490_v46 = vpop.f32.mrb[121].mxu1  ;;  %v3501_v55 = vpack.c.bf16 %v7578_v6, %v7578_v6 }
 0x3da   : > { %4840 = vmatpush3.bf16.msra.mxu1 %v5760_v38  ;;  %v7583_v35 = vpop.f32.mrb[122].mxu1  ;;  %v3502_v36 = vpack.c.bf16 %v3490_v46, %v3490_v46  ;;  %v3212_v38 = vpop.trf.xlu0 }
 0x3db   : > { %4841 = vmatprep.subr.bf16.mxu1 %v5761_v2  ;;  %v7588_v14 = vpop.f32.mrb[123].mxu1  ;;  %v3503_v11 = vpack.c.bf16 %v7583_v35, %v7583_v35  ;;  %3324 = vst [vmem:[%s7747_s25] sm:$0xff] %v3212_v38  ;;  %v3245_v2 = vpop.trf.xlu1  ;;  %v4800_v38 = vld [vmem:[%s7873_s5] ss:$0 sm:$0xff] }
 0x3dc   : > { %v3504_v49 = vpack.c.bf16 %v7588_v14, %v7588_v14  ;;  %3358 = vst [vmem:[%s7747_s25 + $0x110] sm:$0xff] %v3245_v2 }
 0x3de   : > { %4842 = vmatpush3.bf16.msra.mxu1 %v5762_v5  ;;  %v3213_v6 = vpop.trf.xlu0 }
 0x3df   : > { %4843 = vmatprep.subr.bf16.mxu1 %v5763_v0  ;;  %3326 = vst [vmem:[%s7747_s25 + $0x10] sm:$0xff] %v3213_v6  ;;  %v3246_v46 = vpop.trf.xlu1 }
 0x3e0   : > { %3360 = vst [vmem:[%s7747_s25 + $0x120] sm:$0xff] %v3246_v46 }
 0x3e2   : > { %4844 = vmatpush3.bf16.msra.mxu1 %v5764_v57  ;;  %v3214_v5 = vpop.trf.xlu0 }
 0x3e3   : > { %4845 = vmatprep.subr.bf16.mxu1 %v5765_v50  ;;  %3328 = vst [vmem:[%s7747_s25 + $0x20] sm:$0xff] %v3214_v5  ;;  %v3247_v35 = vpop.trf.xlu1 }
 0x3e4   : > { %3362 = vst [vmem:[%s7747_s25 + $0x130] sm:$0xff] %v3247_v35 }
 0x3e6   : > { %4846 = vmatpush3.bf16.msra.mxu1 %v5766_v60  ;;  %v3215_v0 = vpop.trf.xlu0 }
 0x3e7   : > { %4847 = vmatprep.subr.bf16.mxu1 %v5767_v13  ;;  %3330 = vst [vmem:[%s7747_s25 + $0x30] sm:$0xff] %v3215_v0  ;;  %v3248_v14 = vpop.trf.xlu1 }
 0x3e8   : > { %3364 = vst [vmem:[%s7747_s25 + $0x140] sm:$0xff] %v3248_v14 }
 0x3ea   : > { %4848 = vmatpush3.bf16.msra.mxu1 %v5768_v47  ;;  %v3216_v57 = vpop.trf.xlu0 }
 0x3eb   : > { %4849 = vmatprep.subr.bf16.mxu1 %v5769_v16  ;;  %3332 = vst [vmem:[%s7747_s25 + $0x40] sm:$0xff] %v3216_v57  ;;  %v3249_v60 = vpop.trf.xlu1 }
 0x3ec   : > { %3366 = vst [vmem:[%s7747_s25 + $0x150] sm:$0xff] %v3249_v60 }
 0x3ee   : > { %4850 = vmatpush3.bf16.msra.mxu1 %v5770_v8  ;;  %v3217_v47 = vpop.trf.xlu0 }
 0x3ef   : > { %4851 = vmatprep.subr.bf16.mxu1 %v5771_v29  ;;  %3334 = vst [vmem:[%s7747_s25 + $0x50] sm:$0xff] %v3217_v47 }
 0x3f2   : > { %4852 = vmatpush3.bf16.msra.mxu1 %v5772_v61  ;;  %v3250_v61 = vpop.trf.xlu1 }
 0x3f3   : > { %4859 = vmatprep.subr.bf16.mxu1 %v5773_v19  ;;  %3368 = vst [vmem:[%s7747_s25 + $0x160] sm:$0xff] %v3250_v61  ;;  %v3218_v19 = vpop.trf.xlu0 }
 0x3f4   : > { %3336 = vst [vmem:[%s7747_s25 + $0x60] sm:$0xff] %v3218_v19 }
 0x3f5   : > { %3898 = vmatmul.mubr.bf16.vlgmr.msra.gmra.mrb[128].mxu1 %v3499_v26 }
 0x3f6   : > { %4860 = vmatpush3.bf16.msra.mxu1 %v5774_v31  ;;  %4033 = vmatprep.mubr.bf16.mxu1 %v3502_v36  ;;  %v3251_v31 = vpop.trf.xlu1 }
 0x3f7   : > { %4861 = vmatprep.subr.bf16.mxu1 %v5775_v30  ;;  %3370 = vst [vmem:[%s7747_s25 + $0x170] sm:$0xff] %v3251_v31  ;;  %v3219_v36 = vpop.trf.xlu0 }
 0x3f8   : > { %3338 = vst [vmem:[%s7747_s25 + $0x70] sm:$0xff] %v3219_v36 }
 0x3fa   : > { %4862 = vmatpush3.bf16.msra.mxu1 %v5776_v4  ;;  %v3252_v26 = vpop.trf.xlu1 }
 0x3fb   : > { %4863 = vmatprep.subr.bf16.mxu1 %v5777_v34  ;;  %3372 = vst [vmem:[%s7747_s25 + $0x180] sm:$0xff] %v3252_v26  ;;  %v3220_v30 = vpop.trf.xlu0 }
 0x3fc   : > { %3340 = vst [vmem:[%s7747_s25 + $0x80] sm:$0xff] %v3220_v30 }
 0x3fe   : > { %4864 = vmatpush3.bf16.msra.mxu1 %v5778_v39  ;;  %v3253_v4 = vpop.trf.xlu1 }
 0x3ff   : > { %4865 = vmatprep.subr.bf16.mxu1 %v5779_v58  ;;  %3374 = vst [vmem:[%s7747_s25 + $0x190] sm:$0xff] %v3253_v4  ;;  %v3221_v34 = vpop.trf.xlu0 }
 0x400   : > { %3342 = vst [vmem:[%s7747_s25 + $0x90] sm:$0xff] %v3221_v34 }
 0x402   : > { %4866 = vmatpush3.bf16.msra.mxu1 %v5780_v17  ;;  %v3254_v39 = vpop.trf.xlu1 }
 0x403   : > { %4867 = vmatprep.subr.bf16.mxu1 %v5781_v10  ;;  %3376 = vst [vmem:[%s7747_s25 + $0x1a0] sm:$0xff] %v3254_v39  ;;  %v3222_v58 = vpop.trf.xlu0 }
 0x404   : > { %3344 = vst [vmem:[%s7747_s25 + $0xa0] sm:$0xff] %v3222_v58 }
 0x406   : > { %4868 = vmatpush3.bf16.msra.mxu1 %v5782_v45  ;;  %v3255_v17 = vpop.trf.xlu1 }
 0x407   : > { %4869 = vmatprep.subr.bf16.mxu1 %v5783_v56  ;;  %3378 = vst [vmem:[%s7747_s25 + $0x1b0] sm:$0xff] %v3255_v17  ;;  %v3223_v10 = vpop.trf.xlu0  ;;  %v4190_v17 = vld [vmem:[%s386_s29] sm:$0xff] }
 0x408   : > { %3346 = vst [vmem:[%s7747_s25 + $0xb0] sm:$0xff] %v3223_v10 }
 0x40a   : > { %4870 = vmatpush3.bf16.msra.mxu1 %v5784_v48  ;;  %v3256_v45 = vpop.trf.xlu1 }
 0x40b   : > { %4871 = vmatprep.subr.bf16.mxu1 %v5785_v42  ;;  %3380 = vst [vmem:[%s7747_s25 + $0x1c0] sm:$0xff] %v3256_v45  ;;  %v3224_v56 = vpop.trf.xlu0 }
 0x40c   : > { %3348 = vst [vmem:[%s7747_s25 + $0xc0] sm:$0xff] %v3224_v56 }
 0x40e   : > { %4872 = vmatpush3.bf16.msra.mxu1 %v5786_v40  ;;  %v3257_v42 = vpop.trf.xlu1 }
 0x40f   : > { %4873 = vmatprep.subr.bf16.mxu1 %v5787_v41  ;;  %3382 = vst [vmem:[%s7747_s25 + $0x1d0] sm:$0xff] %v3257_v42  ;;  %v3225_v41 = vpop.trf.xlu0 }
 0x410   : > { %3350 = vst [vmem:[%s7747_s25 + $0xd0] sm:$0xff] %v3225_v41 }
 0x412   : > { %4874 = vmatpush3.bf16.msra.mxu1 %v5788_v24 }
 0x413   : > { %4881 = vmatprep.subr.bf16.mxu1 %v5789_v54 }
 0x415   : > { %4034 = vmatmul.mubr.bf16.vlgmr.msra.gmra.mrb[132].mxu1 %v3501_v55 }
 0x416   : > { %4882 = vmatpush3.bf16.msra.mxu1 %v5790_v51  ;;  %4169 = vmatprep.mubr.bf16.mxu1 %v3504_v49  ;;  %v3226_v49 = vpop.trf.xlu0 }
 0x417   : > { %4883 = vmatprep.subr.bf16.mxu1 %v5791_v22  ;;  %v3258_v22 = vpop.trf.xlu1  ;;  %3352 = vst [vmem:[%s7747_s25 + $0xe0] sm:$0xff] %v3226_v49 }
 0x418   : > { %3384 = vst [vmem:[%s7747_s25 + $0x1e0] sm:$0xff] %v3258_v22 }
 0x41a   : > { %4884 = vmatpush3.bf16.msra.mxu1 %v5792_v62 }
 0x41b   : > { %4885 = vmatprep.subr.bf16.mxu1 %v5793_v63  ;;  %v3259_v62 = vpop.trf.xlu1  ;;  %v3227_v63 = vpop.trf.xlu0 }
 0x41c   : > { %3386 = vst [vmem:[%s7747_s25 + $0x1f0] sm:$0xff] %v3259_v62  ;;  %3354 = vst [vmem:[%s7747_s25 + $0xf0] sm:$0xff] %v3227_v63 }
 0x41e   : > { %4886 = vmatpush3.bf16.msra.mxu1 %v5794_v1 }
 0x41f   : > { %4887 = vmatprep.subr.bf16.mxu1 %v5795_v7  ;;  %v3308_v1 = vpop.trf.xlu1  ;;  %v3276_v7 = vpop.trf.xlu0 }
 0x420   : > { %3357 = vst [vmem:[%s7747_s25 + $0x108] sm:$0xff] %v3308_v1  ;;  %3325 = vst [vmem:[%s7747_s25 + $0x8] sm:$0xff] %v3276_v7 }
 0x422   : > { %4888 = vmatpush3.bf16.msra.mxu1 %v5796_v15 }
 0x423   : > { %4889 = vmatprep.subr.bf16.mxu1 %v5797_v43  ;;  %v3309_v15 = vpop.trf.xlu1  ;;  %v3277_v43 = vpop.trf.xlu0 }
 0x424   : > { %3359 = vst [vmem:[%s7747_s25 + $0x118] sm:$0xff] %v3309_v15  ;;  %3327 = vst [vmem:[%s7747_s25 + $0x18] sm:$0xff] %v3277_v43 }
 0x426   : > { %4890 = vmatpush3.bf16.msra.mxu1 %v5798_v53 }
 0x427   : > { %4891 = vmatprep.subr.bf16.mxu1 %v5799_v12  ;;  %v3310_v53 = vpop.trf.xlu1  ;;  %v3278_v12 = vpop.trf.xlu0 }
 0x428   : > { %3361 = vst [vmem:[%s7747_s25 + $0x128] sm:$0xff] %v3310_v53  ;;  %3329 = vst [vmem:[%s7747_s25 + $0x28] sm:$0xff] %v3278_v12 }
 0x42a   : > { %4892 = vmatpush3.bf16.msra.mxu1 %v5800_v23 }
 0x42b   : > { %4893 = vmatprep.subr.bf16.mxu1 %v5801_v52  ;;  %v3311_v23 = vpop.trf.xlu1  ;;  %v3279_v52 = vpop.trf.xlu0 }
 0x42c   : > { %3363 = vst [vmem:[%s7747_s25 + $0x138] sm:$0xff] %v3311_v23  ;;  %3331 = vst [vmem:[%s7747_s25 + $0x38] sm:$0xff] %v3279_v52 }
 0x42e   : > { %4894 = vmatpush3.bf16.msra.mxu1 %v5802_v27 }
 0x42f   : > { %4895 = vmatprep.subr.bf16.mxu1 %v5803_v33  ;;  %v3312_v27 = vpop.trf.xlu1  ;;  %v3280_v33 = vpop.trf.xlu0 }
 0x430   : > { %3365 = vst [vmem:[%s7747_s25 + $0x148] sm:$0xff] %v3312_v27  ;;  %3333 = vst [vmem:[%s7747_s25 + $0x48] sm:$0xff] %v3280_v33 }
 0x432   : > { %4896 = vmatpush3.bf16.msra.mxu1 %v5804_v44 }
 0x433   : > { %4912 = vmatprep.subr.bf16.mxu1 %v5878_v20 }
 0x435   : > { %4170 = vmatmul.mubr.bf16.vlgmr.msra.gmra.mrb[136].mxu1 %v3503_v11  ;;  %v3313_v11 = vpop.trf.xlu1 }
 0x436   : > { %4913 = vmatpush3.bf16.msra.mxu1 %v5805_v3  ;;  %4928 = vmatprep.mubr.msk.bf16.mxu1 %vm5879_vm0, %v5878_v20  ;;  %3367 = vst [vmem:[%s7747_s25 + $0x158] sm:$0xff] %v3313_v11 }
 0x437   : > { %4914 = vmatprep.subr.bf16.mxu1 %v5878_v20 }
 0x439   : > { %v3314_v0 = vpop.trf.xlu1 }
 0x43a   : > { %4915 = vmatpush3.bf16.msra.mxu1 %v5806_v32  ;;  %3369 = vst [vmem:[%s7747_s25 + $0x168] sm:$0xff] %v3314_v0 }
 0x43b   : > { %4916 = vmatprep.subr.bf16.mxu1 %v5878_v20 }
 0x43d   : > { %v3315_v57 = vpop.trf.xlu1 }
 0x43e   : > { %4917 = vmatpush3.bf16.msra.mxu1 %v5807_v28  ;;  %3371 = vst [vmem:[%s7747_s25 + $0x178] sm:$0xff] %v3315_v57 }
 0x43f   : > { %4918 = vmatprep.subr.bf16.mxu1 %v5878_v20 }
 0x441   : > { %v3316_v60 = vpop.trf.xlu1 }
 0x442   : > { %4919 = vmatpush3.bf16.msra.mxu1 %v5808_v9  ;;  %3373 = vst [vmem:[%s7747_s25 + $0x188] sm:$0xff] %v3316_v60 }
 0x443   : > { %4920 = vmatprep.subr.bf16.mxu1 %v5878_v20 }
 0x445   : > { %v3317_v47 = vpop.trf.xlu1 }
 0x446   : > { %4921 = vmatpush3.bf16.msra.mxu1 %v5809_v37  ;;  %3375 = vst [vmem:[%s7747_s25 + $0x198] sm:$0xff] %v3317_v47 }
 0x447   : > { %4922 = vmatprep.subr.bf16.mxu1 %v5878_v20 }
 0x44a   : > { %4923 = vmatpush3.bf16.msra.mxu1 %v5810_v18 }
 0x44b   : > { %4924 = vmatprep.subr.bf16.mxu1 %v5878_v20 }
 0x44e   : > { %4925 = vmatpush3.bf16.msra.mxu1 %v5811_v21 }
 0x44f   : > { %4926 = vmatprep.subr.bf16.mxu1 %v5878_v20  ;;  %v3281_v20 = vpop.trf.xlu0 }
 0x450   : > { %3335 = vst [vmem:[%s7747_s25 + $0x58] sm:$0xff] %v3281_v20 }
 0x452   : > { %4927 = vmatpush3.bf16.msra.mxu1 %v5812_v25 }
 0x453   : > { %v3282_v14 = vpop.trf.xlu0 }
 0x454   : > { %3337 = vst [vmem:[%s7747_s25 + $0x68] sm:$0xff] %v3282_v14 }
 0x4a8   : > { %v4831_v50 = vpop.f32.mrb[124].mxu1 }
 0x4a9   : > { %v4832_v13 = vpop.f32.mrb[125].mxu1 }
 0x4aa   : > { %v4833_v16 = vadd.f32 %v4832_v13, %v4831_v50  ;;  %v4834_v8 = vpop.f32.mrb[126].mxu1  ;;  %v3283_v50 = vpop.trf.xlu0 }
 0x4ab   : > { %v4835_v29 = vpop.f32.mrb[127].mxu1  ;;  %3339 = vst [vmem:[%s7747_s25 + $0x78] sm:$0xff] %v3283_v50  ;;  %v3318_v8 = vpop.trf.xlu1 }
 0x4ac   : > { %3377 = vst [vmem:[%s7747_s25 + $0x1a8] sm:$0xff] %v3318_v8 }
 0x4ae   : > { %v3284_v13 = vpop.trf.xlu0 }
 0x4af   : > { %3341 = vst [vmem:[%s7747_s25 + $0x88] sm:$0xff] %v3284_v13  ;;  %v3319_v61 = vpop.trf.xlu1 }
 0x4b0   : > { %3379 = vst [vmem:[%s7747_s25 + $0x1b8] sm:$0xff] %v3319_v61 }
 0x4b3   : > { %v3320_v31 = vpop.trf.xlu1 }
 0x4b4   : > { %3381 = vst [vmem:[%s7747_s25 + $0x1c8] sm:$0xff] %v3320_v31 }
 0x4b7   : > { %v3321_v26 = vpop.trf.xlu1 }
 0x4b8   : > { %3383 = vst [vmem:[%s7747_s25 + $0x1d8] sm:$0xff] %v3321_v26 }
 0x4bb   : > { %v3322_v4 = vpop.trf.xlu1 }
 0x4bc   : > { %3385 = vst [vmem:[%s7747_s25 + $0x1e8] sm:$0xff] %v3322_v4 }
 0x4bf   : > { %v3323_v39 = vpop.trf.xlu1 }
 0x4c0   : > { %3387 = vst [vmem:[%s7747_s25 + $0x1f8] sm:$0xff] %v3323_v39 }
 0x4c8   : > { %v4853_v48 = vpop.f32.mrb[128].mxu1 }
 0x4c9   : > { %v4854_v40 = vpop.f32.mrb[129].mxu1 }
 0x4ca   : > { %v4855_v24 = vadd.f32 %v4854_v40, %v4853_v48  ;;  %v4856_v54 = vpop.f32.mrb[130].mxu1 }
 0x4cb   : > { %v4857_v55 = vpop.f32.mrb[131].mxu1 }
 0x4cc   : > { %v4177_v51 = vadd.f32 %v4855_v24, %v4833_v16  ;;  %v3285_v16 = vpop.trf.xlu0 }
 0x4cd   : > { %3343 = vst [vmem:[%s7747_s25 + $0x98] sm:$0xff] %v3285_v16 }
 0x4d0   : > { %v3286_v29 = vpop.trf.xlu0 }
 0x4d1   : > { %3345 = vst [vmem:[%s7747_s25 + $0xa8] sm:$0xff] %v3286_v29 }
 0x4d4   : > { %v3287_v19 = vpop.trf.xlu0 }
 0x4d5   : > { %3347 = vst [vmem:[%s7747_s25 + $0xb8] sm:$0xff] %v3287_v19 }
 0x4d8   : > { %v3288_v36 = vpop.trf.xlu0 }
 0x4d9   : > { %3349 = vst [vmem:[%s7747_s25 + $0xc8] sm:$0xff] %v3288_v36 }
 0x4dc   : > { %v3289_v30 = vpop.trf.xlu0 }
 0x4dd   : > { %3351 = vst [vmem:[%s7747_s25 + $0xd8] sm:$0xff] %v3289_v30 }
 0x4e0   : > { %v3290_v34 = vpop.trf.xlu0 }
 0x4e1   : > { %3353 = vst [vmem:[%s7747_s25 + $0xe8] sm:$0xff] %v3290_v34 }
 0x4e4   : > { %v3291_v58 = vpop.trf.xlu0 }
 0x4e5   : > { %3355 = vst [vmem:[%s7747_s25 + $0xf8] sm:$0xff] %v3291_v58  ;;  %s7826_s25 = scalar_lea.hbm %s7877_s9, %s4810_s17 }
 0x4e8   : > { %v4875_v44 = vpop.f32.mrb[132].mxu1 }
 0x4e9   : > { %v4876_v3 = vpop.f32.mrb[133].mxu1 }
 0x4ea   : > { %v4877_v32 = vadd.f32 %v4876_v3, %v4875_v44  ;;  %v4878_v28 = vpop.f32.mrb[134].mxu1 }
 0x4eb   : > { %v4879_v9 = vpop.f32.mrb[135].mxu1 }
 0x4ec   : > { %v4178_v37 = vadd.f32 %v4877_v32, %v4177_v51 }
 0x508   : > { %v4897_v18 = vpop.f32.mrb[136].mxu1 }
 0x509   : > { %v4898_v21 = vpop.f32.mrb[137].mxu1 }
 0x50a   : > { %v4899_v25 = vadd.f32 %v4898_v21, %v4897_v18  ;;  %v4900_v59 = vpop.f32.mrb[138].mxu1 }
 0x50b   : > { %v4901_v2 = vpop.f32.mrb[139].mxu1 }
 0x50c   : > { %v4179_v6 = vadd.f32 %v4899_v25, %v4178_v37 }
 0x50e   : > { %v4187_v46 = vadd.f32 %v4800_v38, %v4179_v6 }
 0x510   : > { %v4188_v5 = vmax.f32 %v4187_v46, 0.0 }
 0x512   : > { %v4189_v35 = vpack.c.bf16 %v4188_v5, %v4188_v5 }
 0x514   : > { %4929 = vmatmul.mubr.bf16.vlgmr.msra.gmra.mrb[140].mxu1 %v4189_v35 }
 0x5e7   : > { %v4289_v10 = vpop.f32.mrb[140].mxu1 }
 0x5e8   : > { %v4295_v45 = vadd.f32 %v4289_v10, %v4190_v17  ;;  %v4930_v56 = vpop.f32.mrb[141].mxu1 }
 0x5e9   : > { %v4292_v48 = vpop.f32.mrb[142].mxu1 }
 0x5ea   : > { %4296 = vst [vmem:[%s368_s26] sm:$0xff] %v4295_v45  ;;  %v4931_v42 = vpop.f32.mrb[143].mxu1 }
 0x5eb   : > { %5826 = shalt.err (!%p5823_p7)
}
 0x5ec   : > { %s5827_s14 = scalar_lea.hbm %s7826_s25, 128  ;;  %s5831_s29 = scalar_lea.hbm %s7877_s9, 256 }
 0x5ed   : > { %p5828_p8 = scmp.ne.s32.totalorder %s7826_s25, %s5827_s14  ;;  %p5832_p11 = scmp.lt.u32.totalorder %s7826_s25, %s7877_s9 }
 0x5ee   : > { %p5833_p12 = scmp.lt.u32.totalorder %s5831_s29, %s5827_s14  ;;  %p5835_p0 = scmp.lt.u32.totalorder %s5827_s14, %s7826_s25 }
 0x5ef   : > { %p5829_p9 = pnand %p5828_p8, %p5969_p5 }
 0x5f0   : > { %p5834_p13 = por %p5833_p12, %p5832_p11 }
 0x5f1   : > { %p5830_p10 = pneg %p5829_p9 }
 0x5f2   : > { %p5836_p1 = por %p5835_p0, %p5834_p13 }
 0x5f4   : > { %p5837_p2 = pnand %p5836_p1, %p5830_p10 }
 0x5f6   : > { %5840 = shalt.err (!%p5837_p2)
}
 0x5f7   : > { %5269 = dma.vmem_to_hbm [thread:$0]  (%p5969_p5), %s7828_s16, 128, %s7826_s25, %s4304_s22  }
 0x5f8 PF: > { %p5275_p3 = scmp.ge.s32.totalorder %s5875_s12, 2  ;;  %s4342_s21 = sand.u32 1, %s5863_s30  }
 0x5f9   : > { %s4343_s13 = scalar_lea.sflag [#allocation3], %s4342_s21 }
 0x5fa   : > { %p5272_p4 = pnand %p5275_p3, %p5973_p6 }
 0x5fc   : > { %5858 = dma.done.wait (!%p5272_p4), %s4343_s13, 128  }
 0x5fd   : > { %5860 = vsyncadd (!%p5272_p4), %s4343_s13, 4294967168  ;;  %p20_p7 = scmp.ge.s32.totalorder %s5956_s15, 4   ;;  %s8228_s30 = smov %s5867_s10 }
 0x5fe   : > { %s8229_s10 = smov %s5871_s11  ;;  %s8230_s11 = smov %s5967_s18 }
 0x5ff   : > { %s8231_s12 = smov %s5956_s15  ;;  %22 = sbr.rel (!%p20_p7) target bundleno = 5 (0x5), region = 105 }
 0x606   :  { %4348 = vsyncpa [#allocation3], 1 }
 0x607   :  { %4350 = vsyncpa [#allocation3 + $0x1], 1 }

</bundles_post_ra>
